<compile_context>
chip_gen: v5e
topology: v5e:2x2
jax: 0.10.0
libtpu: 0.0.40
codegen_flags: <defaults>
</compile_context>

<pallas_src>
import functools

import jax
import jax.numpy as jnp
import numpy as np
from jax.experimental import pallas as pl
from jax.experimental.pallas import tpu as pltpu


def _layernorm(v, g, b, eps=1e-5):
    # f32 math (matches the fp32-forcing PyTorch LayerNorm subclass).
    m = jnp.mean(v, axis=-1, keepdims=True)
    var = jnp.mean((v - m) ** 2, axis=-1, keepdims=True)
    return (v - m) * jax.lax.rsqrt(var + eps) * g + b


def residual_attention_block_kernel(
    x_ref,                      # [Nb, L, D] f32
    wqkv_ref, bqkv_ref,         # [D, 3D] bf16 (q cols pre-scaled), [1, 3D] f32
    wo_ref, bo_ref,             # [D, D]  bf16, [1, D]  f32   (out_proj, pre-transposed)
    g1_ref, be1_ref,            # [1, D] f32  LN1 weight/bias
    g2_ref, be2_ref,            # [1, D] f32  LN2 weight/bias
    wfc_ref, bfc_ref,           # [D, 4D] bf16, [1, 4D] f32   (mlp.c_fc, pre-transposed)
    wpj_ref, bpj_ref,           # [4D, D] bf16, [1, D]  f32   (mlp.c_proj, pre-transposed)
    o_ref,                      # [Nb, L, D] f32
    *, d_model, n_head):
    hd = d_model // n_head
    Nb, L, D = x_ref.shape
    M = Nb * L                   # MXU M dimension: batch folded into rows

    x = x_ref[...].reshape(M, D)                                     # [M, D] f32

    # ---------------- attention branch ----------------
    h = _layernorm(x, g1_ref[0], be1_ref[0])                         # f32
    qkv = jnp.dot(h.astype(jnp.bfloat16), wqkv_ref[...],
                  preferred_element_type=jnp.float32) + bqkv_ref[0]  # [M, 3D] f32
    # 1/sqrt(hd) is already folded into the q columns of wqkv / bqkv.
    q = qkv[:, :d_model].astype(jnp.bfloat16)
    k = qkv[:, d_model:2 * d_model].astype(jnp.bfloat16)
    v = qkv[:, 2 * d_model:].astype(jnp.bfloat16)

    # Batch-head batched layout: [Nb*H, L, hd]; K pre-transposed to [Nb*H, hd, L]
    # so the score einsum is a plain (M,K)x(K,N) contraction for the MXU.
    qh = jnp.transpose(q.reshape(Nb, L, n_head, hd), (0, 2, 1, 3)
                       ).reshape(Nb * n_head, L, hd)
    kh = jnp.transpose(k.reshape(Nb, L, n_head, hd), (0, 2, 3, 1)
                       ).reshape(Nb * n_head, hd, L)
    vh = jnp.transpose(v.reshape(Nb, L, n_head, hd), (0, 2, 1, 3)
                       ).reshape(Nb * n_head, L, hd)

    s = jnp.einsum("bqd,bdk->bqk", qh, kh,
                   preferred_element_type=jnp.float32)               # [BH, L, L] f32
    s = s - jnp.max(s, axis=-1, keepdims=True)
    p = jnp.exp(s)                                                   # un-normalized
    denom = jnp.sum(p, axis=-1, keepdims=True)                       # [BH, L, 1] f32
    ctx = jnp.einsum("bqk,bkd->bqd", p.astype(jnp.bfloat16), vh,
                     preferred_element_type=jnp.float32)             # [BH, L, hd] f32
    # Normalize AFTER PV: touches BH*L*hd elements instead of BH*L*L.
    ctx = ctx * pl.reciprocal(denom, approx=True)

    attn = jnp.transpose(ctx.reshape(Nb, n_head, L, hd), (0, 2, 1, 3)
                         ).reshape(M, D)                             # [M, D] f32
    attn = jnp.dot(attn.astype(jnp.bfloat16), wo_ref[...],
                   preferred_element_type=jnp.float32) + bo_ref[0]
    x = x + attn                                                     # residual 1 (f32)

    # ---------------- MLP branch ----------------
    h2 = _layernorm(x, g2_ref[0], be2_ref[0])                        # f32
    fc = jnp.dot(h2.astype(jnp.bfloat16), wfc_ref[...],
                 preferred_element_type=jnp.float32) + bfc_ref[0]    # [M, 4D] f32
    fc = fc * jax.nn.sigmoid(1.702 * fc)                             # QuickGELU (f32)
    pj = jnp.dot(fc.astype(jnp.bfloat16), wpj_ref[...],
                 preferred_element_type=jnp.float32) + bpj_ref[0]    # [M, D] f32
    o_ref[...] = (x + pj).reshape(Nb, L, D)                          # residual 2


def _pick_batch_block(n, l, target_rows=512):
    """Largest divisor of n with nb*l <= target_rows (fills MXU M dim at small L)."""
    nb = 1
    for cand in range(1, n + 1):
        if n % cand == 0 and cand * l <= target_rows:
            nb = cand
    return nb


def _default_vmem_limit_bytes():
    try:
        cap = pltpu.get_tpu_info().vmem_capacity_bytes
    except Exception:
        cap = 64 * 1024 * 1024
    if cap <= 64 * 1024 * 1024:          # v7x: 64 MiB per TensorCore
        return 48 * 1024 * 1024
    return 100 * 1024 * 1024             # v5e / v6e: 128 MiB physical


@functools.partial(jax.jit, static_argnums=(2, 3, 4))
def _residual_attention_block_impl(x_lnd, params, n_head, vmem_limit_bytes,
                                   single_buffer_weights):
    L, N, D = x_lnd.shape
    x = jnp.transpose(x_lnd, (1, 0, 2))                              # [N, L, D]

    # Pre-transpose + cast weights (fused under jit): natural MXU layout, half the
    # VMEM footprint, and the 1/sqrt(hd) scale folded into the q rows of in_proj.
    scale = 1.0 / ((D // n_head) ** 0.5)
    q_scale = jnp.concatenate([jnp.full((D,), scale, jnp.float32),
                               jnp.ones((2 * D,), jnp.float32)])
    wqkv = (params["wqkv"] * q_scale[:, None]).T.astype(jnp.bfloat16)  # [D, 3D]
    bqkv = params["bqkv"] * q_scale[None, :]                           # [1, 3D]
    wo = params["wo"].T.astype(jnp.bfloat16)                           # [D, D]
    wfc = params["wfc"].T.astype(jnp.bfloat16)                         # [D, 4D]
    wpj = params["wpj"].T.astype(jnp.bfloat16)                         # [4D, D]

    weight_args = (wqkv, bqkv, wo, params["bo"],
                   params["g1"], params["b1"], params["g2"], params["b2"],
                   wfc, params["bfc"], wpj, params["bpj"])

    def weight_spec(a):
        # Resident constants: index_map never changes, so one buffer is enough.
        if single_buffer_weights:
            return pl.BlockSpec(a.shape, lambda b, _nd=a.ndim: (0,) * _nd,
                                pipeline_mode=pl.Buffered(1))
        return pl.BlockSpec(a.shape, lambda b, _nd=a.ndim: (0,) * _nd)

    nb = _pick_batch_block(N, L)

    out = pl.pallas_call(
        functools.partial(residual_attention_block_kernel,
                          d_model=D, n_head=n_head),
        out_shape=jax.ShapeDtypeStruct((N, L, D), x.dtype),
        grid=(N // nb,),
        in_specs=[pl.BlockSpec((nb, L, D), lambda b: (b, 0, 0))]
                 + [weight_spec(a) for a in weight_args],
        out_specs=pl.BlockSpec((nb, L, D), lambda b: (b, 0, 0)),
        compiler_params=pltpu.CompilerParams(
            dimension_semantics=("parallel",),
            vmem_limit_bytes=vmem_limit_bytes),
    )(x, *weight_args)
    return jnp.transpose(out, (1, 0, 2))                             # back to [L, N, D]


def residual_attention_block(x_lnd, params, n_head, vmem_limit_bytes=None):
    """x_lnd: [L, N, D] float32 (same layout as the PyTorch module)."""
    if vmem_limit_bytes is None:
        vmem_limit_bytes = _default_vmem_limit_bytes()
    try:
        return _residual_attention_block_impl(
            x_lnd, params, n_head, vmem_limit_bytes, True)
    except Exception:
        # Fallback: identical kernel with default (double-buffered) weight specs,
        # in case this jax build rejects pipeline_mode=pl.Buffered(1).
        return _residual_attention_block_impl(
            x_lnd, params, n_head, vmem_limit_bytes, False)


# ---------------- plain-JAX f32 reference (mirrors PyTorch semantics) ----------------
def reference(x_lnd, params, n_head):
    L, N, D = x_lnd.shape
    hd = D // n_head

    def ln(v, g, b):
        m = v.mean(-1, keepdims=True)
        var = ((v - m) ** 2).mean(-1, keepdims=True)
        return (v - m) / jnp.sqrt(var + 1e-5) * g + b

    x = x_lnd
    h = ln(x, params["g1"][0], params["b1"][0])
    qkv = h @ params["wqkv"].T + params["bqkv"][0]
    q, k, v = jnp.split(qkv, 3, axis=-1)
    q = q.reshape(L, N, n_head, hd) / jnp.sqrt(hd)
    k = k.reshape(L, N, n_head, hd)
    v = v.reshape(L, N, n_head, hd)
    s = jnp.einsum("lnhd,mnhd->nhlm", q, k)
    p = jax.nn.softmax(s, axis=-1)
    o = jnp.einsum("nhlm,mnhd->lnhd", p, v).reshape(L, N, D)
    o = o @ params["wo"].T + params["bo"][0]
    x = x + o
    h2 = ln(x, params["g2"][0], params["b2"][0])
    fc = h2 @ params["wfc"].T + params["bfc"][0]
    fc = fc * jax.nn.sigmoid(1.702 * fc)
    pj = fc @ params["wpj"].T + params["bpj"][0]
    return x + pj


def init_params(key, d_model):
    ks = jax.random.split(key, 8)
    s = 0.05
    return {
        "wqkv": s * jax.random.normal(ks[0], (3 * d_model, d_model), jnp.float32),
        "bqkv": s * jax.random.normal(ks[1], (1, 3 * d_model), jnp.float32),
        "wo":   s * jax.random.normal(ks[2], (d_model, d_model), jnp.float32),
        "bo":   s * jax.random.normal(ks[3], (1, d_model), jnp.float32),
        "g1":   jnp.ones((1, d_model), jnp.float32),
        "b1":   jnp.zeros((1, d_model), jnp.float32),
        "g2":   jnp.ones((1, d_model), jnp.float32),
        "b2":   jnp.zeros((1, d_model), jnp.float32),
        "wfc":  s * jax.random.normal(ks[4], (4 * d_model, d_model), jnp.float32),
        "bfc":  s * jax.random.normal(ks[5], (1, 4 * d_model), jnp.float32),
        "wpj":  s * jax.random.normal(ks[6], (d_model, 4 * d_model), jnp.float32),
        "bpj":  s * jax.random.normal(ks[7], (1, d_model), jnp.float32),
    }


if __name__ == "__main__":
    L, N, D, H = 8, 2, 32, 4                  # seq, batch, d_model, n_head
    key = jax.random.PRNGKey(0)
    kx, kp = jax.random.split(key)
    x = jax.random.normal(kx, (L, N, D), jnp.float32)   # [L, N, D] like PyTorch
    params = init_params(kp, D)

    out = residual_attention_block(x, params, H)
    out = jax.block_until_ready(out)

    ref = jax.block_until_ready(reference(x, params, H))
    # bf16 MXU operands vs. f32 reference -> loosened tolerances.
    np.testing.assert_allclose(np.asarray(out), np.asarray(ref),
                               rtol=3e-2, atol=3e-2)
    print("KERNEL_OK")
</pallas_src>

<mosaic_0001>
module attributes {stable_mosaic.version = 11 : i64} {
  func.func @residual_attention_block_kernel(%arg0: i32, %arg1: memref<2x8x32xf32, #tpu.memory_space<vmem>>, %arg2: memref<32x96xbf16, #tpu.memory_space<vmem>>, %arg3: memref<1x96xf32, #tpu.memory_space<vmem>>, %arg4: memref<32x32xbf16, #tpu.memory_space<vmem>>, %arg5: memref<1x32xf32, #tpu.memory_space<vmem>>, %arg6: memref<1x32xf32, #tpu.memory_space<vmem>>, %arg7: memref<1x32xf32, #tpu.memory_space<vmem>>, %arg8: memref<1x32xf32, #tpu.memory_space<vmem>>, %arg9: memref<1x32xf32, #tpu.memory_space<vmem>>, %arg10: memref<32x128xbf16, #tpu.memory_space<vmem>>, %arg11: memref<1x128xf32, #tpu.memory_space<vmem>>, %arg12: memref<128x32xbf16, #tpu.memory_space<vmem>>, %arg13: memref<1x32xf32, #tpu.memory_space<vmem>>, %arg14: memref<2x8x32xf32, #tpu.memory_space<vmem>>) attributes {dimension_semantics = [#tpu.dimension_semantics<parallel>], iteration_bounds = array<i64: 1>, scalar_prefetch = 0 : i64, scratch_operands = 0 : i64, tpu.core_type = #tpu.core_type<tc>, window_params = [{transform_indices = @transform_0, window_bounds = array<i64: 2, 8, 32>}, {pipeline_mode = #tpu.pipeline_mode<synchronous>, transform_indices = @transform_1, window_bounds = array<i64: 32, 96>}, {pipeline_mode = #tpu.pipeline_mode<synchronous>, transform_indices = @transform_2, window_bounds = array<i64: 1, 96>}, {pipeline_mode = #tpu.pipeline_mode<synchronous>, transform_indices = @transform_3, window_bounds = array<i64: 32, 32>}, {pipeline_mode = #tpu.pipeline_mode<synchronous>, transform_indices = @transform_4, window_bounds = array<i64: 1, 32>}, {pipeline_mode = #tpu.pipeline_mode<synchronous>, transform_indices = @transform_5, window_bounds = array<i64: 1, 32>}, {pipeline_mode = #tpu.pipeline_mode<synchronous>, transform_indices = @transform_6, window_bounds = array<i64: 1, 32>}, {pipeline_mode = #tpu.pipeline_mode<synchronous>, transform_indices = @transform_7, window_bounds = array<i64: 1, 32>}, {pipeline_mode = #tpu.pipeline_mode<synchronous>, transform_indices = @transform_8, window_bounds = array<i64: 1, 32>}, {pipeline_mode = #tpu.pipeline_mode<synchronous>, transform_indices = @transform_9, window_bounds = array<i64: 32, 128>}, {pipeline_mode = #tpu.pipeline_mode<synchronous>, transform_indices = @transform_10, window_bounds = array<i64: 1, 128>}, {pipeline_mode = #tpu.pipeline_mode<synchronous>, transform_indices = @transform_11, window_bounds = array<i64: 128, 32>}, {pipeline_mode = #tpu.pipeline_mode<synchronous>, transform_indices = @transform_12, window_bounds = array<i64: 1, 32>}, {transform_indices = @transform_13, window_bounds = array<i64: 2, 8, 32>}]} {
    %c0 = arith.constant 0 : index
    %c0_0 = arith.constant 0 : index
    %c0_1 = arith.constant 0 : index
    %0 = vector.load %arg1[%c0, %c0_0, %c0_1] : memref<2x8x32xf32, #tpu.memory_space<vmem>>, vector<2x8x32xf32>
    %1 = vector.shape_cast %0 : vector<2x8x32xf32> to vector<16x32xf32>
    %c0_2 = arith.constant 0 : index
    %c0_3 = arith.constant 0 : index
    %2 = vector.load %arg6[%c0_2, %c0_3] : memref<1x32xf32, #tpu.memory_space<vmem>>, vector<1x32xf32>
    %3 = vector.shape_cast %2 : vector<1x32xf32> to vector<32xf32>
    %c0_4 = arith.constant 0 : index
    %c0_5 = arith.constant 0 : index
    %4 = vector.load %arg7[%c0_4, %c0_5] : memref<1x32xf32, #tpu.memory_space<vmem>>, vector<1x32xf32>
    %5 = vector.shape_cast %4 : vector<1x32xf32> to vector<32xf32>
    %cst = arith.constant dense<0.000000e+00> : vector<16xf32>
    %6 = vector.multi_reduction <add>, %1, %cst [1] : vector<16x32xf32> to vector<16xf32>
    %7 = vector.shape_cast %6 : vector<16xf32> to vector<16x1xf32>
    %cst_6 = arith.constant 3.200000e+01 : f32
    %8 = vector.broadcast %cst_6 : f32 to vector<16x1xf32>
    %9 = arith.divf %7, %8 : vector<16x1xf32>
    %10 = vector.broadcast %9 : vector<16x1xf32> to vector<16x32xf32>
    %11 = arith.subf %1, %10 : vector<16x32xf32>
    %12 = arith.mulf %11, %11 : vector<16x32xf32>
    %cst_7 = arith.constant dense<0.000000e+00> : vector<16xf32>
    %13 = vector.multi_reduction <add>, %12, %cst_7 [1] : vector<16x32xf32> to vector<16xf32>
    %14 = vector.shape_cast %13 : vector<16xf32> to vector<16x1xf32>
    %cst_8 = arith.constant 3.200000e+01 : f32
    %15 = vector.broadcast %cst_8 : f32 to vector<16x1xf32>
    %16 = arith.divf %14, %15 : vector<16x1xf32>
    %17 = vector.broadcast %9 : vector<16x1xf32> to vector<16x32xf32>
    %18 = arith.subf %1, %17 : vector<16x32xf32>
    %cst_9 = arith.constant 9.99999974E-6 : f32
    %19 = vector.broadcast %cst_9 : f32 to vector<16x1xf32>
    %20 = arith.addf %16, %19 : vector<16x1xf32>
    %21 = math.rsqrt %20 : vector<16x1xf32>
    %22 = vector.broadcast %21 : vector<16x1xf32> to vector<16x32xf32>
    %23 = arith.mulf %18, %22 : vector<16x32xf32>
    %24 = vector.shape_cast %3 : vector<32xf32> to vector<1x32xf32>
    %25 = vector.broadcast %24 : vector<1x32xf32> to vector<16x32xf32>
    %26 = arith.mulf %23, %25 : vector<16x32xf32>
    %27 = vector.shape_cast %5 : vector<32xf32> to vector<1x32xf32>
    %28 = vector.broadcast %27 : vector<1x32xf32> to vector<16x32xf32>
    %29 = arith.addf %26, %28 : vector<16x32xf32>
    %30 = arith.truncf %29 : vector<16x32xf32> to vector<16x32xbf16>
    %c0_10 = arith.constant 0 : index
    %c0_11 = arith.constant 0 : index
    %31 = vector.load %arg2[%c0_10, %c0_11] : memref<32x96xbf16, #tpu.memory_space<vmem>>, vector<32x96xbf16>
    %cst_12 = arith.constant dense<0.000000e+00> : vector<16x96xf32>
    %32 = tpu.matmul %30, %31, %cst_12 {dimension_numbers = #tpu.dot_dimension_numbers<[1], [0], [0], [1], [0, 0, 1, 1], [], []>} : vector<16x32xbf16>, vector<32x96xbf16>, vector<16x96xf32> -> vector<16x96xf32>
    %c0_13 = arith.constant 0 : index
    %c0_14 = arith.constant 0 : index
    %33 = vector.load %arg3[%c0_13, %c0_14] : memref<1x96xf32, #tpu.memory_space<vmem>>, vector<1x96xf32>
    %34 = vector.shape_cast %33 : vector<1x96xf32> to vector<96xf32>
    %35 = vector.shape_cast %34 : vector<96xf32> to vector<1x96xf32>
    %36 = vector.broadcast %35 : vector<1x96xf32> to vector<16x96xf32>
    %37 = arith.addf %32, %36 : vector<16x96xf32>
    %38 = vector.extract_strided_slice %37 {offsets = [0, 0], sizes = [16, 32], strides = [1, 1]} : vector<16x96xf32> to vector<16x32xf32>
    %39 = arith.truncf %38 : vector<16x32xf32> to vector<16x32xbf16>
    %40 = vector.extract_strided_slice %37 {offsets = [0, 32], sizes = [16, 32], strides = [1, 1]} : vector<16x96xf32> to vector<16x32xf32>
    %41 = arith.truncf %40 : vector<16x32xf32> to vector<16x32xbf16>
    %42 = vector.extract_strided_slice %37 {offsets = [0, 64], sizes = [16, 32], strides = [1, 1]} : vector<16x96xf32> to vector<16x32xf32>
    %43 = arith.truncf %42 : vector<16x32xf32> to vector<16x32xbf16>
    %44 = vector.shape_cast %39 : vector<16x32xbf16> to vector<2x8x4x8xbf16>
    %45 = tpu.transpose %44, [0, 2, 1, 3] : vector<2x8x4x8xbf16> -> vector<2x4x8x8xbf16>
    %46 = vector.shape_cast %45 : vector<2x4x8x8xbf16> to vector<8x8x8xbf16>
    %47 = vector.shape_cast %41 : vector<16x32xbf16> to vector<2x8x4x8xbf16>
    %48 = tpu.transpose %47, [0, 2, 3, 1] : vector<2x8x4x8xbf16> -> vector<2x4x8x8xbf16>
    %49 = vector.shape_cast %48 : vector<2x4x8x8xbf16> to vector<8x8x8xbf16>
    %50 = vector.shape_cast %43 : vector<16x32xbf16> to vector<2x8x4x8xbf16>
    %51 = tpu.transpose %50, [0, 2, 1, 3] : vector<2x8x4x8xbf16> -> vector<2x4x8x8xbf16>
    %52 = vector.shape_cast %51 : vector<2x4x8x8xbf16> to vector<8x8x8xbf16>
    "tpu.trace_start"() <{level = 10 : i32, message = "bqd,bdk->bqk"}> : () -> ()
    %cst_15 = arith.constant dense<0.000000e+00> : vector<8x8x8xf32>
    %53 = tpu.matmul %46, %49, %cst_15 {dimension_numbers = #tpu.dot_dimension_numbers<[2], [1], [1], [2], [0, 0, 0, 1, 1, 2], [0], [0]>} : vector<8x8x8xbf16>, vector<8x8x8xbf16>, vector<8x8x8xf32> -> vector<8x8x8xf32>
    "tpu.trace_stop"() : () -> ()
    %cst_16 = arith.constant dense<0xFF800000> : vector<8x8xf32>
    %54 = vector.multi_reduction <maximumf>, %53, %cst_16 [2] : vector<8x8x8xf32> to vector<8x8xf32>
    %55 = vector.shape_cast %54 : vector<8x8xf32> to vector<8x8x1xf32>
    %56 = vector.broadcast %55 : vector<8x8x1xf32> to vector<8x8x8xf32>
    %57 = arith.subf %53, %56 : vector<8x8x8xf32>
    %58 = math.exp %57 : vector<8x8x8xf32>
    %cst_17 = arith.constant dense<0.000000e+00> : vector<8x8xf32>
    %59 = vector.multi_reduction <add>, %58, %cst_17 [2] : vector<8x8x8xf32> to vector<8x8xf32>
    %60 = vector.shape_cast %59 : vector<8x8xf32> to vector<8x8x1xf32>
    %61 = arith.truncf %58 : vector<8x8x8xf32> to vector<8x8x8xbf16>
    "tpu.trace_start"() <{level = 10 : i32, message = "bqk,bkd->bqd"}> : () -> ()
    %cst_18 = arith.constant dense<0.000000e+00> : vector<8x8x8xf32>
    %62 = tpu.matmul %61, %52, %cst_18 {dimension_numbers = #tpu.dot_dimension_numbers<[2], [1], [1], [2], [0, 0, 0, 1, 1, 2], [0], [0]>} : vector<8x8x8xbf16>, vector<8x8x8xbf16>, vector<8x8x8xf32> -> vector<8x8x8xf32>
    "tpu.trace_stop"() : () -> ()
    %63 = tpu.reciprocal %60 {approx = true} : vector<8x8x1xf32> -> vector<8x8x1xf32>
    %64 = vector.broadcast %63 : vector<8x8x1xf32> to vector<8x8x8xf32>
    %65 = arith.mulf %62, %64 : vector<8x8x8xf32>
    %66 = vector.shape_cast %65 : vector<8x8x8xf32> to vector<2x4x8x8xf32>
    %67 = tpu.transpose %66, [0, 2, 1, 3] : vector<2x4x8x8xf32> -> vector<2x8x4x8xf32>
    %68 = vector.shape_cast %67 : vector<2x8x4x8xf32> to vector<16x32xf32>
    %69 = arith.truncf %68 : vector<16x32xf32> to vector<16x32xbf16>
    %c0_19 = arith.constant 0 : index
    %c0_20 = arith.constant 0 : index
    %70 = vector.load %arg4[%c0_19, %c0_20] : memref<32x32xbf16, #tpu.memory_space<vmem>>, vector<32x32xbf16>
    %cst_21 = arith.constant dense<0.000000e+00> : vector<16x32xf32>
    %71 = tpu.matmul %69, %70, %cst_21 {dimension_numbers = #tpu.dot_dimension_numbers<[1], [0], [0], [1], [0, 0, 1, 1], [], []>} : vector<16x32xbf16>, vector<32x32xbf16>, vector<16x32xf32> -> vector<16x32xf32>
    %c0_22 = arith.constant 0 : index
    %c0_23 = arith.constant 0 : index
    %72 = vector.load %arg5[%c0_22, %c0_23] : memref<1x32xf32, #tpu.memory_space<vmem>>, vector<1x32xf32>
    %73 = vector.shape_cast %72 : vector<1x32xf32> to vector<32xf32>
    %74 = vector.shape_cast %73 : vector<32xf32> to vector<1x32xf32>
    %75 = vector.broadcast %74 : vector<1x32xf32> to vector<16x32xf32>
    %76 = arith.addf %71, %75 : vector<16x32xf32>
    %77 = arith.addf %1, %76 : vector<16x32xf32>
    %c0_24 = arith.constant 0 : index
    %c0_25 = arith.constant 0 : index
    %78 = vector.load %arg8[%c0_24, %c0_25] : memref<1x32xf32, #tpu.memory_space<vmem>>, vector<1x32xf32>
    %79 = vector.shape_cast %78 : vector<1x32xf32> to vector<32xf32>
    %c0_26 = arith.constant 0 : index
    %c0_27 = arith.constant 0 : index
    %80 = vector.load %arg9[%c0_26, %c0_27] : memref<1x32xf32, #tpu.memory_space<vmem>>, vector<1x32xf32>
    %81 = vector.shape_cast %80 : vector<1x32xf32> to vector<32xf32>
    %cst_28 = arith.constant dense<0.000000e+00> : vector<16xf32>
    %82 = vector.multi_reduction <add>, %77, %cst_28 [1] : vector<16x32xf32> to vector<16xf32>
    %83 = vector.shape_cast %82 : vector<16xf32> to vector<16x1xf32>
    %cst_29 = arith.constant 3.200000e+01 : f32
    %84 = vector.broadcast %cst_29 : f32 to vector<16x1xf32>
    %85 = arith.divf %83, %84 : vector<16x1xf32>
    %86 = vector.broadcast %85 : vector<16x1xf32> to vector<16x32xf32>
    %87 = arith.subf %77, %86 : vector<16x32xf32>
    %88 = arith.mulf %87, %87 : vector<16x32xf32>
    %cst_30 = arith.constant dense<0.000000e+00> : vector<16xf32>
    %89 = vector.multi_reduction <add>, %88, %cst_30 [1] : vector<16x32xf32> to vector<16xf32>
    %90 = vector.shape_cast %89 : vector<16xf32> to vector<16x1xf32>
    %cst_31 = arith.constant 3.200000e+01 : f32
    %91 = vector.broadcast %cst_31 : f32 to vector<16x1xf32>
    %92 = arith.divf %90, %91 : vector<16x1xf32>
    %93 = vector.broadcast %85 : vector<16x1xf32> to vector<16x32xf32>
    %94 = arith.subf %77, %93 : vector<16x32xf32>
    %cst_32 = arith.constant 9.99999974E-6 : f32
    %95 = vector.broadcast %cst_32 : f32 to vector<16x1xf32>
    %96 = arith.addf %92, %95 : vector<16x1xf32>
    %97 = math.rsqrt %96 : vector<16x1xf32>
    %98 = vector.broadcast %97 : vector<16x1xf32> to vector<16x32xf32>
    %99 = arith.mulf %94, %98 : vector<16x32xf32>
    %100 = vector.shape_cast %79 : vector<32xf32> to vector<1x32xf32>
    %101 = vector.broadcast %100 : vector<1x32xf32> to vector<16x32xf32>
    %102 = arith.mulf %99, %101 : vector<16x32xf32>
    %103 = vector.shape_cast %81 : vector<32xf32> to vector<1x32xf32>
    %104 = vector.broadcast %103 : vector<1x32xf32> to vector<16x32xf32>
    %105 = arith.addf %102, %104 : vector<16x32xf32>
    %106 = arith.truncf %105 : vector<16x32xf32> to vector<16x32xbf16>
    %c0_33 = arith.constant 0 : index
    %c0_34 = arith.constant 0 : index
    %107 = vector.load %arg10[%c0_33, %c0_34] : memref<32x128xbf16, #tpu.memory_space<vmem>>, vector<32x128xbf16>
    %cst_35 = arith.constant dense<0.000000e+00> : vector<16x128xf32>
    %108 = tpu.matmul %106, %107, %cst_35 {dimension_numbers = #tpu.dot_dimension_numbers<[1], [0], [0], [1], [0, 0, 1, 1], [], []>} : vector<16x32xbf16>, vector<32x128xbf16>, vector<16x128xf32> -> vector<16x128xf32>
    %c0_36 = arith.constant 0 : index
    %c0_37 = arith.constant 0 : index
    %109 = vector.load %arg11[%c0_36, %c0_37] : memref<1x128xf32, #tpu.memory_space<vmem>>, vector<1x128xf32>
    %110 = vector.shape_cast %109 : vector<1x128xf32> to vector<128xf32>
    %111 = vector.shape_cast %110 : vector<128xf32> to vector<1x128xf32>
    %112 = vector.broadcast %111 : vector<1x128xf32> to vector<16x128xf32>
    %113 = arith.addf %108, %112 : vector<16x128xf32>
    %cst_38 = arith.constant 1.702000e+00 : f32
    %114 = vector.broadcast %cst_38 : f32 to vector<16x128xf32>
    %115 = arith.mulf %114, %113 : vector<16x128xf32>
    %116 = arith.negf %115 : vector<16x128xf32>
    %117 = math.exp %116 : vector<16x128xf32>
    %cst_39 = arith.constant 1.000000e+00 : f32
    %118 = vector.broadcast %cst_39 : f32 to vector<16x128xf32>
    %119 = arith.addf %118, %117 : vector<16x128xf32>
    %120 = arith.divf %118, %119 : vector<16x128xf32>
    %121 = arith.mulf %113, %120 : vector<16x128xf32>
    %122 = arith.truncf %121 : vector<16x128xf32> to vector<16x128xbf16>
    %c0_40 = arith.constant 0 : index
    %c0_41 = arith.constant 0 : index
    %123 = vector.load %arg12[%c0_40, %c0_41] : memref<128x32xbf16, #tpu.memory_space<vmem>>, vector<128x32xbf16>
    %cst_42 = arith.constant dense<0.000000e+00> : vector<16x32xf32>
    %124 = tpu.matmul %122, %123, %cst_42 {dimension_numbers = #tpu.dot_dimension_numbers<[1], [0], [0], [1], [0, 0, 1, 1], [], []>} : vector<16x128xbf16>, vector<128x32xbf16>, vector<16x32xf32> -> vector<16x32xf32>
    %c0_43 = arith.constant 0 : index
    %c0_44 = arith.constant 0 : index
    %125 = vector.load %arg13[%c0_43, %c0_44] : memref<1x32xf32, #tpu.memory_space<vmem>>, vector<1x32xf32>
    %126 = vector.shape_cast %125 : vector<1x32xf32> to vector<32xf32>
    %127 = vector.shape_cast %126 : vector<32xf32> to vector<1x32xf32>
    %128 = vector.broadcast %127 : vector<1x32xf32> to vector<16x32xf32>
    %129 = arith.addf %124, %128 : vector<16x32xf32>
    %130 = arith.addf %77, %129 : vector<16x32xf32>
    %131 = vector.shape_cast %130 : vector<16x32xf32> to vector<2x8x32xf32>
    %c0_45 = arith.constant 0 : index
    %c0_46 = arith.constant 0 : index
    %c0_47 = arith.constant 0 : index
    %132 = vector.load %arg14[%c0_45, %c0_46, %c0_47] : memref<2x8x32xf32, #tpu.memory_space<vmem>>, vector<2x8x32xf32>
    tpu.vector_store %arg14[%c0_45, %c0_46, %c0_47], %131 {strides = array<i32>} : memref<2x8x32xf32, #tpu.memory_space<vmem>>, vector<2x8x32xf32>,
    return
  }
  func.func @transform_0(%arg0: i32) -> (i32, i32, i32) {
    %c0_i32 = arith.constant 0 : i32
    %c0_i32_0 = arith.constant 0 : i32
    %c0_i32_1 = arith.constant 0 : i32
    return %arg0, %c0_i32, %c0_i32_0 : i32, i32, i32
  }
  func.func @transform_1(%arg0: i32) -> (i32, i32) {
    %c0_i32 = arith.constant 0 : i32
    %c0_i32_0 = arith.constant 0 : i32
    %c0_i32_1 = arith.constant 0 : i32
    return %c0_i32, %c0_i32_0 : i32, i32
  }
  func.func @transform_2(%arg0: i32) -> (i32, i32) {
    %c0_i32 = arith.constant 0 : i32
    %c0_i32_0 = arith.constant 0 : i32
    %c0_i32_1 = arith.constant 0 : i32
    return %c0_i32, %c0_i32_0 : i32, i32
  }
  func.func @transform_3(%arg0: i32) -> (i32, i32) {
    %c0_i32 = arith.constant 0 : i32
    %c0_i32_0 = arith.constant 0 : i32
    %c0_i32_1 = arith.constant 0 : i32
    return %c0_i32, %c0_i32_0 : i32, i32
  }
  func.func @transform_4(%arg0: i32) -> (i32, i32) {
    %c0_i32 = arith.constant 0 : i32
    %c0_i32_0 = arith.constant 0 : i32
    %c0_i32_1 = arith.constant 0 : i32
    return %c0_i32, %c0_i32_0 : i32, i32
  }
  func.func @transform_5(%arg0: i32) -> (i32, i32) {
    %c0_i32 = arith.constant 0 : i32
    %c0_i32_0 = arith.constant 0 : i32
    %c0_i32_1 = arith.constant 0 : i32
    return %c0_i32, %c0_i32_0 : i32, i32
  }
  func.func @transform_6(%arg0: i32) -> (i32, i32) {
    %c0_i32 = arith.constant 0 : i32
    %c0_i32_0 = arith.constant 0 : i32
    %c0_i32_1 = arith.constant 0 : i32
    return %c0_i32, %c0_i32_0 : i32, i32
  }
  func.func @transform_7(%arg0: i32) -> (i32, i32) {
    %c0_i32 = arith.constant 0 : i32
    %c0_i32_0 = arith.constant 0 : i32
    %c0_i32_1 = arith.constant 0 : i32
    return %c0_i32, %c0_i32_0 : i32, i32
  }
  func.func @transform_8(%arg0: i32) -> (i32, i32) {
    %c0_i32 = arith.constant 0 : i32
    %c0_i32_0 = arith.constant 0 : i32
    %c0_i32_1 = arith.constant 0 : i32
    return %c0_i32, %c0_i32_0 : i32, i32
  }
  func.func @transform_9(%arg0: i32) -> (i32, i32) {
    %c0_i32 = arith.constant 0 : i32
    %c0_i32_0 = arith.constant 0 : i32
    %c0_i32_1 = arith.constant 0 : i32
    return %c0_i32, %c0_i32_0 : i32, i32
  }
  func.func @transform_10(%arg0: i32) -> (i32, i32) {
    %c0_i32 = arith.constant 0 : i32
    %c0_i32_0 = arith.constant 0 : i32
    %c0_i32_1 = arith.constant 0 : i32
    return %c0_i32, %c0_i32_0 : i32, i32
  }
  func.func @transform_11(%arg0: i32) -> (i32, i32) {
    %c0_i32 = arith.constant 0 : i32
    %c0_i32_0 = arith.constant 0 : i32
    %c0_i32_1 = arith.constant 0 : i32
    return %c0_i32, %c0_i32_0 : i32, i32
  }
  func.func @transform_12(%arg0: i32) -> (i32, i32) {
    %c0_i32 = arith.constant 0 : i32
    %c0_i32_0 = arith.constant 0 : i32
    %c0_i32_1 = arith.constant 0 : i32
    return %c0_i32, %c0_i32_0 : i32, i32
  }
  func.func @transform_13(%arg0: i32) -> (i32, i32, i32) {
    %c0_i32 = arith.constant 0 : i32
    %c0_i32_0 = arith.constant 0 : i32
    %c0_i32_1 = arith.constant 0 : i32
    return %arg0, %c0_i32, %c0_i32_0 : i32, i32, i32
  }
}

module attributes {stable_mosaic.version = 11 : i64} {
  func.func @residual_attention_block_kernel(%arg0: i32, %arg1: memref<2x8x32xf32, #tpu.memory_space<vmem>>, %arg2: memref<32x96xbf16, #tpu.memory_space<vmem>>, %arg3: memref<1x96xf32, #tpu.memory_space<vmem>>, %arg4: memref<32x32xbf16, #tpu.memory_space<vmem>>, %arg5: memref<1x32xf32, #tpu.memory_space<vmem>>, %arg6: memref<1x32xf32, #tpu.memory_space<vmem>>, %arg7: memref<1x32xf32, #tpu.memory_space<vmem>>, %arg8: memref<1x32xf32, #tpu.memory_space<vmem>>, %arg9: memref<1x32xf32, #tpu.memory_space<vmem>>, %arg10: memref<32x128xbf16, #tpu.memory_space<vmem>>, %arg11: memref<1x128xf32, #tpu.memory_space<vmem>>, %arg12: memref<128x32xbf16, #tpu.memory_space<vmem>>, %arg13: memref<1x32xf32, #tpu.memory_space<vmem>>, %arg14: memref<2x8x32xf32, #tpu.memory_space<vmem>>) attributes {dimension_semantics = [#tpu.dimension_semantics<parallel>], iteration_bounds = array<i64: 1>, scalar_prefetch = 0 : i64, scratch_operands = 0 : i64, tpu.core_type = #tpu.core_type<tc>, window_params = [{transform_indices = @transform_0, window_bounds = array<i64: 2, 8, 32>}, {pipeline_mode = #tpu.pipeline_mode<synchronous>, transform_indices = @transform_1, window_bounds = array<i64: 32, 96>}, {pipeline_mode = #tpu.pipeline_mode<synchronous>, transform_indices = @transform_2, window_bounds = array<i64: 1, 96>}, {pipeline_mode = #tpu.pipeline_mode<synchronous>, transform_indices = @transform_3, window_bounds = array<i64: 32, 32>}, {pipeline_mode = #tpu.pipeline_mode<synchronous>, transform_indices = @transform_4, window_bounds = array<i64: 1, 32>}, {pipeline_mode = #tpu.pipeline_mode<synchronous>, transform_indices = @transform_5, window_bounds = array<i64: 1, 32>}, {pipeline_mode = #tpu.pipeline_mode<synchronous>, transform_indices = @transform_6, window_bounds = array<i64: 1, 32>}, {pipeline_mode = #tpu.pipeline_mode<synchronous>, transform_indices = @transform_7, window_bounds = array<i64: 1, 32>}, {pipeline_mode = #tpu.pipeline_mode<synchronous>, transform_indices = @transform_8, window_bounds = array<i64: 1, 32>}, {pipeline_mode = #tpu.pipeline_mode<synchronous>, transform_indices = @transform_9, window_bounds = array<i64: 32, 128>}, {pipeline_mode = #tpu.pipeline_mode<synchronous>, transform_indices = @transform_10, window_bounds = array<i64: 1, 128>}, {pipeline_mode = #tpu.pipeline_mode<synchronous>, transform_indices = @transform_11, window_bounds = array<i64: 128, 32>}, {pipeline_mode = #tpu.pipeline_mode<synchronous>, transform_indices = @transform_12, window_bounds = array<i64: 1, 32>}, {transform_indices = @transform_13, window_bounds = array<i64: 2, 8, 32>}]} {
    %c0 = arith.constant 0 : index
    %c0_0 = arith.constant 0 : index
    %c0_1 = arith.constant 0 : index
    %0 = vector.load %arg1[%c0, %c0_0, %c0_1] : memref<2x8x32xf32, #tpu.memory_space<vmem>>, vector<2x8x32xf32>
    %1 = vector.shape_cast %0 : vector<2x8x32xf32> to vector<16x32xf32>
    %c0_2 = arith.constant 0 : index
    %c0_3 = arith.constant 0 : index
    %2 = vector.load %arg6[%c0_2, %c0_3] : memref<1x32xf32, #tpu.memory_space<vmem>>, vector<1x32xf32>
    %3 = vector.shape_cast %2 : vector<1x32xf32> to vector<32xf32>
    %c0_4 = arith.constant 0 : index
    %c0_5 = arith.constant 0 : index
    %4 = vector.load %arg7[%c0_4, %c0_5] : memref<1x32xf32, #tpu.memory_space<vmem>>, vector<1x32xf32>
    %5 = vector.shape_cast %4 : vector<1x32xf32> to vector<32xf32>
    %cst = arith.constant dense<0.000000e+00> : vector<16xf32>
    %6 = vector.multi_reduction <add>, %1, %cst [1] : vector<16x32xf32> to vector<16xf32>
    %7 = vector.shape_cast %6 : vector<16xf32> to vector<16x1xf32>
    %cst_6 = arith.constant 3.200000e+01 : f32
    %8 = vector.broadcast %cst_6 : f32 to vector<16x1xf32>
    %9 = arith.divf %7, %8 : vector<16x1xf32>
    %10 = vector.broadcast %9 : vector<16x1xf32> to vector<16x32xf32>
    %11 = arith.subf %1, %10 : vector<16x32xf32>
    %12 = arith.mulf %11, %11 : vector<16x32xf32>
    %cst_7 = arith.constant dense<0.000000e+00> : vector<16xf32>
    %13 = vector.multi_reduction <add>, %12, %cst_7 [1] : vector<16x32xf32> to vector<16xf32>
    %14 = vector.shape_cast %13 : vector<16xf32> to vector<16x1xf32>
    %cst_8 = arith.constant 3.200000e+01 : f32
    %15 = vector.broadcast %cst_8 : f32 to vector<16x1xf32>
    %16 = arith.divf %14, %15 : vector<16x1xf32>
    %17 = vector.broadcast %9 : vector<16x1xf32> to vector<16x32xf32>
    %18 = arith.subf %1, %17 : vector<16x32xf32>
    %cst_9 = arith.constant 9.99999974E-6 : f32
    %19 = vector.broadcast %cst_9 : f32 to vector<16x1xf32>
    %20 = arith.addf %16, %19 : vector<16x1xf32>
    %21 = math.rsqrt %20 : vector<16x1xf32>
    %22 = vector.broadcast %21 : vector<16x1xf32> to vector<16x32xf32>
    %23 = arith.mulf %18, %22 : vector<16x32xf32>
    %24 = vector.shape_cast %3 : vector<32xf32> to vector<1x32xf32>
    %25 = vector.broadcast %24 : vector<1x32xf32> to vector<16x32xf32>
    %26 = arith.mulf %23, %25 : vector<16x32xf32>
    %27 = vector.shape_cast %5 : vector<32xf32> to vector<1x32xf32>
    %28 = vector.broadcast %27 : vector<1x32xf32> to vector<16x32xf32>
    %29 = arith.addf %26, %28 : vector<16x32xf32>
    %30 = arith.truncf %29 : vector<16x32xf32> to vector<16x32xbf16>
    %c0_10 = arith.constant 0 : index
    %c0_11 = arith.constant 0 : index
    %31 = vector.load %arg2[%c0_10, %c0_11] : memref<32x96xbf16, #tpu.memory_space<vmem>>, vector<32x96xbf16>
    %cst_12 = arith.constant dense<0.000000e+00> : vector<16x96xf32>
    %32 = tpu.matmul %30, %31, %cst_12 {dimension_numbers = #tpu.dot_dimension_numbers<[1], [0], [0], [1], [0, 0, 1, 1], [], []>} : vector<16x32xbf16>, vector<32x96xbf16>, vector<16x96xf32> -> vector<16x96xf32>
    %c0_13 = arith.constant 0 : index
    %c0_14 = arith.constant 0 : index
    %33 = vector.load %arg3[%c0_13, %c0_14] : memref<1x96xf32, #tpu.memory_space<vmem>>, vector<1x96xf32>
    %34 = vector.shape_cast %33 : vector<1x96xf32> to vector<96xf32>
    %35 = vector.shape_cast %34 : vector<96xf32> to vector<1x96xf32>
    %36 = vector.broadcast %35 : vector<1x96xf32> to vector<16x96xf32>
    %37 = arith.addf %32, %36 : vector<16x96xf32>
    %38 = vector.extract_strided_slice %37 {offsets = [0, 0], sizes = [16, 32], strides = [1, 1]} : vector<16x96xf32> to vector<16x32xf32>
    %39 = arith.truncf %38 : vector<16x32xf32> to vector<16x32xbf16>
    %40 = vector.extract_strided_slice %37 {offsets = [0, 32], sizes = [16, 32], strides = [1, 1]} : vector<16x96xf32> to vector<16x32xf32>
    %41 = arith.truncf %40 : vector<16x32xf32> to vector<16x32xbf16>
    %42 = vector.extract_strided_slice %37 {offsets = [0, 64], sizes = [16, 32], strides = [1, 1]} : vector<16x96xf32> to vector<16x32xf32>
    %43 = arith.truncf %42 : vector<16x32xf32> to vector<16x32xbf16>
    %44 = vector.shape_cast %39 : vector<16x32xbf16> to vector<2x8x4x8xbf16>
    %45 = tpu.transpose %44, [0, 2, 1, 3] : vector<2x8x4x8xbf16> -> vector<2x4x8x8xbf16>
    %46 = vector.shape_cast %45 : vector<2x4x8x8xbf16> to vector<8x8x8xbf16>
    %47 = vector.shape_cast %41 : vector<16x32xbf16> to vector<2x8x4x8xbf16>
    %48 = tpu.transpose %47, [0, 2, 3, 1] : vector<2x8x4x8xbf16> -> vector<2x4x8x8xbf16>
    %49 = vector.shape_cast %48 : vector<2x4x8x8xbf16> to vector<8x8x8xbf16>
    %50 = vector.shape_cast %43 : vector<16x32xbf16> to vector<2x8x4x8xbf16>
    %51 = tpu.transpose %50, [0, 2, 1, 3] : vector<2x8x4x8xbf16> -> vector<2x4x8x8xbf16>
    %52 = vector.shape_cast %51 : vector<2x4x8x8xbf16> to vector<8x8x8xbf16>
    "tpu.trace_start"() <{level = 10 : i32, message = "bqd,bdk->bqk"}> : () -> ()
    %cst_15 = arith.constant dense<0.000000e+00> : vector<8x8x8xf32>
    %53 = tpu.matmul %46, %49, %cst_15 {dimension_numbers = #tpu.dot_dimension_numbers<[2], [1], [1], [2], [0, 0, 0, 1, 1, 2], [0], [0]>} : vector<8x8x8xbf16>, vector<8x8x8xbf16>, vector<8x8x8xf32> -> vector<8x8x8xf32>
    "tpu.trace_stop"() : () -> ()
    %cst_16 = arith.constant dense<0xFF800000> : vector<8x8xf32>
    %54 = vector.multi_reduction <maximumf>, %53, %cst_16 [2] : vector<8x8x8xf32> to vector<8x8xf32>
    %55 = vector.shape_cast %54 : vector<8x8xf32> to vector<8x8x1xf32>
    %56 = vector.broadcast %55 : vector<8x8x1xf32> to vector<8x8x8xf32>
    %57 = arith.subf %53, %56 : vector<8x8x8xf32>
    %58 = math.exp %57 : vector<8x8x8xf32>
    %cst_17 = arith.constant dense<0.000000e+00> : vector<8x8xf32>
    %59 = vector.multi_reduction <add>, %58, %cst_17 [2] : vector<8x8x8xf32> to vector<8x8xf32>
    %60 = vector.shape_cast %59 : vector<8x8xf32> to vector<8x8x1xf32>
    %61 = arith.truncf %58 : vector<8x8x8xf32> to vector<8x8x8xbf16>
    "tpu.trace_start"() <{level = 10 : i32, message = "bqk,bkd->bqd"}> : () -> ()
    %cst_18 = arith.constant dense<0.000000e+00> : vector<8x8x8xf32>
    %62 = tpu.matmul %61, %52, %cst_18 {dimension_numbers = #tpu.dot_dimension_numbers<[2], [1], [1], [2], [0, 0, 0, 1, 1, 2], [0], [0]>} : vector<8x8x8xbf16>, vector<8x8x8xbf16>, vector<8x8x8xf32> -> vector<8x8x8xf32>
    "tpu.trace_stop"() : () -> ()
    %63 = tpu.reciprocal %60 {approx = true} : vector<8x8x1xf32> -> vector<8x8x1xf32>
    %64 = vector.broadcast %63 : vector<8x8x1xf32> to vector<8x8x8xf32>
    %65 = arith.mulf %62, %64 : vector<8x8x8xf32>
    %66 = vector.shape_cast %65 : vector<8x8x8xf32> to vector<2x4x8x8xf32>
    %67 = tpu.transpose %66, [0, 2, 1, 3] : vector<2x4x8x8xf32> -> vector<2x8x4x8xf32>
    %68 = vector.shape_cast %67 : vector<2x8x4x8xf32> to vector<16x32xf32>
    %69 = arith.truncf %68 : vector<16x32xf32> to vector<16x32xbf16>
    %c0_19 = arith.constant 0 : index
    %c0_20 = arith.constant 0 : index
    %70 = vector.load %arg4[%c0_19, %c0_20] : memref<32x32xbf16, #tpu.memory_space<vmem>>, vector<32x32xbf16>
    %cst_21 = arith.constant dense<0.000000e+00> : vector<16x32xf32>
    %71 = tpu.matmul %69, %70, %cst_21 {dimension_numbers = #tpu.dot_dimension_numbers<[1], [0], [0], [1], [0, 0, 1, 1], [], []>} : vector<16x32xbf16>, vector<32x32xbf16>, vector<16x32xf32> -> vector<16x32xf32>
    %c0_22 = arith.constant 0 : index
    %c0_23 = arith.constant 0 : index
    %72 = vector.load %arg5[%c0_22, %c0_23] : memref<1x32xf32, #tpu.memory_space<vmem>>, vector<1x32xf32>
    %73 = vector.shape_cast %72 : vector<1x32xf32> to vector<32xf32>
    %74 = vector.shape_cast %73 : vector<32xf32> to vector<1x32xf32>
    %75 = vector.broadcast %74 : vector<1x32xf32> to vector<16x32xf32>
    %76 = arith.addf %71, %75 : vector<16x32xf32>
    %77 = arith.addf %1, %76 : vector<16x32xf32>
    %c0_24 = arith.constant 0 : index
    %c0_25 = arith.constant 0 : index
    %78 = vector.load %arg8[%c0_24, %c0_25] : memref<1x32xf32, #tpu.memory_space<vmem>>, vector<1x32xf32>
    %79 = vector.shape_cast %78 : vector<1x32xf32> to vector<32xf32>
    %c0_26 = arith.constant 0 : index
    %c0_27 = arith.constant 0 : index
    %80 = vector.load %arg9[%c0_26, %c0_27] : memref<1x32xf32, #tpu.memory_space<vmem>>, vector<1x32xf32>
    %81 = vector.shape_cast %80 : vector<1x32xf32> to vector<32xf32>
    %cst_28 = arith.constant dense<0.000000e+00> : vector<16xf32>
    %82 = vector.multi_reduction <add>, %77, %cst_28 [1] : vector<16x32xf32> to vector<16xf32>
    %83 = vector.shape_cast %82 : vector<16xf32> to vector<16x1xf32>
    %cst_29 = arith.constant 3.200000e+01 : f32
    %84 = vector.broadcast %cst_29 : f32 to vector<16x1xf32>
    %85 = arith.divf %83, %84 : vector<16x1xf32>
    %86 = vector.broadcast %85 : vector<16x1xf32> to vector<16x32xf32>
    %87 = arith.subf %77, %86 : vector<16x32xf32>
    %88 = arith.mulf %87, %87 : vector<16x32xf32>
    %cst_30 = arith.constant dense<0.000000e+00> : vector<16xf32>
    %89 = vector.multi_reduction <add>, %88, %cst_30 [1] : vector<16x32xf32> to vector<16xf32>
    %90 = vector.shape_cast %89 : vector<16xf32> to vector<16x1xf32>
    %cst_31 = arith.constant 3.200000e+01 : f32
    %91 = vector.broadcast %cst_31 : f32 to vector<16x1xf32>
    %92 = arith.divf %90, %91 : vector<16x1xf32>
    %93 = vector.broadcast %85 : vector<16x1xf32> to vector<16x32xf32>
    %94 = arith.subf %77, %93 : vector<16x32xf32>
    %cst_32 = arith.constant 9.99999974E-6 : f32
    %95 = vector.broadcast %cst_32 : f32 to vector<16x1xf32>
    %96 = arith.addf %92, %95 : vector<16x1xf32>
    %97 = math.rsqrt %96 : vector<16x1xf32>
    %98 = vector.broadcast %97 : vector<16x1xf32> to vector<16x32xf32>
    %99 = arith.mulf %94, %98 : vector<16x32xf32>
    %100 = vector.shape_cast %79 : vector<32xf32> to vector<1x32xf32>
    %101 = vector.broadcast %100 : vector<1x32xf32> to vector<16x32xf32>
    %102 = arith.mulf %99, %101 : vector<16x32xf32>
    %103 = vector.shape_cast %81 : vector<32xf32> to vector<1x32xf32>
    %104 = vector.broadcast %103 : vector<1x32xf32> to vector<16x32xf32>
    %105 = arith.addf %102, %104 : vector<16x32xf32>
    %106 = arith.truncf %105 : vector<16x32xf32> to vector<16x32xbf16>
    %c0_33 = arith.constant 0 : index
    %c0_34 = arith.constant 0 : index
    %107 = vector.load %arg10[%c0_33, %c0_34] : memref<32x128xbf16, #tpu.memory_space<vmem>>, vector<32x128xbf16>
    %cst_35 = arith.constant dense<0.000000e+00> : vector<16x128xf32>
    %108 = tpu.matmul %106, %107, %cst_35 {dimension_numbers = #tpu.dot_dimension_numbers<[1], [0], [0], [1], [0, 0, 1, 1], [], []>} : vector<16x32xbf16>, vector<32x128xbf16>, vector<16x128xf32> -> vector<16x128xf32>
    %c0_36 = arith.constant 0 : index
    %c0_37 = arith.constant 0 : index
    %109 = vector.load %arg11[%c0_36, %c0_37] : memref<1x128xf32, #tpu.memory_space<vmem>>, vector<1x128xf32>
    %110 = vector.shape_cast %109 : vector<1x128xf32> to vector<128xf32>
    %111 = vector.shape_cast %110 : vector<128xf32> to vector<1x128xf32>
    %112 = vector.broadcast %111 : vector<1x128xf32> to vector<16x128xf32>
    %113 = arith.addf %108, %112 : vector<16x128xf32>
    %cst_38 = arith.constant 1.702000e+00 : f32
    %114 = vector.broadcast %cst_38 : f32 to vector<16x128xf32>
    %115 = arith.mulf %114, %113 : vector<16x128xf32>
    %116 = arith.negf %115 : vector<16x128xf32>
    %117 = math.exp %116 : vector<16x128xf32>
    %cst_39 = arith.constant 1.000000e+00 : f32
    %118 = vector.broadcast %cst_39 : f32 to vector<16x128xf32>
    %119 = arith.addf %118, %117 : vector<16x128xf32>
    %120 = arith.divf %118, %119 : vector<16x128xf32>
    %121 = arith.mulf %113, %120 : vector<16x128xf32>
    %122 = arith.truncf %121 : vector<16x128xf32> to vector<16x128xbf16>
    %c0_40 = arith.constant 0 : index
    %c0_41 = arith.constant 0 : index
    %123 = vector.load %arg12[%c0_40, %c0_41] : memref<128x32xbf16, #tpu.memory_space<vmem>>, vector<128x32xbf16>
    %cst_42 = arith.constant dense<0.000000e+00> : vector<16x32xf32>
    %124 = tpu.matmul %122, %123, %cst_42 {dimension_numbers = #tpu.dot_dimension_numbers<[1], [0], [0], [1], [0, 0, 1, 1], [], []>} : vector<16x128xbf16>, vector<128x32xbf16>, vector<16x32xf32> -> vector<16x32xf32>
    %c0_43 = arith.constant 0 : index
    %c0_44 = arith.constant 0 : index
    %125 = vector.load %arg13[%c0_43, %c0_44] : memref<1x32xf32, #tpu.memory_space<vmem>>, vector<1x32xf32>
    %126 = vector.shape_cast %125 : vector<1x32xf32> to vector<32xf32>
    %127 = vector.shape_cast %126 : vector<32xf32> to vector<1x32xf32>
    %128 = vector.broadcast %127 : vector<1x32xf32> to vector<16x32xf32>
    %129 = arith.addf %124, %128 : vector<16x32xf32>
    %130 = arith.addf %77, %129 : vector<16x32xf32>
    %131 = vector.shape_cast %130 : vector<16x32xf32> to vector<2x8x32xf32>
    %c0_45 = arith.constant 0 : index
    %c0_46 = arith.constant 0 : index
    %c0_47 = arith.constant 0 : index
    %132 = vector.load %arg14[%c0_45, %c0_46, %c0_47] : memref<2x8x32xf32, #tpu.memory_space<vmem>>, vector<2x8x32xf32>
    tpu.vector_store %arg14[%c0_45, %c0_46, %c0_47], %131 {strides = array<i32>} : memref<2x8x32xf32, #tpu.memory_space<vmem>>, vector<2x8x32xf32>,
    return
  }
  func.func @transform_0(%arg0: i32) -> (i32, i32, i32) {
    %c0_i32 = arith.constant 0 : i32
    %c0_i32_0 = arith.constant 0 : i32
    %c0_i32_1 = arith.constant 0 : i32
    return %arg0, %c0_i32, %c0_i32_0 : i32, i32, i32
  }
  func.func @transform_1(%arg0: i32) -> (i32, i32) {
    %c0_i32 = arith.constant 0 : i32
    %c0_i32_0 = arith.constant 0 : i32
    %c0_i32_1 = arith.constant 0 : i32
    return %c0_i32, %c0_i32_0 : i32, i32
  }
  func.func @transform_2(%arg0: i32) -> (i32, i32) {
    %c0_i32 = arith.constant 0 : i32
    %c0_i32_0 = arith.constant 0 : i32
    %c0_i32_1 = arith.constant 0 : i32
    return %c0_i32, %c0_i32_0 : i32, i32
  }
  func.func @transform_3(%arg0: i32) -> (i32, i32) {
    %c0_i32 = arith.constant 0 : i32
    %c0_i32_0 = arith.constant 0 : i32
    %c0_i32_1 = arith.constant 0 : i32
    return %c0_i32, %c0_i32_0 : i32, i32
  }
  func.func @transform_4(%arg0: i32) -> (i32, i32) {
    %c0_i32 = arith.constant 0 : i32
    %c0_i32_0 = arith.constant 0 : i32
    %c0_i32_1 = arith.constant 0 : i32
    return %c0_i32, %c0_i32_0 : i32, i32
  }
  func.func @transform_5(%arg0: i32) -> (i32, i32) {
    %c0_i32 = arith.constant 0 : i32
    %c0_i32_0 = arith.constant 0 : i32
    %c0_i32_1 = arith.constant 0 : i32
    return %c0_i32, %c0_i32_0 : i32, i32
  }
  func.func @transform_6(%arg0: i32) -> (i32, i32) {
    %c0_i32 = arith.constant 0 : i32
    %c0_i32_0 = arith.constant 0 : i32
    %c0_i32_1 = arith.constant 0 : i32
    return %c0_i32, %c0_i32_0 : i32, i32
  }
  func.func @transform_7(%arg0: i32) -> (i32, i32) {
    %c0_i32 = arith.constant 0 : i32
    %c0_i32_0 = arith.constant 0 : i32
    %c0_i32_1 = arith.constant 0 : i32
    return %c0_i32, %c0_i32_0 : i32, i32
  }
  func.func @transform_8(%arg0: i32) -> (i32, i32) {
    %c0_i32 = arith.constant 0 : i32
    %c0_i32_0 = arith.constant 0 : i32
    %c0_i32_1 = arith.constant 0 : i32
    return %c0_i32, %c0_i32_0 : i32, i32
  }
  func.func @transform_9(%arg0: i32) -> (i32, i32) {
    %c0_i32 = arith.constant 0 : i32
    %c0_i32_0 = arith.constant 0 : i32
    %c0_i32_1 = arith.constant 0 : i32
    return %c0_i32, %c0_i32_0 : i32, i32
  }
  func.func @transform_10(%arg0: i32) -> (i32, i32) {
    %c0_i32 = arith.constant 0 : i32
    %c0_i32_0 = arith.constant 0 : i32
    %c0_i32_1 = arith.constant 0 : i32
    return %c0_i32, %c0_i32_0 : i32, i32
  }
  func.func @transform_11(%arg0: i32) -> (i32, i32) {
    %c0_i32 = arith.constant 0 : i32
    %c0_i32_0 = arith.constant 0 : i32
    %c0_i32_1 = arith.constant 0 : i32
    return %c0_i32, %c0_i32_0 : i32, i32
  }
  func.func @transform_12(%arg0: i32) -> (i32, i32) {
    %c0_i32 = arith.constant 0 : i32
    %c0_i32_0 = arith.constant 0 : i32
    %c0_i32_1 = arith.constant 0 : i32
    return %c0_i32, %c0_i32_0 : i32, i32
  }
  func.func @transform_13(%arg0: i32) -> (i32, i32, i32) {
    %c0_i32 = arith.constant 0 : i32
    %c0_i32_0 = arith.constant 0 : i32
    %c0_i32_1 = arith.constant 0 : i32
    return %arg0, %c0_i32, %c0_i32_0 : i32, i32, i32
  }
}

</mosaic_0001>

<bundles_post_ra>
// kernel: mul.9
= control target key start
LH: loop header
LB: loop body
LE: loop exit
PB: predicated region body
PF: predicated region fallthrough
CT: control target
= control target key end

     0   :  { %3 = vsyncpa [#allocation1], 0  ;;  %s50_s11 = smov [#allocation0]   ;;  %s75_s0 = inlined_call_operand.hbm [shape: f32[1,96], index: 0, kind: input, shape index: {}]   ;;  %s76_s1 = inlined_call_operand.vmem [shape: f32[1,96], index: 1, kind: input, shape index: {}]   ;;  %s77_s2 = inlined_call_operand.vmem [shape: f32[1,96], index: 2, kind: output, shape index: {}]  }
   0x1   :  { %s7_s0 = sshll.u32 %s75_s0, 4  ;;  %s9_s12 = sshll.u32 %s50_s11, 4  ;;  %s8_s0 = int_to_ptr.hbm [resolvable:$true] %s7_s0  ;;  %s10_s12 = int_to_ptr.vmem [resolvable:$true] %s9_s12 }
   0x2   :  { %12 = dma.hbm_to_vmem [thread:$0]  %s8_s0, 16, %s10_s12, [#allocation1]  }
   0x3   :  { %48 = dma.done.wait [#allocation1], 16  }
   0x4   :  { %49 = vsyncadd [#allocation1], 4294967280  ;;  %v15_v0 = vld [vmem:[#allocation0] sm:$0x1] }
   0x5   :  { %v16_v1 = vld [vmem:[%s76_s1] sm:$0x1] }
   0x6   :  { %v19_v2 = vmul.f32 %v16_v1, %v15_v0 }
   0x8   :  { %21 = vst [vmem:[%s77_s2] sm:$0x1] %v19_v2 }
   0x9   :  { %22 = vsyncpa [#allocation1], 1 }

// kernel: _residual_attention_block_impl.1
= control target key start
LH: loop header
LB: loop body
LE: loop exit
PB: predicated region body
PF: predicated region fallthrough
CT: control target
= control target key end

     0   :  { %vm49_vm0 = vcmask 261120   ;;  %v2722_v4 = vmov 32.0   ;;  %s2724_s21 = smov 120   ;;  %vm200_vm8 = vcmask 1047556   ;;  %s2729_s22 = smov 64   ;;  %vm1578_vm9 = vcmask 1043456   ;;  %s3367_s0 = inlined_call_operand.vmem [shape: f32[2,8,32], index: 0, kind: input, shape index: {}]   ;;  %s3368_s5 = inlined_call_operand.vmem [shape: f32[1,32], index: 5, kind: input, shape index: {}]   ;;  %s3369_s6 = inlined_call_operand.vmem [shape: f32[1,32], index: 6, kind: input, shape index: {}]   ;;  %s3370_s2 = inlined_call_operand.vmem [shape: f32[1,96], index: 2, kind: input, shape index: {}]   ;;  %s3371_s1 = inlined_call_operand.vmem [shape: bf16[32,96], index: 1, kind: input, shape index: {}]   ;;  %s3372_s4 = inlined_call_operand.vmem [shape: f32[1,32], index: 4, kind: input, shape index: {}]   ;;  %s3373_s3 = inlined_call_operand.vmem [shape: bf16[32,32], index: 3, kind: input, shape index: {}]   ;;  %s3374_s7 = inlined_call_operand.vmem [shape: f32[1,32], index: 7, kind: input, shape index: {}]   ;;  %s3375_s8 = inlined_call_operand.vmem [shape: f32[1,32], index: 8, kind: input, shape index: {}]   ;;  %s3376_s10 = inlined_call_operand.vmem [shape: f32[1,128], index: 10, kind: input, shape index: {}]   ;;  %s3377_s9 = inlined_call_operand.vmem [shape: bf16[32,128], index: 9, kind: input, shape index: {}]   ;;  %s3378_s12 = inlined_call_operand.vmem [shape: f32[1,32], index: 12, kind: input, shape index: {}]   ;;  %s3379_s11 = inlined_call_operand.vmem [shape: bf16[128,32], index: 11, kind: input, shape index: {}]   ;;  %s3380_s13 = inlined_call_operand.vmem [shape: f32[2,8,32], index: 13, kind: output, shape index: {}]  }
   0x1   :  { %v45_v0 = vld [vmem:[%s3367_s0] sm:$0xff]  ;;  %v46_v2 = vld [vmem:[%s3367_s0 + $0x8] sm:$0xff]  ;;  %2670 = vrcp.f32 %v2722_v4  ;;  %vm1574_vm10 = vcmask 64512   ;;  %s2730_s23 = smov 16   ;;  %s2731_s24 = smov 24   ;;  %vm2223_vm11 = vcmask 130048  }
   0x2   :  { %v50_v1 = vsel %vm49_vm0, %v45_v0, 0.0  ;;  %v53_v3 = vsel %vm49_vm0, %v46_v2, 0.0  ;;  %v2574_v21 = vld [vmem:[%s3371_s1 + $0x8] sm:$0xff]  ;;  %v2573_v23 = vld [vmem:[%s3371_s1] sm:$0xff]  ;;  %s2732_s25 = smov 8   ;;  %vm2226_vm12 = vcmask 195584  }
   0x3   :  { %51 = vadd.xlane.f32.xlu0 %v50_v1  ;;  %141 = vmatpush.bf16.msra.mxu0 %v2574_v21  ;;  %v2662_v42 = vld [vmem:[%s3368_s5] ss:$0 sm:$0xff]  ;;  %s2723_s5 = smov 104  }
   0x4   :  { %v2663_v47 = vld [vmem:[%s3369_s6] ss:$0 sm:$0xff]  ;;  %s2725_s6 = smov 96  }
   0x5   :  { %v2664_v52 = vld [vmem:[%s3370_s2] ss:$0 sm:$0xff]  ;;  %s2726_s2 = smov 112  }
   0x7   :  { %v2671_v5 = vpop.eup %2670  ;;  %142 = vmatpush.bf16.msra.mxu0 %v2573_v23 }
   0x8   :  { %v57_v6 = vmul.f32 32.0, %v2671_v5  ;;  %vm61_vm1 = vweird.f32 %v2671_v5 }
   0xa   :  { %v58_v7 = vsub.f32 1.0, %v57_v6  ;;  %v2727_v6 = vmov 1983009808  }
   0xb   :  { %54 = vadd.xlane.f32.xlu0 %v53_v3 }
   0xc   :  { %v59_v8 = vmul.f32 %v2671_v5, %v58_v7  ;;  %v191_v7 = vunpack.c.l.s4 %v2727_v6 }
   0xe   :  { %v60_v9 = vadd.f32 %v2671_v5, %v59_v8 }
  0x10   :  { %v2811_v10 = vsel %vm61_vm1, %v2671_v5, %v60_v9 }
  0x76   :  { %v52_v11 = vpop.xlane.xlu0 %51 }
  0x77   :  { %v63_v12 = vmul.f32 %v2811_v10, %v52_v11 }
  0x79   :  { %v65_v13 = vsub.f32 %v45_v0, %v63_v12  ;;  %v2865_v12 = vunpack.c.0.s8 %v191_v7 }
  0x7b   :  { %v67_v14 = vmul.f32 %v65_v13, %v65_v13 }
  0x7d   :  { %v69_v15 = vsel %vm49_vm0, %v67_v14, 0.0 }
  0x7e   :  { %70 = vadd.xlane.f32.xlu1 %v69_v15  ;;  %v55_v16 = vpop.xlane.xlu0 %54  ;;  %v2728_v15 = vmov 1934713408  }
  0x7f   :  { %v64_v17 = vmul.f32 %v2811_v10, %v55_v16  ;;  %v205_v16 = vunpack.c.l.s4 %v2728_v15 }
  0x81   :  { %v66_v18 = vsub.f32 %v46_v2, %v64_v17 }
  0x83   :  { %v68_v19 = vmul.f32 %v66_v18, %v66_v18 }
  0x85   :  { %v72_v20 = vsel %vm49_vm0, %v68_v19, 0.0 }
  0x86   :  { %73 = vadd.xlane.f32.xlu1 %v72_v20 }
  0xf1   :  { %v71_v22 = vpop.xlane.xlu1 %70 }
  0xf2   :  { %v75_v24 = vmul.f32 %v71_v22, %v2811_v10 }
  0xf4   :  { %v77_v25 = vadd.f32 1e-05, %v75_v24 }
  0xf6   :  { %2672 = vrsqrt.f32 %v77_v25  ;;  %vm85_vm3 = vweird.f32 %v77_v25 }
  0xf9   :  { %v74_v26 = vpop.xlane.xlu1 %73 }
  0xfa   :  { %v76_v27 = vmul.f32 %v74_v26, %v2811_v10 }
  0xfc   :  { %v2673_v28 = vpop.eup %2672  ;;  %v78_v29 = vadd.f32 1e-05, %v76_v27  ;;  %v2870_v27 = vunpack.c.0.s8 %v205_v16 }
  0xfd   :  { %v80_v30 = vmul.f32 %v2673_v28, %v77_v25  ;;  %vm86_vm2 = vweird.f32 %v2673_v28 }
  0xfe   :  { %2674 = vrsqrt.f32 %v78_v29  ;;  %vm87_vm4 = vmor %vm85_vm3, %vm86_vm2  ;;  %vm95_vm6 = vweird.f32 %v78_v29 }
  0xff   :  { %v81_v31 = vmul.f32 %v2673_v28, %v80_v30 }
 0x101   :  { %v82_v32 = vmul.f32 0.5, %v81_v31 }
 0x103   :  { %v83_v33 = vsub.f32 1.5, %v82_v32 }
 0x104   :  { %v2675_v34 = vpop.eup %2674 }
 0x105   :  { %v84_v35 = vmul.f32 %v2673_v28, %v83_v33  ;;  %v90_v36 = vmul.f32 %v2675_v34, %v78_v29  ;;  %vm96_vm5 = vweird.f32 %v2675_v34 }
 0x106   :  { %vm97_vm7 = vmor %vm95_vm6, %vm96_vm5 }
 0x107   :  { %v91_v37 = vmul.f32 %v2675_v34, %v90_v36  ;;  %v88_v38 = vsel %vm87_vm4, %v2673_v28, %v84_v35 }
 0x108   :  { %v99_v41 = vmul.f32 %v88_v38, %v65_v13 }
 0x109   :  { %v92_v39 = vmul.f32 0.5, %v91_v37 }
 0x10a   :  { %v104_v46 = vmul.f32 %v2662_v42, %v99_v41 }
 0x10b   :  { %v93_v40 = vsub.f32 1.5, %v92_v39 }
 0x10c   :  { %v109_v49 = vadd.f32 %v2663_v47, %v104_v46 }
 0x10d   :  { %v94_v43 = vmul.f32 %v2675_v34, %v93_v40 }
 0x10f   :  { %v98_v44 = vsel %vm97_vm7, %v2675_v34, %v94_v43 }
 0x110   :  { %v100_v45 = vmul.f32 %v98_v44, %v66_v18 }
 0x112   :  { %v105_v48 = vmul.f32 %v2662_v42, %v100_v45 }
 0x114   :  { %v110_v50 = vadd.f32 %v2663_v47, %v105_v48 }
 0x116   :  { %v111_v51 = vpack.c.bf16 %v110_v50, %v109_v49 }
 0x118   :  { %2504 = vmatmul.msk.bf16.vlgmr.msra.gmra.mxu0 %vm49_vm0, %v111_v51 }
 0x195   :  { %v144_v53 = vpop.f32.mrf.mxu0 }
 0x196   :  { %v145_v54 = vadd.f32 %v2664_v52, %v144_v53 }
 0x198   :  { %v2835_v55 = vpack.c.bf16 %v145_v54, %v145_v54 }
 0x19a   :  { %161 = vrot.lane.b32.xlu0 %v2835_v55, %s2723_s5  ;;  %153 = vrot.lane.b32.xlu2 %v2835_v55, %s2724_s21 }
 0x19d   :  { %v146_v56 = vpop.f32.mrf.mxu0 }
 0x19e   :  { %v147_v57 = vadd.f32 %v2664_v52, %v146_v56 }
 0x1a0   :  { %v2839_v58 = vpack.c.bf16 %v147_v57, %v147_v57 }
 0x1a2   :  { %155 = vrot.lane.b32.xlu1 %v2839_v58, %s2724_s21  ;;  %396 = vrot.lane.b32.xlu0 %v2839_v58, %s2725_s6 }
 0x1a3   :  { %157 = vrot.lane.b32.xlu2 %v2835_v55, %s2726_s2 }
 0x1ab   :  { %394 = vrot.lane.b32.xlu2 %v2835_v55, %s2725_s6 }
 0x1b3   :  { %159 = vrot.lane.b32.xlu2 %v2839_v58, %s2726_s2 }
 0x1bb   :  { %163 = vrot.lane.b32.xlu2 %v2839_v58, %s2723_s5 }
 0x1f4   :  { %v2847_v59 = vpop.permute.xlu2 %153 }
 0x1f5   :  { %398 = vrot.lane.b32.xlu0 %v2847_v59, %s2725_s6 }
 0x1fd   :  { %v2850_v60 = vpop.permute.xlu2 %157 }
 0x1fe   :  { %402 = vrot.lane.b32.xlu2 %v2850_v60, %s2725_s6 }
 0x205   :  { %v395_v61 = vpop.permute.xlu2 %394 }
 0x206   :  { %v413_v8 = vshrl.u32 %v395_v61, 16 }
 0x20c   :  { %v2853_v62 = vpop.permute.xlu0 %161 }
 0x20d   :  { %v2855_v63 = vpop.permute.xlu2 %159  ;;  %406 = vrot.lane.b32.xlu1 %v2853_v62, %s2725_s6 }
 0x214   :  { %v2858_v0 = vpop.permute.xlu1 %155  ;;  %v397_v2 = vpop.permute.xlu0 %396 }
 0x215   :  { %v2860_v1 = vpop.permute.xlu2 %163  ;;  %400 = vrot.lane.b32.xlu2 %v2858_v0, %s2725_s6  ;;  %404 = vrot.lane.b32.xlu1 %v2855_v63, %s2725_s6  ;;  %v425_v23 = vshrl.u32 %v397_v2, 16 }
 0x216   :  { %408 = vrot.lane.b32.xlu0 %v2860_v1, %s2725_s6 }
 0x258   :  { %v403_v4 = vpop.permute.xlu2 %402 }
 0x259   :  { %v419_v19 = vshrl.u32 %v403_v4, 16 }
 0x267   :  { %v399_v3 = vpop.permute.xlu0 %398 }
 0x268   :  { %v414_v5 = vshrl.u32 %v399_v3, 16  ;;  %v412_v9 = vpack.i.b16 %v399_v3, %v395_v61 }
 0x26a   :  { %v415_v11 = vpack.i.b16 %v414_v5, %v413_v8  ;;  %v438_v14 = vperm.slane %v412_v9, %v2865_v12 }
 0x26c   :  { %v464_v17 = vperm.slane %v415_v11, %v2865_v12  ;;  %v446_v24 = vrot.slane %v438_v14, 4 }
 0x26e   :  { %v472_v28 = vrot.slane %v464_v17, 4 }
 0x26f   :  { %v401_v13 = vpop.permute.xlu2 %400 }
 0x270   :  { %v426_v20 = vshrl.u32 %v401_v13, 16  ;;  %v424_v29 = vpack.i.b16 %v401_v13, %v397_v2 }
 0x272   :  { %v427_v30 = vpack.i.b16 %v426_v20, %v425_v23  ;;  %v490_v38 = vperm.slane %v424_v29, %v2865_v12 }
 0x274   :  { %v516_v41 = vperm.slane %v427_v30, %v2865_v12  ;;  %v498_v56 = vrot.slane %v490_v38, 4 }
 0x276   :  { %v524_v57 = vrot.slane %v516_v41, 4 }
 0x27f   :  { %v407_v18 = vpop.permute.xlu1 %406 }
 0x280   :  { %v418_v21 = vpack.i.b16 %v407_v18, %v403_v4  ;;  %v420_v22 = vshrl.u32 %v407_v18, 16 }
 0x282   :  { %v421_v25 = vpack.i.b16 %v420_v22, %v419_v19  ;;  %v443_v26 = vperm.slane %v418_v21, %v2865_v12 }
 0x284   :  { %v444_v31 = vrot.slane %v443_v26, 4  ;;  %v469_v32 = vperm.slane %v421_v25, %v2865_v12  ;;  %v447_v33 = vsel %vm200_vm8, %v443_v26, %v446_v24 }
 0x285   :  { %v455_v34 = vperm.slane %v447_v33, %v2870_v27 }
 0x286   :  { %v470_v35 = vrot.slane %v469_v32, 4  ;;  %v473_v36 = vsel %vm200_vm8, %v469_v32, %v472_v28  ;;  %v445_v37 = vsel %vm200_vm8, %v444_v31, %v438_v14 }
 0x287   :  { %v405_v39 = vpop.permute.xlu1 %404  ;;  %v481_v40 = vperm.slane %v473_v36, %v2870_v27  ;;  %v458_v45 = vrot.slane %v455_v34, 4  ;;  %v451_v48 = vperm.slane %v445_v37, %v2870_v27 }
 0x288   :  { %v431_v42 = vshrl.u32 %v405_v39, 16  ;;  %v409_v43 = vpop.permute.xlu0 %408  ;;  %v471_v44 = vsel %vm200_vm8, %v470_v35, %v464_v17 }
 0x289   :  { %v430_v46 = vpack.i.b16 %v409_v43, %v405_v39  ;;  %v432_v47 = vshrl.u32 %v409_v43, 16  ;;  %2599 = vxpose.binary.xlu2.c.b16.start.end [1/2] (short) (narrow) %v481_v40, %v455_v34, 16  ;;  %v477_v49 = vperm.slane %v471_v44, %v2870_v27  ;;  %v484_v50 = vrot.slane %v481_v40, 4 }
 0x28a   :  { %v459_v53 = vsel %vm200_vm8, 0, %v458_v45  ;;  %v456_v8 = vrot.slane %v451_v48, 4 }
 0x28b   :  { %v433_v51 = vpack.i.b16 %v432_v47, %v431_v42  ;;  %v495_v52 = vperm.slane %v430_v46, %v2865_v12  ;;  %2602 = vxpose.binary.xlu1.c.b16.start.end [1/2] (short) (narrow) %v477_v49, %v451_v48, 16  ;;  %v485_v54 = vsel %vm200_vm8, 0, %v484_v50  ;;  %v482_v9 = vrot.slane %v477_v49, 4 }
 0x28c   :  { %2605 = vxpose.binary.xlu0.c.b16.start.end [1/2] (short) (narrow) %v485_v54, %v459_v53, 16  ;;  %v457_v16 = vsel %vm200_vm8, 0, %v456_v8 }
 0x28d   :  { %v521_v61 = vperm.slane %v433_v51, %v2865_v12  ;;  %v499_v2 = vsel %vm200_vm8, %v495_v52, %v498_v56  ;;  %v496_v11 = vrot.slane %v495_v52, 4  ;;  %v483_v17 = vsel %vm200_vm8, 0, %v482_v9 }
 0x28e   :  { %v507_v4 = vperm.slane %v499_v2, %v2870_v27 }
 0x28f   :  { %v525_v3 = vsel %vm200_vm8, %v521_v61, %v524_v57  ;;  %v522_v13 = vrot.slane %v521_v61, 4  ;;  %v497_v18 = vsel %vm200_vm8, %v496_v11, %v490_v38 }
 0x290   :  { %v533_v5 = vperm.slane %v525_v3, %v2870_v27  ;;  %v510_v6 = vrot.slane %v507_v4, 4  ;;  %v503_v20 = vperm.slane %v497_v18, %v2870_v27 }
 0x291   :  { %v523_v19 = vsel %vm200_vm8, %v522_v13, %v516_v41 }
 0x292   :  { %v536_v7 = vrot.slane %v533_v5, 4  ;;  %v511_v14 = vsel %vm200_vm8, 0, %v510_v6  ;;  %v529_v21 = vperm.slane %v523_v19, %v2870_v27  ;;  %v508_v22 = vrot.slane %v503_v20, 4 }
 0x294   :  { %v537_v15 = vsel %vm200_vm8, 0, %v536_v7  ;;  %v534_v23 = vrot.slane %v529_v21, 4  ;;  %v509_v24 = vsel %vm200_vm8, 0, %v508_v22 }
 0x296   :  { %v535_v25 = vsel %vm200_vm8, 0, %v534_v23 }
 0x299   :  { %2611 = vxpose.binary.xlu2.c.b16.start.end [1/2] (short) (narrow) %v533_v5, %v507_v4, 16 }
 0x29b   :  { %2617 = vxpose.binary.xlu1.c.b16.start.end [1/2] (short) (narrow) %v537_v15, %v511_v14, 16 }
 0x29c   :  { %2608 = vxpose.binary.xlu0.c.b16.start.end [1/2] (short) (narrow) %v483_v17, %v457_v16, 16 }
 0x2a9   :  { %2620 = vxpose.binary.xlu2.c.b16.start.end [1/2] (short) (narrow) %v535_v25, %v509_v24, 16 }
 0x2ac   :  { %2614 = vxpose.binary.xlu0.c.b16.start.end [1/2] (short) (narrow) %v529_v21, %v503_v20, 16 }
 0x32a   :  { %v2600_v26 = vpop.trf.xlu2 }
 0x32b   :  { %v794_v32 = vrot.slane %v2600_v26, 4 }
 0x332   :  { %v2601_v28 = vpop.trf.xlu2 }
 0x333   :  { %v822_v38 = vrot.slane %v2601_v28, 4 }
 0x337   :  { %v2603_v29 = vpop.trf.xlu1 }
 0x338   :  { %v2606_v30 = vpop.trf.xlu0  ;;  %v795_v35 = vsel %vm200_vm8, %v794_v32, %v2603_v29 }
 0x339   :  { %v799_v37 = vperm.slane %v795_v35, %v2865_v12  ;;  %v800_v39 = vrot.slane %v2606_v30, 4 }
 0x33a   :  { %v2612_v31 = vpop.trf.xlu2 }
 0x33b   :  { %v808_v41 = vrot.slane %v799_v37, 4  ;;  %v850_v11 = vrot.slane %v2612_v31, 4 }
 0x33f   :  { %v2604_v33 = vpop.trf.xlu1 }
 0x340   :  { %v2607_v34 = vpop.trf.xlu0  ;;  %v823_v43 = vsel %vm200_vm8, %v822_v38, %v2604_v33 }
 0x341   :  { %v827_v47 = vperm.slane %v823_v43, %v2865_v12  ;;  %v828_v51 = vrot.slane %v2607_v34, 4 }
 0x342   :  { %v2902_v36 = vpop.trf.xlu2 }
 0x343   :  { %v836_v54 = vrot.slane %v827_v47, 4 }
 0x347   :  { %v2618_v40 = vpop.trf.xlu1 }
 0x348   :  { %v2609_v42 = vpop.trf.xlu0  ;;  %v856_v50 = vrot.slane %v2618_v40, 4 }
 0x349   :  { %v801_v44 = vsel %vm200_vm8, %v800_v39, %v2609_v42  ;;  %v878_v42 = vrot.slane %v2902_v36, 4 }
 0x34a   :  { %v805_v45 = vperm.slane %v801_v44, %v2865_v12  ;;  %v2621_v46 = vpop.trf.xlu2 }
 0x34b   :  { %v857_v61 = vsel %vm200_vm8, %v856_v50, %v2621_v46 }
 0x34c   :  { %v806_v48 = vrot.slane %v805_v45, 4  ;;  %v809_v49 = vsel %vm200_vm8, %v805_v45, %v808_v41  ;;  %v861_v8 = vperm.slane %v857_v61, %v2865_v12 }
 0x34d   :  { %v817_v53 = vperm.slane %v809_v49, %v2870_v27 }
 0x34e   :  { %v807_v52 = vsel %vm200_vm8, %v806_v48, %v799_v37  ;;  %v862_v22 = vrot.slane %v861_v8, 4 }
 0x34f   :  { %v2619_v2 = vpop.trf.xlu1  ;;  %v2915_v3 = vperm.slane %v807_v52, %v2870_v27  ;;  %v820_v5 = vrot.slane %v817_v53, 4  ;;  %v926_v16 = vshrl.u32 %v817_v53, 16 }
 0x350   :  { %v2610_v56 = vpop.trf.xlu0  ;;  %v884_v9 = vrot.slane %v2619_v2, 4 }
 0x351   :  { %v829_v57 = vsel %vm200_vm8, %v828_v51, %v2610_v56  ;;  %v818_v17 = vrot.slane %v2915_v3, 4  ;;  %v821_v20 = vsel %vm200_vm8, 0, %v820_v5 }
 0x352   :  { %v833_v4 = vperm.slane %v829_v57, %v2865_v12  ;;  %v2622_v14 = vpop.trf.xlu2  ;;  %v934_v32 = vshrl.u32 %v821_v20, 16 }
 0x353   :  { %v885_v25 = vsel %vm200_vm8, %v884_v9, %v2622_v14  ;;  %v819_v34 = vsel %vm200_vm8, 0, %v818_v17 }
 0x354   :  { %v834_v6 = vrot.slane %v833_v4, 4  ;;  %v837_v7 = vsel %vm200_vm8, %v833_v4, %v836_v54  ;;  %v889_v35 = vperm.slane %v885_v25, %v2865_v12  ;;  %v918_v43 = vshrl.u32 %v819_v34, 16 }
 0x355   :  { %v845_v13 = vperm.slane %v837_v7, %v2870_v27 }
 0x356   :  { %v835_v15 = vsel %vm200_vm8, %v834_v6, %v827_v47  ;;  %v890_v49 = vrot.slane %v889_v35, 4 }
 0x357   :  { %v841_v18 = vperm.slane %v835_v15, %v2870_v27  ;;  %v927_v19 = vshrl.u32 %v845_v13, 16  ;;  %v848_v21 = vrot.slane %v845_v13, 4  ;;  %v924_v24 = vpack.i.b16 %v845_v13, %v817_v53 }
 0x358   :  { %v2615_v23 = vpop.trf.xlu0  ;;  %v910_v13 = vshrl.u32 %v2915_v3, 16 }
 0x359   :  { %v851_v26 = vsel %vm200_vm8, %v850_v11, %v2615_v23  ;;  %v928_v28 = vpack.i.b16 %v927_v19, %v926_v16  ;;  %v849_v29 = vsel %vm200_vm8, 0, %v848_v21  ;;  %v846_v30 = vrot.slane %v841_v18, 4 }
 0x35a   :  { %v855_v31 = vperm.slane %v851_v26, %v2865_v12  ;;  %v935_v33 = vshrl.u32 %v849_v29, 16  ;;  %v932_v40 = vpack.i.b16 %v849_v29, %v821_v20  ;;  %v911_v7 = vshrl.u32 %v841_v18, 16 }
 0x35b   :  { %2623 = vxpose.binary.xlu2.c.b16.start.end [1/2] (short) (narrow) %v928_v28, %v924_v24, 16  ;;  %v847_v37 = vsel %vm200_vm8, 0, %v846_v30  ;;  %v908_v16 = vpack.i.b16 %v841_v18, %v2915_v3 }
 0x35c   :  { %v863_v38 = vsel %vm200_vm8, %v862_v22, %v855_v31  ;;  %v864_v39 = vrot.slane %v855_v31, 4  ;;  %v936_v41 = vpack.i.b16 %v935_v33, %v934_v32  ;;  %v919_v44 = vshrl.u32 %v847_v37, 16 }
 0x35d   :  { %v869_v46 = vperm.slane %v863_v38, %v2870_v27  ;;  %v916_v47 = vpack.i.b16 %v847_v37, %v819_v34  ;;  %v912_v19 = vpack.i.b16 %v911_v7, %v910_v13  ;;  %v167_v33 = vpack.i.b16 %v2847_v59, %v2835_v55 }
 0x35e   :  { %v865_v45 = vsel %vm200_vm8, %v861_v8, %v864_v39  ;;  %2626 = vxpose.binary.xlu0.c.b16.start.end [1/2] (short) (narrow) %v936_v41, %v932_v40, 16  ;;  %v920_v48 = vpack.i.b16 %v919_v44, %v918_v43  ;;  %v169_v34 = vshrl.u32 %v2847_v59, 16  ;;  %v168_v37 = vshrl.u32 %v2835_v55, 16 }
 0x35f   :  { %v873_v51 = vperm.slane %v865_v45, %v2870_v27  ;;  %v874_v54 = vrot.slane %v869_v46, 4  ;;  %v942_v32 = vshrl.u32 %v869_v46, 16  ;;  %v175_v38 = vshrl.u32 %v2853_v62, 16 }
 0x360   :  { %v2616_v50 = vpop.trf.xlu0  ;;  %2632 = vxpose.binary.xlu1.c.b16.start.end [1/2] (short) (narrow) %v920_v48, %v916_v47, 16  ;;  %v193_v39 = vperm.slane %v167_v33, %v2865_v12  ;;  %v170_v40 = vpack.i.b16 %v169_v34, %v168_v37  ;;  %v174_v41 = vshrl.u32 %v2850_v60, 16  ;;  %v187_v7 = vshrl.u32 %v2860_v1, 16 }
 0x361   :  { %v879_v52 = vsel %vm200_vm8, %v878_v42, %v2616_v50  ;;  %v876_v61 = vrot.slane %v873_v51, 4  ;;  %v875_v5 = vsel %vm200_vm8, 0, %v874_v54  ;;  %v958_v28 = vshrl.u32 %v873_v51, 16 }
 0x362   :  { %v883_v53 = vperm.slane %v879_v52, %v2865_v12  ;;  %v950_v14 = vshrl.u32 %v875_v5, 16  ;;  %v176_v43 = vpack.i.b16 %v175_v38, %v174_v41  ;;  %v202_v44 = vrot.slane %v193_v39, 4 }
 0x363   :  { %v877_v9 = vsel %vm200_vm8, 0, %v876_v61  ;;  %v220_v45 = vperm.slane %v170_v40, %v2865_v12  ;;  %v181_v52 = vshrl.u32 %v2858_v0, 16 }
 0x364   :  { %v891_v36 = vsel %vm200_vm8, %v890_v49, %v883_v53  ;;  %v892_v56 = vrot.slane %v883_v53, 4  ;;  %v966_v21 = vshrl.u32 %v877_v9, 16 }
 0x365   :  { %v897_v57 = vperm.slane %v891_v36, %v2870_v27  ;;  %v228_v48 = vrot.slane %v220_v45, 4 }
 0x366   :  { %v893_v2 = vsel %vm200_vm8, %v889_v35, %v892_v56  ;;  %v173_v35 = vpack.i.b16 %v2853_v62, %v2850_v60  ;;  %v180_v56 = vshrl.u32 %v2839_v58, 16 }
 0x367   :  { %v901_v4 = vperm.slane %v893_v2, %v2870_v27  ;;  %v902_v6 = vrot.slane %v897_v57, 4  ;;  %v943_v29 = vshrl.u32 %v897_v57, 16  ;;  %v940_v3 = vpack.i.b16 %v897_v57, %v869_v46 }
 0x368   :  { %v198_v42 = vperm.slane %v173_v35, %v2865_v12  ;;  %v225_v46 = vperm.slane %v176_v43, %v2865_v12 }
 0x369   :  { %v903_v8 = vsel %vm200_vm8, 0, %v902_v6  ;;  %v904_v11 = vrot.slane %v901_v4, 4  ;;  %v959_v26 = vshrl.u32 %v901_v4, 16  ;;  %v956_v30 = vpack.i.b16 %v901_v4, %v873_v51 }
 0x36a   :  { %v951_v15 = vshrl.u32 %v903_v8, 16  ;;  %v948_v23 = vpack.i.b16 %v903_v8, %v875_v5  ;;  %v944_v18 = vpack.i.b16 %v943_v29, %v942_v32  ;;  %v199_v47 = vrot.slane %v198_v42, 4 }
 0x36b   :  { %v905_v17 = vsel %vm200_vm8, 0, %v904_v11  ;;  %v960_v31 = vpack.i.b16 %v959_v26, %v958_v28  ;;  %v229_v49 = vsel %vm200_vm8, %v225_v46, %v228_v48  ;;  %v182_v4 = vpack.i.b16 %v181_v52, %v180_v56 }
 0x36c   :  { %v952_v20 = vpack.i.b16 %v951_v15, %v950_v14  ;;  %v967_v22 = vshrl.u32 %v905_v17, 16  ;;  %v964_v25 = vpack.i.b16 %v905_v17, %v877_v9  ;;  %v201_v50 = vsel %vm200_vm8, %v199_v47, %v193_v39 }
 0x36d   :  { %v237_v53 = vperm.slane %v229_v49, %v2870_v27  ;;  %v207_v54 = vperm.slane %v201_v50, %v2870_v27  ;;  %v186_v11 = vshrl.u32 %v2855_v63, 16  ;;  %v272_v15 = vperm.slane %v182_v4, %v2865_v12 }
 0x36e   :  { %2629 = vxpose.binary.xlu0.c.b16.start.end [1/2] (short) (narrow) %v912_v19, %v908_v16, 16  ;;  %v968_v24 = vpack.i.b16 %v967_v22, %v966_v21 }
 0x36f   :  { %2638 = vxpose.binary.xlu2.c.b16.start.end [1/2] (short) (narrow) %v952_v20, %v948_v23, 16  ;;  %v240_v6 = vrot.slane %v237_v53, 4  ;;  %v212_v9 = vrot.slane %v207_v54, 4  ;;  %v188_v19 = vpack.i.b16 %v187_v7, %v186_v11 }
 0x370   :  { %2635 = vxpose.binary.xlu1.c.b16.start.end [1/2] (short) (narrow) %v968_v24, %v964_v25, 16  ;;  %v280_v25 = vrot.slane %v272_v15, 4 }
 0x371   :  { %v241_v17 = vsel %vm200_vm8, 0, %v240_v6  ;;  %v213_v23 = vsel %vm200_vm8, 0, %v212_v9 }
 0x372   :  { %v318_v24 = vrot.slane %v241_v17, 4 }
 0x37e   :  { %2641 = vxpose.binary.xlu0.c.b16.start.end [1/2] (short) (narrow) %v960_v31, %v956_v30, 16 }
 0x380   :  { %2644 = vxpose.binary.xlu1.c.b16.start.end [1/2] (short) (narrow) %v944_v18, %v940_v3, 16 }
 0x3d8   :  { %1330 = vrot.lane.b32.xlu2 %v2835_v55, %s2729_s22 }
 0x3da   :  { %1338 = vrot.lane.b32.xlu1 %v2850_v60, %s2729_s22  ;;  %v179_v60 = vpack.i.b16 %v2858_v0, %v2839_v58 }
 0x3dc   :  { %v246_v61 = vperm.slane %v179_v60, %v2865_v12 }
 0x3de   :  { %v254_v13 = vrot.slane %v246_v61, 4 }
 0x3e0   :  { %1342 = vrot.lane.b32.xlu2 %v2853_v62, %s2729_s22  ;;  %v226_v62 = vrot.slane %v225_v46, 4 }
 0x3e2   :  { %1332 = vrot.lane.b32.xlu1 %v2839_v58, %s2729_s22  ;;  %v227_v36 = vsel %vm200_vm8, %v226_v62, %v220_v45 }
 0x3e3   :  { %v233_v5 = vperm.slane %v227_v36, %v2870_v27 }
 0x3e5   :  { %v238_v16 = vrot.slane %v233_v5, 4 }
 0x3e7   :  { %v239_v28 = vsel %vm200_vm8, 0, %v238_v16 }
 0x3e8   :  { %1336 = vrot.lane.b32.xlu2 %v2858_v0, %s2729_s22  ;;  %v185_v0 = vpack.i.b16 %v2860_v1, %v2855_v63  ;;  %v319_v34 = vsel %vm200_vm8, %v318_v24, %v239_v28 }
 0x3ea   :  { %v251_v20 = vperm.slane %v185_v0, %v2865_v12 }
 0x3ec   :  { %1334 = vrot.lane.b32.xlu0 %v2847_v59, %s2729_s22  ;;  %v203_v59 = vsel %vm200_vm8, %v198_v42, %v202_v44  ;;  %v252_v30 = vrot.slane %v251_v20, 4 }
 0x3ed   :  { %v211_v55 = vperm.slane %v203_v59, %v2870_v27  ;;  %v323_v59 = vperm.slane %v319_v34, %v2865_v12 }
 0x3ee   :  { %v253_v40 = vsel %vm200_vm8, %v252_v30, %v246_v61 }
 0x3ef   :  { %v214_v51 = vrot.slane %v211_v55, 4  ;;  %v3010_v48 = vperm.slane %v253_v40, %v2870_v27  ;;  %v324_v56 = vrot.slane %v323_v59, 4 }
 0x3f0   :  { %1340 = vrot.lane.b32.xlu2 %v2855_v63, %s2729_s22  ;;  %v277_v63 = vperm.slane %v188_v19, %v2865_v12 }
 0x3f1   :  { %v215_v2 = vsel %vm200_vm8, 0, %v214_v51  ;;  %v294_v45 = vsel %vm200_vm8, %v214_v51, %v207_v54  ;;  %v313_v51 = vsel %vm200_vm8, %v240_v6, %v233_v5  ;;  %v264_v4 = vrot.slane %v3010_v48, 4 }
 0x3f2   :  { %v299_v14 = vrot.slane %v215_v2, 4  ;;  %v281_v18 = vsel %vm200_vm8, %v277_v63, %v280_v25  ;;  %v278_v35 = vrot.slane %v277_v63, 4  ;;  %v298_v52 = vperm.slane %v294_v45, %v2865_v12 }
 0x3f3   :  { %v289_v43 = vperm.slane %v281_v18, %v2870_v27  ;;  %v317_v7 = vperm.slane %v313_v51, %v2865_v12  ;;  %v265_v19 = vsel %vm200_vm8, 0, %v264_v4 }
 0x3f4   :  { %1344 = vrot.lane.b32.xlu0 %v2860_v1, %s2729_s22  ;;  %v255_v1 = vsel %vm200_vm8, %v251_v20, %v254_v13  ;;  %v300_v29 = vsel %vm200_vm8, %v299_v14, %v213_v23  ;;  %v279_v55 = vsel %vm200_vm8, %v278_v35, %v272_v15 }
 0x3f5   :  { %v263_v31 = vperm.slane %v255_v1, %v2870_v27  ;;  %v304_v33 = vperm.slane %v300_v29, %v2865_v12  ;;  %v3018_v53 = vrot.slane %v289_v43, 4  ;;  %v325_v14 = vsel %vm200_vm8, %v324_v56, %v317_v7 }
 0x3f6   :  { %v329_v1 = vperm.slane %v325_v14, %v2870_v27 }
 0x3f7   :  { %v3002_v41 = vrot.slane %v263_v31, 4  ;;  %v305_v47 = vrot.slane %v304_v33, 4  ;;  %v293_v9 = vsel %vm200_vm8, 0, %v3018_v53 }
 0x3f8   :  { %v374_v43 = vshrl.u32 %v329_v1, 16 }
 0x3f9   :  { %v267_v60 = vsel %vm200_vm8, 0, %v3002_v41  ;;  %v306_v2 = vsel %vm200_vm8, %v305_v47, %v298_v52 }
 0x3fc   :  { %v2624_v58 = vpop.trf.xlu2 }
 0x3fd   :  { %v1226_v3 = vrot.slane %v2624_v58, 4  ;;  %v310_v58 = vperm.slane %v306_v2, %v2870_v27 }
 0x3ff   :  { %v373_v63 = vshrl.u32 %v310_v58, 16  ;;  %v311_v29 = vrot.slane %v310_v58, 4  ;;  %v372_v45 = vpack.i.b16 %v329_v1, %v310_v58 }
 0x401   :  { %v375_v2 = vpack.i.b16 %v374_v43, %v373_v63  ;;  %v312_v4 = vsel %vm200_vm8, 0, %v311_v29 }
 0x402   :  { %v379_v63 = vshrl.u32 %v312_v4, 16 }
 0x404   :  { %v2625_v39 = vpop.trf.xlu2 }
 0x405   :  { %v1246_v54 = vrot.slane %v2625_v39, 4 }
 0x40a   :  { %v2627_v57 = vpop.trf.xlu0 }
 0x40b   :  { %v1232_v21 = vrot.slane %v2627_v57, 4  ;;  %v3022_v57 = vperm.slane %v279_v55, %v2870_v27 }
 0x40c   :  { %v2633_v8 = vpop.trf.xlu1 }
 0x40d   :  { %v1233_v32 = vsel %vm200_vm8, %v1232_v21, %v2633_v8  ;;  %v337_v8 = vrot.slane %v267_v60, 4  ;;  %v290_v15 = vrot.slane %v3022_v57, 4 }
 0x40e   :  { %v1237_v37 = vperm.slane %v1233_v32, %v2865_v12 }
 0x40f   :  { %v291_v30 = vsel %vm200_vm8, 0, %v290_v15 }
 0x410   :  { %v1238_v62 = vrot.slane %v1237_v37, 4  ;;  %v2639_v11 = vpop.trf.xlu2  ;;  %v330_v37 = vrot.slane %v329_v1, 4 }
 0x412   :  { %v2628_v22 = vpop.trf.xlu0  ;;  %v331_v51 = vsel %vm200_vm8, 0, %v330_v37 }
 0x413   :  { %v1252_v38 = vrot.slane %v2628_v22, 4  ;;  %v356_v22 = vrot.slane %v293_v9, 4 }
 0x414   :  { %v2634_v26 = vpop.trf.xlu1 }
 0x415   :  { %v1253_v49 = vsel %vm200_vm8, %v1252_v38, %v2634_v26  ;;  %v338_v26 = vsel %vm200_vm8, %v337_v8, %v265_v19  ;;  %v357_v38 = vsel %vm200_vm8, %v356_v22, %v291_v30 }
 0x416   :  { %v1257_v61 = vperm.slane %v1253_v49, %v2865_v12 }
 0x418   :  { %v1258_v16 = vrot.slane %v1257_v61, 4 }
 0x41a   :  { %v2630_v42 = vpop.trf.xlu0 }
 0x41b   :  { %v1227_v44 = vsel %vm200_vm8, %v1226_v3, %v2630_v42 }
 0x41c   :  { %v1231_v46 = vperm.slane %v1227_v44, %v2865_v12  ;;  %v2636_v50 = vpop.trf.xlu1 }
 0x41d   :  { %v1272_v0 = vrot.slane %v2636_v50, 4 }
 0x41e   :  { %v1239_v36 = vsel %vm200_vm8, %v1238_v62, %v1231_v46  ;;  %v2640_v46 = vpop.trf.xlu2 }
 0x41f   :  { %v1243_v6 = vperm.slane %v1239_v36, %v2870_v27  ;;  %v1273_v20 = vsel %vm200_vm8, %v1272_v0, %v2639_v11  ;;  %v342_v0 = vperm.slane %v338_v26, %v2865_v12  ;;  %v351_v11 = vsel %vm200_vm8, %v3018_v53, %v3022_v57 }
 0x420   :  { %v1277_v28 = vperm.slane %v1273_v20, %v2865_v12  ;;  %v355_v20 = vperm.slane %v351_v11, %v2865_v12 }
 0x421   :  { %v1244_v24 = vrot.slane %v1243_v6, 4  ;;  %v1309_v32 = vshrl.u32 %v1243_v6, 16 }
 0x422   :  { %v2631_v5 = vpop.trf.xlu0  ;;  %v1278_v44 = vrot.slane %v1277_v28, 4 }
 0x423   :  { %v1247_v13 = vsel %vm200_vm8, %v1246_v54, %v2631_v5  ;;  %v1245_v35 = vsel %vm200_vm8, 0, %v1244_v24  ;;  %v361_v54 = vperm.slane %v357_v38, %v2865_v12 }
 0x424   :  { %v1251_v17 = vperm.slane %v1247_v13, %v2865_v12  ;;  %v2637_v21 = vpop.trf.xlu1  ;;  %v1315_v49 = vshrl.u32 %v1245_v35, 16  ;;  %v332_v13 = vsel %vm200_vm8, %v3002_v41, %v3010_v48 }
 0x425   :  { %v1292_v33 = vrot.slane %v2637_v21, 4  ;;  %v362_v14 = vrot.slane %v361_v54, 4  ;;  %v336_v22 = vperm.slane %v332_v13, %v2865_v12 }
 0x426   :  { %v1259_v23 = vsel %vm200_vm8, %v1258_v16, %v1251_v17  ;;  %v343_v16 = vrot.slane %v342_v0, 4 }
 0x427   :  { %v1263_v25 = vperm.slane %v1259_v23, %v2870_v27  ;;  %v1293_v60 = vsel %vm200_vm8, %v1292_v33, %v2640_v46  ;;  %v363_v57 = vsel %vm200_vm8, %v362_v14, %v355_v20  ;;  %v380_v23 = vshrl.u32 %v331_v51, 16 }
 0x428   :  { %v1297_v7 = vperm.slane %v1293_v60, %v2865_v12  ;;  %v344_v41 = vsel %vm200_vm8, %v343_v16, %v336_v22 }
 0x429   :  { %v1308_v31 = vpack.i.b16 %v1263_v25, %v1243_v6  ;;  %v1310_v3 = vshrl.u32 %v1263_v25, 16  ;;  %v1264_v18 = vrot.slane %v1263_v25, 4  ;;  %v378_v6 = vpack.i.b16 %v331_v51, %v312_v4 }
 0x42a   :  { %v2642_v34 = vpop.trf.xlu0  ;;  %v1298_v17 = vrot.slane %v1297_v7, 4  ;;  %v367_v25 = vperm.slane %v363_v57, %v2870_v27  ;;  %v348_v28 = vperm.slane %v344_v41, %v2870_v27 }
 0x42b   :  { %v1266_v39 = vrot.slane %v2642_v34, 4  ;;  %v1580_v40 = vsel %vm1578_vm9, %v1308_v31, 0  ;;  %v1311_v42 = vpack.i.b16 %v1310_v3, %v1309_v32  ;;  %v1265_v59 = vsel %vm200_vm8, 0, %v1264_v18 }
 0x42c   :  { %1589 = vmatpush.bf16.msra.mxu1 %v1580_v40  ;;  %v2645_v47 = vpop.trf.xlu1  ;;  %v1314_v62 = vpack.i.b16 %v1265_v59, %v1245_v35  ;;  %v1316_v50 = vshrl.u32 %v1265_v59, 16  ;;  %v381_v3 = vpack.i.b16 %v380_v23, %v379_v63  ;;  %v386_v35 = vshrl.u32 %v367_v25, 16 }
 0x42d   :  { %v1599_v55 = vsel %vm1578_vm9, %v1311_v42, 0  ;;  %v1267_v52 = vsel %vm200_vm8, %v1266_v39, %v2645_v47  ;;  %v384_v42 = vpack.i.b16 %v367_v25, %v348_v28  ;;  %v385_v43 = vshrl.u32 %v348_v28, 16 }
 0x42e   :  { %1608 = vmatpush.bf16.msra.mxu2 %v1599_v55  ;;  %v1271_v36 = vperm.slane %v1267_v52, %v2865_v12  ;;  %v1618_v56 = vsel %vm1578_vm9, %v1314_v62, 0  ;;  %v1317_v61 = vpack.i.b16 %v1316_v50, %v1315_v49  ;;  %v368_v55 = vrot.slane %v367_v25, 4 }
 0x42f   :  { %2505 = vmatmul.msk.bf16.vlgmr.msra.gmra.mxu1 %vm1574_vm10, %v372_v45  ;;  %1627 = vmatpush.bf16.msra.mxu3 %v1618_v56  ;;  %v387_v59 = vpack.i.b16 %v386_v35, %v385_v43  ;;  %v349_v62 = vrot.slane %v348_v28, 4 }
 0x430   :  { %v1279_v8 = vsel %vm200_vm8, %v1278_v44, %v1271_v36  ;;  %v1637_v5 = vsel %vm1578_vm9, %v1317_v61, 0  ;;  %v369_v49 = vsel %vm200_vm8, 0, %v368_v55 }
 0x431   :  { %2506 = vmatmul.msk.bf16.vlgmr.msra.gmra.mxu2 %vm1574_vm10, %v375_v2  ;;  %1646 = vmatpush.bf16.msrb.mxu1 %v1637_v5  ;;  %v1283_v15 = vperm.slane %v1279_v8, %v2870_v27  ;;  %v350_v50 = vsel %vm200_vm8, 0, %v349_v62  ;;  %v392_v2 = vshrl.u32 %v369_v49, 16 }
 0x432   :  { %v2643_v9 = vpop.trf.xlu0  ;;  %2507 = vmatmul.msk.bf16.vlgmr.msra.gmra.mxu3 %vm1574_vm10, %v378_v6  ;;  %v1331_v47 = vpop.permute.xlu2 %1330  ;;  %v390_v60 = vpack.i.b16 %v369_v49, %v350_v50  ;;  %v391_v7 = vshrl.u32 %v350_v50, 16 }
 0x433   :  { %v1286_v58 = vrot.slane %v2643_v9, 4  ;;  %v1284_v48 = vrot.slane %v1283_v15, 4  ;;  %v1321_v26 = vshrl.u32 %v1283_v15, 16  ;;  %v1349_v11 = vshrl.u32 %v1331_v47, 16 }
 0x434   :  { %v2646_v19 = vpop.trf.xlu1  ;;  %v393_v5 = vpack.i.b16 %v392_v2, %v391_v7 }
 0x435   :  { %v1287_v21 = vsel %vm200_vm8, %v1286_v58, %v2646_v19  ;;  %v1285_v31 = vsel %vm200_vm8, 0, %v1284_v48 }
 0x436   :  { %v1291_v53 = vperm.slane %v1287_v21, %v2865_v12  ;;  %v1327_v38 = vshrl.u32 %v1285_v31, 16 }
 0x438   :  { %v1299_v1 = vsel %vm200_vm8, %v1298_v17, %v1291_v53 }
 0x439   :  { %v1303_v24 = vperm.slane %v1299_v1, %v2870_v27 }
 0x43a   :  { %v1343_v52 = vpop.permute.xlu2 %1342 }
 0x43b   :  { %v1320_v29 = vpack.i.b16 %v1303_v24, %v1283_v15  ;;  %v1322_v30 = vshrl.u32 %v1303_v24, 16  ;;  %v1304_v32 = vrot.slane %v1303_v24, 4  ;;  %v1356_v36 = vshrl.u32 %v1343_v52, 16 }
 0x43d   :  { %v1656_v18 = vsel %vm1578_vm9, %v1320_v29, 0  ;;  %v1323_v33 = vpack.i.b16 %v1322_v30, %v1321_v26  ;;  %v1305_v34 = vsel %vm200_vm8, 0, %v1304_v32 }
 0x43e   :  { %1665 = vmatpush.bf16.msrb.mxu2 %v1656_v18  ;;  %v1326_v37 = vpack.i.b16 %v1305_v34, %v1285_v31  ;;  %v1328_v39 = vshrl.u32 %v1305_v34, 16 }
 0x43f   :  { %2508 = vmatmul.msk.bf16.vlgmr.msrb.gmra.mxu1 %vm1574_vm10, %v381_v3  ;;  %v1675_v40 = vsel %vm1578_vm9, %v1323_v33, 0 }
 0x440   :  { %1684 = vmatpush.bf16.msrb.mxu3 %v1675_v40  ;;  %v1694_v44 = vsel %vm1578_vm9, %v1326_v37, 0  ;;  %v1329_v45 = vpack.i.b16 %v1328_v39, %v1327_v38 }
 0x441   :  { %2509 = vmatmul.msk.bf16.vlgmr.msrb.gmra.mxu2 %vm1574_vm10, %v384_v42  ;;  %1703 = vmatpush.bf16.msra.mxu1 %v1694_v44 }
 0x442   :  { %v1713_v46 = vsel %vm1578_vm9, %v1329_v45, 0  ;;  %v1337_v56 = vpop.permute.xlu2 %1336 }
 0x443   :  { %2510 = vmatmul.msk.bf16.vlgmr.msrb.gmra.mxu3 %vm1574_vm10, %v387_v59  ;;  %v1362_v15 = vshrl.u32 %v1337_v56, 16 }
 0x445   :  { %1722 = vmatpush.bf16.msrb.mxu1 %v1713_v46 }
 0x44a   :  { %v1341_v22 = vpop.permute.xlu2 %1340 }
 0x44b   :  { %v1367_v26 = vshrl.u32 %v1341_v22, 16 }
 0x44c   :  { %v1339_v51 = vpop.permute.xlu1 %1338 }
 0x44d   :  { %v1355_v54 = vshrl.u32 %v1339_v51, 16  ;;  %v1354_v61 = vpack.i.b16 %v1343_v52, %v1339_v51 }
 0x44f   :  { %2511 = vmatmul.msk.bf16.vlgmr.msra.gmra.mxu1 %vm1574_vm10, %v390_v60  ;;  %v1357_v4 = vpack.i.b16 %v1356_v36, %v1355_v54  ;;  %v1379_v8 = vperm.slane %v1354_v61, %v2865_v12 }
 0x451   :  { %v1405_v13 = vperm.slane %v1357_v4, %v2865_v12  ;;  %v1380_v16 = vrot.slane %v1379_v8, 4 }
 0x453   :  { %v1406_v53 = vrot.slane %v1405_v13, 4 }
 0x454   :  { %v1333_v0 = vpop.permute.xlu1 %1332 }
 0x455   :  { %v1361_v6 = vshrl.u32 %v1333_v0, 16  ;;  %v1360_v17 = vpack.i.b16 %v1337_v56, %v1333_v0 }
 0x457   :  { %v1363_v21 = vpack.i.b16 %v1362_v15, %v1361_v6  ;;  %v1426_v1 = vperm.slane %v1360_v17, %v2865_v12 }
 0x459   :  { %v1452_v28 = vperm.slane %v1363_v21, %v2865_v12  ;;  %v1434_v38 = vrot.slane %v1426_v1, 4 }
 0x45b   :  { %v1460_v42 = vrot.slane %v1452_v28, 4 }
 0x45e   :  { %v1335_v9 = vpop.permute.xlu0 %1334 }
 0x45f   :  { %v1348_v58 = vpack.i.b16 %v1335_v9, %v1331_v47  ;;  %v1350_v14 = vshrl.u32 %v1335_v9, 16  ;;  %2512 = vmatmul.msk.bf16.vlgmr.msrb.gmra.mxu1 %vm1574_vm10, %v393_v5 }
 0x461   :  { %v1351_v19 = vpack.i.b16 %v1350_v14, %v1349_v11  ;;  %v1374_v20 = vperm.slane %v1348_v58, %v2865_v12 }
 0x463   :  { %v1381_v57 = vsel %vm200_vm8, %v1380_v16, %v1374_v20  ;;  %v1382_v41 = vrot.slane %v1374_v20, 4  ;;  %v1400_v48 = vperm.slane %v1351_v19, %v2865_v12 }
 0x464   :  { %v1387_v23 = vperm.slane %v1381_v57, %v2870_v27 }
 0x465   :  { %v1383_v24 = vsel %vm200_vm8, %v1379_v8, %v1382_v41  ;;  %v1407_v25 = vsel %vm200_vm8, %v1406_v53, %v1400_v48  ;;  %v1408_v63 = vrot.slane %v1400_v48, 4 }
 0x466   :  { %v1391_v29 = vperm.slane %v1383_v24, %v2870_v27  ;;  %v1413_v30 = vperm.slane %v1407_v25, %v2870_v27  ;;  %v1345_v31 = vpop.permute.xlu0 %1344  ;;  %v1392_v32 = vrot.slane %v1387_v23, 4 }
 0x467   :  { %v1409_v3 = vsel %vm200_vm8, %v1405_v13, %v1408_v63  ;;  %v1366_v18 = vpack.i.b16 %v1345_v31, %v1341_v22  ;;  %v1368_v33 = vshrl.u32 %v1345_v31, 16 }
 0x468   :  { %v1394_v34 = vrot.slane %v1391_v29, 4  ;;  %v1417_v35 = vperm.slane %v1409_v3, %v2870_v27  ;;  %v1418_v37 = vrot.slane %v1413_v30, 4  ;;  %v1393_v45 = vsel %vm200_vm8, 0, %v1392_v32 }
 0x469   :  { %v1369_v39 = vpack.i.b16 %v1368_v33, %v1367_v26  ;;  %v1431_v40 = vperm.slane %v1366_v18, %v2865_v12 }
 0x46a   :  { %v1395_v43 = vsel %vm200_vm8, 0, %v1394_v34  ;;  %v1420_v44 = vrot.slane %v1417_v35, 4  ;;  %v1419_v55 = vsel %vm200_vm8, 0, %v1418_v37  ;;  %v1474_v60 = vsel %vm200_vm8, %v1394_v34, %v1387_v23 }
 0x46b   :  { %v1479_v59 = vrot.slane %v1395_v43, 4  ;;  %v1432_v46 = vrot.slane %v1431_v40, 4  ;;  %v1435_v47 = vsel %vm200_vm8, %v1431_v40, %v1434_v38  ;;  %v1457_v50 = vperm.slane %v1369_v39, %v2865_v12 }
 0x46c   :  { %v1421_v62 = vsel %vm200_vm8, 0, %v1420_v44  ;;  %v1443_v49 = vperm.slane %v1435_v47, %v2870_v27  ;;  %v1493_v4 = vsel %vm200_vm8, %v1420_v44, %v1413_v30  ;;  %v1478_v11 = vperm.slane %v1474_v60, %v2865_v12 }
 0x46d   :  { %v1480_v52 = vsel %vm200_vm8, %v1479_v59, %v1393_v45  ;;  %v1498_v51 = vrot.slane %v1421_v62, 4  ;;  %v1433_v54 = vsel %vm200_vm8, %v1432_v46, %v1426_v1  ;;  %v1458_v61 = vrot.slane %v1457_v50, 4 }
 0x46e   :  { %v1439_v36 = vperm.slane %v1433_v54, %v2870_v27  ;;  %v1446_v56 = vrot.slane %v1443_v49, 4  ;;  %v1461_v2 = vsel %vm200_vm8, %v1457_v50, %v1460_v42  ;;  %v1484_v7 = vperm.slane %v1480_v52, %v2865_v12 }
 0x46f   :  { %v1469_v0 = vperm.slane %v1461_v2, %v2870_v27  ;;  %v1499_v8 = vsel %vm200_vm8, %v1498_v51, %v1419_v55  ;;  %v1459_v9 = vsel %vm200_vm8, %v1458_v61, %v1452_v28  ;;  %v1497_v17 = vperm.slane %v1493_v4, %v2865_v12 }
 0x470   :  { %v1444_v5 = vrot.slane %v1439_v36, 4  ;;  %v1447_v6 = vsel %vm200_vm8, 0, %v1446_v56  ;;  %v1465_v13 = vperm.slane %v1459_v9, %v2870_v27  ;;  %v1485_v16 = vrot.slane %v1484_v7, 4 }
 0x471   :  { %v1472_v58 = vrot.slane %v1469_v0, 4  ;;  %v1517_v14 = vrot.slane %v1447_v6, 4  ;;  %v1503_v19 = vperm.slane %v1499_v8, %v2865_v12  ;;  %v1512_v22 = vsel %vm200_vm8, %v1446_v56, %v1439_v36 }
 0x472   :  { %v1445_v15 = vsel %vm200_vm8, 0, %v1444_v5  ;;  %v1470_v20 = vrot.slane %v1465_v13, 4  ;;  %v1486_v41 = vsel %vm200_vm8, %v1485_v16, %v1478_v11  ;;  %v1516_v25 = vperm.slane %v1512_v22, %v2865_v12 }
 0x473   :  { %v1473_v21 = vsel %vm200_vm8, 0, %v1472_v58  ;;  %v1518_v53 = vsel %vm200_vm8, %v1517_v14, %v1445_v15  ;;  %v1504_v48 = vrot.slane %v1503_v19, 4  ;;  %v1490_v24 = vperm.slane %v1486_v41, %v2870_v27 }
 0x474   :  { %v1536_v57 = vrot.slane %v1473_v21, 4  ;;  %v1522_v23 = vperm.slane %v1518_v53, %v2865_v12  ;;  %v1471_v1 = vsel %vm200_vm8, 0, %v1470_v20  ;;  %v1531_v29 = vsel %vm200_vm8, %v1472_v58, %v1465_v13 }
 0x475   :  { %v1505_v63 = vsel %vm200_vm8, %v1504_v48, %v1497_v17  ;;  %v1491_v31 = vrot.slane %v1490_v24, 4  ;;  %v1553_v3 = vshrl.u32 %v1490_v24, 16  ;;  %v1535_v39 = vperm.slane %v1531_v29, %v2865_v12 }
 0x476   :  { %v1523_v26 = vrot.slane %v1522_v23, 4  ;;  %v1537_v28 = vsel %vm200_vm8, %v1536_v57, %v1471_v1  ;;  %v1509_v30 = vperm.slane %v1505_v63, %v2870_v27 }
 0x477   :  { %v1541_v32 = vperm.slane %v1537_v28, %v2865_v12  ;;  %v1492_v35 = vsel %vm200_vm8, 0, %v1491_v31 }
 0x478   :  { %v1524_v18 = vsel %vm200_vm8, %v1523_v26, %v1516_v25  ;;  %v1552_v33 = vpack.i.b16 %v1509_v30, %v1490_v24  ;;  %v1554_v34 = vshrl.u32 %v1509_v30, 16  ;;  %v1510_v37 = vrot.slane %v1509_v30, 4 }
 0x479   :  { %v1528_v38 = vperm.slane %v1524_v18, %v2870_v27  ;;  %v1542_v40 = vrot.slane %v1541_v32, 4  ;;  %v1559_v59 = vshrl.u32 %v1492_v35, 16 }
 0x47a   :  { %v1812_v42 = vsel %vm1578_vm9, %v1552_v33, 0  ;;  %v1555_v43 = vpack.i.b16 %v1554_v34, %v1553_v3  ;;  %v1511_v44 = vsel %vm200_vm8, 0, %v1510_v37 }
 0x47b   :  { %1821 = vmatpush.bf16.msra.mxu2 %v1812_v42  ;;  %v1558_v45 = vpack.i.b16 %v1511_v44, %v1492_v35  ;;  %v1560_v46 = vshrl.u32 %v1511_v44, 16  ;;  %v1543_v47 = vsel %vm200_vm8, %v1542_v40, %v1535_v39  ;;  %v1529_v49 = vrot.slane %v1528_v38, 4 }
 0x47c   :  { %v1831_v55 = vsel %vm1578_vm9, %v1555_v43, 0  ;;  %v1547_v62 = vperm.slane %v1543_v47, %v2870_v27  ;;  %v1565_v52 = vshrl.u32 %v1528_v38, 16 }
 0x47d   :  { %1840 = vmatpush.bf16.msra.mxu3 %v1831_v55  ;;  %v1850_v50 = vsel %vm1578_vm9, %v1558_v45, 0  ;;  %v1561_v60 = vpack.i.b16 %v1560_v46, %v1559_v59  ;;  %v1530_v36 = vsel %vm200_vm8, 0, %v1529_v49 }
 0x47e   :  { %1859 = vmatpush.bf16.msrb.mxu0 %v1850_v50  ;;  %v1564_v51 = vpack.i.b16 %v1547_v62, %v1528_v38  ;;  %v1566_v54 = vshrl.u32 %v1547_v62, 16  ;;  %v1548_v56 = vrot.slane %v1547_v62, 4  ;;  %v1571_v8 = vshrl.u32 %v1530_v36, 16 }
 0x47f   :  { %v1869_v61 = vsel %vm1578_vm9, %v1561_v60, 0 }
 0x480   :  { %1878 = vmatpush.bf16.msra.mxu1 %v1869_v61  ;;  %v1888_v2 = vsel %vm1578_vm9, %v1564_v51, 0  ;;  %v1567_v4 = vpack.i.b16 %v1566_v54, %v1565_v52  ;;  %v1549_v0 = vsel %vm200_vm8, 0, %v1548_v56 }
 0x481   :  { %1897 = vmatpush.bf16.msrb.mxu2 %v1888_v2  ;;  %v1570_v7 = vpack.i.b16 %v1549_v0, %v1530_v36  ;;  %v1572_v5 = vshrl.u32 %v1549_v0, 16 }
 0x482   :  { %v1907_v6 = vsel %vm1578_vm9, %v1567_v4, 0 }
 0x483   :  { %1916 = vmatpush.bf16.msrb.mxu3 %v1907_v6  ;;  %v1926_v9 = vsel %vm1578_vm9, %v1570_v7, 0  ;;  %v1573_v11 = vpack.i.b16 %v1572_v5, %v1571_v8 }
 0x484   :  { %1935 = vmatpush.bf16.msra.mxu0 %v1926_v9 }
 0x485   :  { %v1945_v13 = vsel %vm1578_vm9, %v1573_v11, 0 }
 0x486   :  { %1954 = vmatpush.bf16.msrb.mxu1 %v1945_v13 }
 0x4ac   :  { %v1591_v58 = vpop.f32.mrf.mxu1 }
 0x4ad   :  { %v1728_v14 = vsel %vm1574_vm10, %v1591_v58, -inf }
 0x4ae   :  { %1729 = vmax.xlane.f32.xlu1 %v1728_v14 }
 0x4b4   :  { %v1593_v15 = vpop.f32.mrf.mxu1  ;;  %v1610_v16 = vpop.f32.mrf.mxu2 }
 0x4b5   :  { %v1731_v17 = vsel %vm1574_vm10, %v1610_v16, -inf  ;;  %v1629_v19 = vpop.f32.mrf.mxu3 }
 0x4b6   :  { %1732 = vmax.xlane.f32.xlu2 %v1731_v17  ;;  %v1734_v20 = vsel %vm1574_vm10, %v1629_v19, -inf }
 0x4b7   :  { %1735 = vmax.xlane.f32.xlu0 %v1734_v20 }
 0x4bc   :  { %v1612_v21 = vpop.f32.mrf.mxu2  ;;  %v1648_v22 = vpop.f32.mrf.mxu1 }
 0x4bd   :  { %v1737_v53 = vsel %vm1574_vm10, %v1648_v22, -inf  ;;  %v1631_v57 = vpop.f32.mrf.mxu3 }
 0x4be   :  { %1738 = vmax.xlane.f32.xlu1 %v1737_v53 }
 0x4c4   :  { %v1650_v41 = vpop.f32.mrf.mxu1  ;;  %v1667_v48 = vpop.f32.mrf.mxu2 }
 0x4c5   :  { %v1740_v23 = vsel %vm1574_vm10, %v1667_v48, -inf }
 0x4c6   :  { %1741 = vmax.xlane.f32.xlu1 %v1740_v23  ;;  %v1686_v1 = vpop.f32.mrf.mxu3 }
 0x4c7   :  { %v1743_v24 = vsel %vm1574_vm10, %v1686_v1, -inf }
 0x4c8   :  { %1744 = vmax.xlane.f32.xlu2 %v1743_v24 }
 0x4cc   :  { %v1705_v25 = vpop.f32.mrf.mxu1  ;;  %v1669_v63 = vpop.f32.mrf.mxu2 }
 0x4cd   :  { %v1746_v26 = vsel %vm1574_vm10, %v1705_v25, -inf }
 0x4ce   :  { %1747 = vmax.xlane.f32.xlu1 %v1746_v26  ;;  %v1688_v28 = vpop.f32.mrf.mxu3 }
 0x4d4   :  { %v1707_v29 = vpop.f32.mrf.mxu1 }
 0x4dc   :  { %v3168_v30 = vpop.f32.mrf.mxu1 }
 0x4dd   :  { %v1749_v31 = vsel %vm1574_vm10, %v3168_v30, -inf }
 0x4de   :  { %1750 = vmax.xlane.f32.xlu0 %v1749_v31 }
 0x4e4   :  { %v1726_v32 = vpop.f32.mrf.mxu1 }
 0x521   :  { %v1730_v3 = vpop.xlane.xlu1 %1729 }
 0x522   :  { %v1752_v18 = vsub.f32 %v1591_v58, %v1730_v3 }
 0x524   :  { %v1760_v33 = vmul.f32 1.442695, %v1752_v18 }
 0x526   :  { %2676 = vpow2.f32 %v1760_v33 }
 0x529   :  { %v1733_v34 = vpop.xlane.xlu2 %1732 }
 0x52a   :  { %v1753_v35 = vsub.f32 %v1610_v16, %v1733_v34  ;;  %v1736_v37 = vpop.xlane.xlu0 %1735 }
 0x52b   :  { %v1754_v40 = vsub.f32 %v1629_v19, %v1736_v37 }
 0x52c   :  { %v2677_v38 = vpop.eup %2676  ;;  %v1762_v39 = vmul.f32 1.442695, %v1753_v35 }
 0x52d   :  { %v1800_v42 = vpack.c.bf16 %v2677_v38, %v2677_v38  ;;  %v1776_v43 = vsel %vm1574_vm10, %v2677_v38, 0.0  ;;  %v1764_v44 = vmul.f32 1.442695, %v1754_v40 }
 0x52e   :  { %2678 = vpow2.f32 %v1762_v39  ;;  %1777 = vadd.xlane.f32.xlu0 %v1776_v43 }
 0x52f   :  { %2513 = vmatmul.msk.bf16.vlgmr.msra.gmra.mxu2 %vm1574_vm10, %v1800_v42  ;;  %2680 = vpow2.f32 %v1764_v44 }
 0x531   :  { %v1739_v45 = vpop.xlane.xlu1 %1738 }
 0x532   :  { %v1755_v59 = vsub.f32 %v1648_v22, %v1739_v45 }
 0x534   :  { %v2679_v46 = vpop.eup %2678  ;;  %v1766_v47 = vmul.f32 1.442695, %v1755_v59 }
 0x535   :  { %v1801_v55 = vpack.c.bf16 %v2679_v46, %v2679_v46  ;;  %v2681_v62 = vpop.eup %2680  ;;  %v1779_v13 = vsel %vm1574_vm10, %v2679_v46, 0.0 }
 0x536   :  { %2682 = vpow2.f32 %v1766_v47  ;;  %v1782_v49 = vsel %vm1574_vm10, %v2681_v62, 0.0  ;;  %v1802_v50 = vpack.c.bf16 %v2681_v62, %v2681_v62 }
 0x537   :  { %2514 = vmatmul.msk.bf16.vlgmr.msra.gmra.mxu3 %vm1574_vm10, %v1801_v55  ;;  %1783 = vadd.xlane.f32.xlu2 %v1782_v49 }
 0x538   :  { %2515 = vmatmul.msk.bf16.vlgmr.msrb.gmra.mxu0 %vm1574_vm10, %v1802_v50 }
 0x539   :  { %v1742_v60 = vpop.xlane.xlu1 %1741 }
 0x53a   :  { %v1756_v52 = vsub.f32 %v1667_v48, %v1742_v60 }
 0x53b   :  { %v1745_v54 = vpop.xlane.xlu2 %1744 }
 0x53c   :  { %v2683_v51 = vpop.eup %2682  ;;  %v1768_v56 = vmul.f32 1.442695, %v1756_v52  ;;  %v1757_v61 = vsub.f32 %v1686_v1, %v1745_v54 }
 0x53d   :  { %v1803_v36 = vpack.c.bf16 %v2683_v51, %v2683_v51  ;;  %v1785_v2 = vsel %vm1574_vm10, %v2683_v51, 0.0 }
 0x53e   :  { %2684 = vpow2.f32 %v1768_v56  ;;  %v1770_v4 = vmul.f32 1.442695, %v1757_v61 }
 0x53f   :  { %2516 = vmatmul.msk.bf16.vlgmr.msra.gmra.mxu1 %vm1574_vm10, %v1803_v36  ;;  %1786 = vadd.xlane.f32.xlu2 %v1785_v2 }
 0x540   :  { %2686 = vpow2.f32 %v1770_v4 }
 0x541   :  { %v1748_v0 = vpop.xlane.xlu1 %1747 }
 0x542   :  { %v1758_v7 = vsub.f32 %v1705_v25, %v1748_v0 }
 0x544   :  { %v2685_v8 = vpop.eup %2684  ;;  %v1772_v5 = vmul.f32 1.442695, %v1758_v7 }
 0x545   :  { %v1804_v6 = vpack.c.bf16 %v2685_v8, %v2685_v8  ;;  %v1788_v9 = vsel %vm1574_vm10, %v2685_v8, 0.0 }
 0x546   :  { %v2687_v11 = vpop.eup %2686  ;;  %2688 = vpow2.f32 %v1772_v5  ;;  %1789 = vadd.xlane.f32.xlu1 %v1788_v9 }
 0x547   :  { %v1805_v58 = vpack.c.bf16 %v2687_v11, %v2687_v11  ;;  %2517 = vmatmul.msk.bf16.vlgmr.msrb.gmra.mxu2 %vm1574_vm10, %v1804_v6  ;;  %1780 = vadd.xlane.f32.xlu2 %v1779_v13  ;;  %v1791_v21 = vsel %vm1574_vm10, %v2687_v11, 0.0 }
 0x549   :  { %2518 = vmatmul.msk.bf16.vlgmr.msrb.gmra.mxu3 %vm1574_vm10, %v1805_v58 }
 0x54c   :  { %v2689_v14 = vpop.eup %2688 }
 0x54d   :  { %v1806_v15 = vpack.c.bf16 %v2689_v14, %v2689_v14  ;;  %v1794_v16 = vsel %vm1574_vm10, %v2689_v14, 0.0 }
 0x54e   :  { %1795 = vadd.xlane.f32.xlu1 %v1794_v16 }
 0x54f   :  { %2519 = vmatmul.msk.bf16.vlgmr.msra.gmra.mxu0 %vm1574_vm10, %v1806_v15 }
 0x551   :  { %v1751_v17 = vpop.xlane.xlu0 %1750 }
 0x552   :  { %v1759_v19 = vsub.f32 %v3168_v30, %v1751_v17 }
 0x554   :  { %v1774_v20 = vmul.f32 1.442695, %v1759_v19 }
 0x556   :  { %2690 = vpow2.f32 %v1774_v20  ;;  %1792 = vadd.xlane.f32.xlu1 %v1791_v21 }
 0x55c   :  { %v2691_v22 = vpop.eup %2690 }
 0x55d   :  { %v1807_v53 = vpack.c.bf16 %v2691_v22, %v2691_v22  ;;  %v1797_v57 = vsel %vm1574_vm10, %v2691_v22, 0.0 }
 0x55e   :  { %1798 = vadd.xlane.f32.xlu0 %v1797_v57 }
 0x55f   :  { %2520 = vmatmul.msk.bf16.vlgmr.msrb.gmra.mxu1 %vm1574_vm10, %v1807_v53 }
 0x5a1   :  { %v1778_v48 = vpop.xlane.xlu0 %1777 }
 0x5aa   :  { %v1784_v41 = vpop.xlane.xlu2 %1783 }
 0x5ab   :  { %2692 = vrcp.f32 %v1784_v41 }
 0x5ac   :  { %2694 = vrcp.f32 %v1778_v48 }
 0x5b1   :  { %v2693_v24 = vpop.eup %2692 }
 0x5b2   :  { %v1823_v23 = vpop.f32.mrf.mxu2  ;;  %v1787_v1 = vpop.xlane.xlu2 %1786 }
 0x5b3   :  { %v2695_v26 = vpop.eup %2694  ;;  %2696 = vrcp.f32 %v1787_v1 }
 0x5b4   :  { %v1968_v28 = vmul.f32 %v2695_v26, %v1823_v23 }
 0x5b5   :  { %v1861_v25 = vpop.f32.mrf.mxu0 }
 0x5b6   :  { %v1970_v63 = vmul.f32 %v2693_v24, %v1861_v25  ;;  %v1979_v33 = vrot.slane %v1968_v28, 4 }
 0x5b8   :  { %v1976_v31 = vrot.slane %v1970_v63, 4  ;;  %v1980_v39 = vsel %vm200_vm8, %v1970_v63, %v1979_v33 }
 0x5b9   :  { %v1790_v29 = vpop.xlane.xlu1 %1789  ;;  %v2697_v34 = vpop.eup %2696  ;;  %v1988_v46 = vperm.slane %v1980_v39, %v2865_v12 }
 0x5ba   :  { %v1825_v30 = vpop.f32.mrf.mxu2  ;;  %v1781_v32 = vpop.xlane.xlu2 %1780  ;;  %v1978_v37 = vsel %vm200_vm8, %v1976_v31, %v1968_v28 }
 0x5bb   :  { %v1842_v3 = vpop.f32.mrf.mxu3  ;;  %2698 = vrcp.f32 %v1781_v32  ;;  %v1984_v42 = vperm.slane %v1978_v37, %v2865_v12  ;;  %v2015_v52 = vrot.slane %v1988_v46, 4 }
 0x5bc   :  { %v1880_v18 = vpop.f32.mrf.mxu1  ;;  %2700 = vrcp.f32 %v1790_v29 }
 0x5bd   :  { %v1863_v35 = vpop.f32.mrf.mxu0  ;;  %v1971_v38 = vmul.f32 %v2697_v34, %v1880_v18  ;;  %v2003_v49 = vrot.slane %v1984_v42, 4 }
 0x5bf   :  { %v1989_v45 = vrot.slane %v1971_v38, 4 }
 0x5c1   :  { %v2699_v40 = vpop.eup %2698  ;;  %v1796_v43 = vpop.xlane.xlu1 %1795 }
 0x5c2   :  { %v1969_v44 = vmul.f32 %v2699_v40, %v1842_v3  ;;  %2702 = vrcp.f32 %v1796_v43  ;;  %v2701_v22 = vpop.eup %2700 }
 0x5c3   :  { %v1844_v59 = vpop.f32.mrf.mxu3 }
 0x5c4   :  { %v1882_v47 = vpop.f32.mrf.mxu1  ;;  %v1991_v55 = vrot.slane %v1969_v44, 4  ;;  %v1990_v62 = vsel %vm200_vm8, %v1989_v45, %v1969_v44 }
 0x5c5   :  { %v1996_v50 = vperm.slane %v1990_v62, %v2865_v12 }
 0x5c6   :  { %v1992_v60 = vsel %vm200_vm8, %v1971_v38, %v1991_v55 }
 0x5c7   :  { %v2000_v51 = vperm.slane %v1992_v60, %v2865_v12  ;;  %v2001_v54 = vrot.slane %v1996_v50, 4  ;;  %v2004_v36 = vsel %vm200_vm8, %v1996_v50, %v2003_v49 }
 0x5c8   :  { %v2012_v56 = vperm.slane %v2004_v36, %v2870_v27  ;;  %v2703_v23 = vpop.eup %2702 }
 0x5c9   :  { %v2002_v61 = vsel %vm200_vm8, %v2001_v54, %v1984_v42  ;;  %v2013_v2 = vrot.slane %v2000_v51, 4  ;;  %v2016_v4 = vsel %vm200_vm8, %v2000_v51, %v2015_v52  ;;  %v1793_v9 = vpop.xlane.xlu1 %1792 }
 0x5ca   :  { %v2008_v0 = vperm.slane %v2002_v61, %v2870_v27  ;;  %v2024_v7 = vperm.slane %v2016_v4, %v2870_v27  ;;  %v2027_v8 = vrot.slane %v2012_v56, 4  ;;  %v1899_v5 = vpop.f32.mrf.mxu2  ;;  %2704 = vrcp.f32 %v1793_v9 }
 0x5cb   :  { %v2014_v6 = vsel %vm200_vm8, %v2013_v2, %v1988_v46  ;;  %v1972_v41 = vmul.f32 %v2701_v22, %v1899_v5 }
 0x5cc   :  { %v2020_v11 = vperm.slane %v2014_v6, %v2870_v27  ;;  %v2025_v13 = vrot.slane %v2008_v0, 4  ;;  %v2028_v58 = vsel %vm200_vm8, 0.0, %v2027_v8  ;;  %v2031_v14 = vrot.slane %v2024_v7, 4  ;;  %v1918_v15 = vpop.f32.mrf.mxu3  ;;  %v1937_v16 = vpop.f32.mrf.mxu0 }
 0x5cd   :  { %v2094_v17 = vrot.slane %v2028_v58, 4  ;;  %v1974_v25 = vmul.f32 %v2703_v23, %v1937_v16  ;;  %v2089_v28 = vsel %vm200_vm8, %v2027_v8, %v2008_v0  ;;  %v2035_v32 = vrot.slane %v1972_v41, 4 }
 0x5ce   :  { %v2029_v19 = vrot.slane %v2020_v11, 4  ;;  %v2032_v20 = vsel %vm200_vm8, 0.0, %v2031_v14  ;;  %v2026_v21 = vsel %vm200_vm8, 0.0, %v2025_v13  ;;  %v2100_v24 = vsel %vm200_vm8, %v2031_v14, %v2020_v11 }
 0x5cf   :  { %v2105_v53 = vrot.slane %v2032_v20, 4  ;;  %v2095_v48 = vsel %vm200_vm8, %v2094_v17, %v2026_v21  ;;  %v2104_v34 = vperm.slane %v2100_v24, %v2865_v12  ;;  %v2093_v35 = vperm.slane %v2089_v28, %v2865_v12 }
 0x5d0   :  { %v2030_v57 = vsel %vm200_vm8, 0.0, %v2029_v19  ;;  %v2099_v1 = vperm.slane %v2095_v48, %v2865_v12  ;;  %v2705_v33 = vpop.eup %2704  ;;  %v2033_v38 = vrot.slane %v1974_v25, 4  ;;  %v2036_v43 = vsel %vm200_vm8, %v1974_v25, %v2035_v32 }
 0x5d1   :  { %v1799_v63 = vpop.xlane.xlu0 %1798  ;;  %v2106_v29 = vsel %vm200_vm8, %v2105_v53, %v2030_v57  ;;  %v1973_v42 = vmul.f32 %v2705_v33, %v1918_v15  ;;  %v2044_v55 = vperm.slane %v2036_v43, %v2865_v12  ;;  %v2125_v2 = vrot.slane %v2104_v34, 4 }
 0x5d2   :  { %v1901_v26 = vpop.f32.mrf.mxu2  ;;  %v2110_v30 = vperm.slane %v2106_v29, %v2865_v12  ;;  %v2111_v31 = vrot.slane %v2099_v1, 4  ;;  %2706 = vrcp.f32 %v1799_v63  ;;  %v2034_v45 = vsel %vm200_vm8, %v2033_v38, %v1972_v41 }
 0x5d3   :  { %v2047_v49 = vrot.slane %v1973_v42, 4  ;;  %v2040_v52 = vperm.slane %v2034_v45, %v2865_v12  ;;  %v2071_v36 = vrot.slane %v2044_v55, 4  ;;  %v2113_v58 = vrot.slane %v2093_v35, 4 }
 0x5d4   :  { %v1920_v3 = vpop.f32.mrf.mxu3  ;;  %v1939_v18 = vpop.f32.mrf.mxu0  ;;  %v2123_v37 = vrot.slane %v2110_v30, 4  ;;  %v2112_v39 = vsel %vm200_vm8, %v2111_v31, %v2093_v35  ;;  %v2126_v17 = vsel %vm200_vm8, %v2110_v30, %v2125_v2 }
 0x5d5   :  { %v3225_v59 = vperm.slane %v2112_v39, %v2870_v27  ;;  %v2059_v4 = vrot.slane %v2040_v52, 4  ;;  %v2114_v48 = vsel %vm200_vm8, %v2099_v1, %v2113_v58  ;;  %v2134_v23 = vperm.slane %v2126_v17, %v2870_v27 }
 0x5d6   :  { %v2124_v40 = vsel %vm200_vm8, %v2123_v37, %v2104_v34  ;;  %v2122_v18 = vperm.slane %v2114_v48, %v2870_v27  ;;  %v2665_v48 = vld [vmem:[%s3372_s4] ss:$0 sm:$0xff] }
 0x5d7   :  { %v3221_v44 = vperm.slane %v2124_v40, %v2870_v27  ;;  %v2139_v33 = vrot.slane %v2134_v23, 4 }
 0x5d8   :  { %v2707_v47 = vpop.eup %2706 }
 0x5d9   :  { %v2135_v46 = vrot.slane %v3221_v44, 4 }
 0x5db   :  { %v3231_v60 = vsel %vm200_vm8, %v2135_v46, %v3225_v59 }
 0x5dc   :  { %v1956_v62 = vpop.f32.mrf.mxu1 }
 0x5dd   :  { %v1975_v50 = vmul.f32 %v2707_v47, %v1956_v62 }
 0x5df   :  { %v2045_v51 = vrot.slane %v1975_v50, 4  ;;  %v2048_v54 = vsel %vm200_vm8, %v1975_v50, %v2047_v49  ;;  %v2140_v49 = vsel %vm200_vm8, %v2139_v33, %v2122_v18 }
 0x5e0   :  { %v2056_v56 = vperm.slane %v2048_v54, %v2865_v12 }
 0x5e1   :  { %v2046_v61 = vsel %vm200_vm8, %v2045_v51, %v1973_v42 }
 0x5e2   :  { %v2052_v0 = vperm.slane %v2046_v61, %v2865_v12  ;;  %v2069_v7 = vrot.slane %v2056_v56, 4  ;;  %v2072_v8 = vsel %vm200_vm8, %v2056_v56, %v2071_v36 }
 0x5e3   :  { %v2080_v5 = vperm.slane %v2072_v8, %v2870_v27 }
 0x5e4   :  { %v2057_v6 = vrot.slane %v2052_v0, 4  ;;  %v2060_v9 = vsel %vm200_vm8, %v2052_v0, %v2059_v4  ;;  %v2070_v11 = vsel %vm200_vm8, %v2069_v7, %v2044_v55  ;;  %v1958_v13 = vpop.f32.mrf.mxu1  ;;  %v2141_v55 = vrot.slane %v2122_v18, 4 }
 0x5e5   :  { %v2068_v14 = vperm.slane %v2060_v9, %v2870_v27  ;;  %v2076_v15 = vperm.slane %v2070_v11, %v2870_v27  ;;  %v2087_v16 = vrot.slane %v2080_v5, 4  ;;  %v2576_v5 = vld [vmem:[%s3373_s3 + $0x8] sm:$0xff] }
 0x5e6   :  { %v2058_v19 = vsel %vm200_vm8, %v2057_v6, %v2040_v52  ;;  %v2142_v61 = vsel %vm200_vm8, %v2134_v23, %v2141_v55  ;;  %2259 = vmatpush.bf16.msra.mxu2 %v2576_v5  ;;  %v2575_v6 = vld [vmem:[%s3373_s3] sm:$0xff] }
 0x5e7   :  { %v2064_v20 = vperm.slane %v2058_v19, %v2870_v27  ;;  %v2083_v21 = vrot.slane %v2068_v14, 4  ;;  %v2085_v22 = vrot.slane %v2076_v15, 4  ;;  %v2088_v53 = vsel %vm200_vm8, 0.0, %v2087_v16 }
 0x5e8   :  { %v2154_v57 = vsel %vm200_vm8, %v2087_v16, %v2076_v15  ;;  %v2159_v41 = vrot.slane %v2088_v53, 4 }
 0x5e9   :  { %v2081_v24 = vrot.slane %v2064_v20, 4  ;;  %v2084_v25 = vsel %vm200_vm8, 0.0, %v2083_v21  ;;  %v2086_v63 = vsel %vm200_vm8, 0.0, %v2085_v22  ;;  %v2158_v26 = vperm.slane %v2154_v57, %v2865_v12 }
 0x5ea   :  { %v2148_v28 = vrot.slane %v2084_v25, 4  ;;  %v2143_v29 = vsel %vm200_vm8, %v2083_v21, %v2064_v20  ;;  %v2160_v30 = vsel %vm200_vm8, %v2159_v41, %v2086_v63  ;;  %2260 = vmatpush.bf16.msra.mxu2 %v2575_v6  ;;  %v2720_v25 = vld [vmem:[%s3367_s0] sm:$0xff] }
 0x5eb   :  { %v2082_v31 = vsel %vm200_vm8, 0.0, %v2081_v24  ;;  %v2147_v32 = vperm.slane %v2143_v29, %v2865_v12  ;;  %v2164_v1 = vperm.slane %v2160_v30, %v2865_v12  ;;  %v2179_v3 = vrot.slane %v2158_v26, 4  ;;  %v2721_v29 = vld [vmem:[%s3367_s0 + $0x8] sm:$0xff] }
 0x5ec   :  { %v2149_v34 = vsel %vm200_vm8, %v2148_v28, %v2082_v31 }
 0x5ed   :  { %v2153_v35 = vperm.slane %v2149_v34, %v2865_v12  ;;  %v2167_v37 = vrot.slane %v2147_v32, 4  ;;  %v2180_v38 = vsel %vm200_vm8, %v2164_v1, %v2179_v3  ;;  %v2177_v39 = vrot.slane %v2164_v1, 4 }
 0x5ee   :  { %v2188_v40 = vperm.slane %v2180_v38, %v2870_v27  ;;  %v2137_v12 = vrot.slane %v3225_v59, 4 }
 0x5ef   :  { %v2168_v42 = vsel %vm200_vm8, %v2153_v35, %v2167_v37  ;;  %v2165_v43 = vrot.slane %v2153_v35, 4  ;;  %v2178_v45 = vsel %vm200_vm8, %v2177_v39, %v2158_v26 }
 0x5f0   :  { %v2176_v46 = vperm.slane %v2168_v42, %v2870_v27  ;;  %v2193_v47 = vrot.slane %v2188_v40, 4  ;;  %v2184_v62 = vperm.slane %v2178_v45, %v2870_v27  ;;  %v2138_v59 = vsel %vm200_vm8, %v3221_v44, %v2137_v12 }
 0x5f1   :  { %v2166_v50 = vsel %vm200_vm8, %v2165_v43, %v2147_v32  ;;  %v2578_v43 = vld [vmem:[%s3377_s9 + $0x8] sm:$0xff] }
 0x5f2   :  { %v2194_v52 = vsel %vm200_vm8, %v2193_v47, %v2176_v46  ;;  %v2195_v51 = vrot.slane %v2176_v46, 4  ;;  %v2172_v54 = vperm.slane %v2166_v50, %v2870_v27  ;;  %v2189_v36 = vrot.slane %v2184_v62, 4  ;;  %2355 = vmatpush.bf16.msra.mxu3 %v2578_v43  ;;  %v2577_v46 = vld [vmem:[%s3377_s9] sm:$0xff] }
 0x5f3   :  { %v2652_v56 = vpack.i.bf16 %v2194_v52, %v2140_v49 }
 0x5f4   :  { %v2196_v2 = vsel %vm200_vm8, %v2188_v40, %v2195_v51  ;;  %v2191_v4 = vrot.slane %v2172_v54, 4  ;;  %v2190_v0 = vsel %vm200_vm8, %v2189_v36, %v2172_v54 }
 0x5f5   :  { %2653 = vrot.lane.b32.xlu2 %v2652_v56, %s2730_s23  ;;  %v2657_v7 = vpack.i.bf16 %v2196_v2, %v2142_v61 }
 0x5f6   :  { %v2192_v8 = vsel %vm200_vm8, %v2184_v62, %v2191_v4  ;;  %2356 = vmatpush.bf16.msra.mxu3 %v2577_v46 }
 0x5f7   :  { %2658 = vrot.lane.b32.xlu1 %v2657_v7, %s2731_s24  ;;  %v2647_v27 = vpack.i.bf16 %v2192_v8, %v2138_v59 }
 0x5f9   :  { %2648 = vrot.lane.b32.xlu0 %v2647_v27, %s2732_s25  ;;  %v2667_v27 = vld [vmem:[%s3375_s8] ss:$0 sm:$0xff] }
 0x64f   :  { %v2654_v9 = vpop.permute.xlu2 %2653 }
 0x650   :  { %v2656_v14 = vunpack.i.h.bf16 %v2654_v9  ;;  %v2655_v15 = vunpack.i.l.bf16 %v2654_v9 }
 0x669   :  { %v2659_v11 = vpop.permute.xlu1 %2658 }
 0x66a   :  { %v2661_v16 = vunpack.i.h.bf16 %v2659_v11  ;;  %v2660_v17 = vunpack.i.l.bf16 %v2659_v11 }
 0x66b   :  { %v2649_v44 = vpop.permute.xlu0 %2648 }
 0x66c   :  { %v2651_v13 = vunpack.i.h.bf16 %v2649_v44  ;;  %v2650_v58 = vunpack.i.l.bf16 %v2649_v44 }
 0x66e   :  { %v2221_v19 = vsel %vm1574_vm10, %v3231_v60, %v2650_v58  ;;  %v2222_v20 = vsel %vm1574_vm10, %v2190_v0, %v2651_v13  ;;  %v2586_v58 = vld [vmem:[%s3379_s11 + $0x38] sm:$0xff] }
 0x66f   :  { %v2224_v21 = vsel %vm2223_vm11, %v2221_v19, %v2655_v15  ;;  %v2225_v22 = vsel %vm2223_vm11, %v2222_v20, %v2656_v14  ;;  %2474 = vmatpush.bf16.msrb.mxu0 %v2586_v58  ;;  %v2585_v14 = vld [vmem:[%s3379_s11 + $0x30] sm:$0xff]  ;;  %v2584_v15 = vld [vmem:[%s3379_s11 + $0x28] sm:$0xff]  ;;  %v2582_v20 = vld [vmem:[%s3379_s11 + $0x18] sm:$0xff] }
 0x670   :  { %v2227_v53 = vsel %vm2226_vm12, %v2224_v21, %v2660_v17  ;;  %v2228_v57 = vsel %vm2226_vm12, %v2225_v22, %v2661_v16  ;;  %v2583_v16 = vld [vmem:[%s3379_s11 + $0x20] sm:$0xff] }
 0x671   :  { %v2229_v41 = vpack.c.bf16 %v2228_v57, %v2227_v53  ;;  %v2668_v17 = vld [vmem:[%s3376_s10] ss:$0 sm:$0xff]  ;;  %v2581_v53 = vld [vmem:[%s3379_s11 + $0x10] sm:$0xff] }
 0x673   :  { %2529 = vmatmul.msk.bf16.vlgmr.msra.gmra.mxu2 %vm49_vm0, %v2229_v41  ;;  %2475 = vmatpush.bf16.msrb.mxu0 %v2585_v14 }
 0x677   :  { %2476 = vmatpush.bf16.msrb.mxu0 %v2584_v15 }
 0x67b   :  { %2477 = vmatpush.bf16.msrb.mxu0 %v2583_v16 }
 0x67f   :  { %2478 = vmatpush.bf16.msrb.mxu0 %v2582_v20 }
 0x683   :  { %2479 = vmatpush.bf16.msrb.mxu0 %v2581_v53 }
 0x6f6   :  { %v2262_v23 = vpop.f32.mrf.mxu2 }
 0x6f7   :  { %v2263_v24 = vadd.f32 %v2665_v48, %v2262_v23 }
 0x6f9   :  { %v3295_v60 = vadd.f32 %v2720_v25, %v2263_v24  ;;  %v2579_v25 = vld [vmem:[%s3379_s11] sm:$0xff] }
 0x6fb   :  { %v2271_v63 = vsel %vm49_vm0, %v3295_v60, 0.0 }
 0x6fc   :  { %2272 = vadd.xlane.f32.xlu0 %v2271_v63 }
 0x6fe   :  { %v2264_v26 = vpop.f32.mrf.mxu2 }
 0x6ff   :  { %v2265_v28 = vadd.f32 %v2665_v48, %v2264_v26  ;;  %v2580_v48 = vld [vmem:[%s3379_s11 + $0x8] sm:$0xff] }
 0x700   :  { %2480 = vmatpush.bf16.msrb.mxu0 %v2580_v48 }
 0x701   :  { %v3302_v30 = vadd.f32 %v2721_v29, %v2265_v28 }
 0x703   :  { %v2274_v31 = vsel %vm49_vm0, %v3302_v30, 0.0 }
 0x704   :  { %2275 = vadd.xlane.f32.xlu2 %v2274_v31  ;;  %2481 = vmatpush.bf16.msrb.mxu0 %v2579_v25 }
 0x76f   :  { %v2273_v32 = vpop.xlane.xlu0 %2272 }
 0x770   :  { %v2277_v1 = vmul.f32 %v2273_v32, %v2811_v10 }
 0x772   :  { %v2279_v3 = vsub.f32 %v3295_v60, %v2277_v1 }
 0x774   :  { %v2281_v18 = vmul.f32 %v2279_v3, %v2279_v3 }
 0x776   :  { %v2283_v33 = vsel %vm49_vm0, %v2281_v18, 0.0 }
 0x777   :  { %v2276_v34 = vpop.xlane.xlu2 %2275  ;;  %2284 = vadd.xlane.f32.xlu1 %v2283_v33 }
 0x778   :  { %v2278_v35 = vmul.f32 %v2276_v34, %v2811_v10 }
 0x77a   :  { %v2280_v37 = vsub.f32 %v3302_v30, %v2278_v35 }
 0x77c   :  { %v2282_v38 = vmul.f32 %v2280_v37, %v2280_v37 }
 0x77e   :  { %v2286_v39 = vsel %vm49_vm0, %v2282_v38, 0.0 }
 0x77f   :  { %2287 = vadd.xlane.f32.xlu0 %v2286_v39 }
 0x7ea   :  { %v2285_v40 = vpop.xlane.xlu1 %2284 }
 0x7eb   :  { %v2289_v42 = vmul.f32 %v2285_v40, %v2811_v10 }
 0x7ed   :  { %v2291_v45 = vadd.f32 1e-05, %v2289_v42 }
 0x7ef   :  { %2708 = vrsqrt.f32 %v2291_v45  ;;  %vm2299_vm14 = vweird.f32 %v2291_v45 }
 0x7f2   :  { %v2288_v47 = vpop.xlane.xlu0 %2287 }
 0x7f3   :  { %v2290_v55 = vmul.f32 %v2288_v47, %v2811_v10  ;;  %v2666_v10 = vld [vmem:[%s3374_s7] ss:$0 sm:$0xff] }
 0x7f5   :  { %v2709_v62 = vpop.eup %2708  ;;  %v2292_v49 = vadd.f32 1e-05, %v2290_v55 }
 0x7f6   :  { %v2294_v12 = vmul.f32 %v2709_v62, %v2291_v45  ;;  %vm2300_vm13 = vweird.f32 %v2709_v62 }
 0x7f7   :  { %2710 = vrsqrt.f32 %v2292_v49  ;;  %vm2301_vm15 = vmor %vm2299_vm14, %vm2300_vm13  ;;  %vm2309_vm2 = vweird.f32 %v2292_v49 }
 0x7f8   :  { %v2295_v50 = vmul.f32 %v2709_v62, %v2294_v12 }
 0x7fa   :  { %v2296_v52 = vmul.f32 0.5, %v2295_v50 }
 0x7fc   :  { %v2297_v51 = vsub.f32 1.5, %v2296_v52 }
 0x7fd   :  { %v2711_v54 = vpop.eup %2710 }
 0x7fe   :  { %v2298_v36 = vmul.f32 %v2709_v62, %v2297_v51  ;;  %v2304_v56 = vmul.f32 %v2711_v54, %v2292_v49  ;;  %vm2310_vm1 = vweird.f32 %v2711_v54 }
 0x7ff   :  { %vm2311_vm3 = vmor %vm2309_vm2, %vm2310_vm1 }
 0x800   :  { %v2305_v61 = vmul.f32 %v2711_v54, %v2304_v56  ;;  %v2302_v2 = vsel %vm2301_vm15, %v2709_v62, %v2298_v36 }
 0x801   :  { %v2313_v7 = vmul.f32 %v2302_v2, %v2279_v3 }
 0x802   :  { %v2306_v4 = vmul.f32 0.5, %v2305_v61 }
 0x803   :  { %v2318_v5 = vmul.f32 %v2666_v10, %v2313_v7 }
 0x804   :  { %v2307_v0 = vsub.f32 1.5, %v2306_v4 }
 0x805   :  { %v2323_v11 = vadd.f32 %v2667_v27, %v2318_v5 }
 0x806   :  { %v2308_v59 = vmul.f32 %v2711_v54, %v2307_v0 }
 0x808   :  { %v2312_v8 = vsel %vm2311_vm3, %v2711_v54, %v2308_v59  ;;  %v2669_v54 = vld [vmem:[%s3378_s12] ss:$0 sm:$0xff] }
 0x809   :  { %v2314_v6 = vmul.f32 %v2312_v8, %v2280_v37 }
 0x80b   :  { %v2319_v9 = vmul.f32 %v2666_v10, %v2314_v6 }
 0x80d   :  { %v2324_v44 = vadd.f32 %v2667_v27, %v2319_v9 }
 0x80f   :  { %v2325_v13 = vpack.c.bf16 %v2324_v44, %v2323_v11 }
 0x811   :  { %2538 = vmatmul.msk.bf16.vlgmr.msra.gmra.mxu3 %vm49_vm0, %v2325_v13 }
 0x894   :  { %v2358_v19 = vpop.f32.mrf.mxu3 }
 0x895   :  { %v2359_v21 = vadd.f32 %v2668_v17, %v2358_v19 }
 0x897   :  { %v2539_v22 = vmul.f32 -1.702, %v2359_v21 }
 0x899   :  { %v2367_v57 = vmul.f32 1.442695, %v2539_v22 }
 0x89b   :  { %2712 = vpow2.f32 %v2367_v57 }
 0x89c   :  { %v2360_v41 = vpop.f32.mrf.mxu3 }
 0x89d   :  { %v2361_v23 = vadd.f32 %v2668_v17, %v2360_v41 }
 0x89f   :  { %v2540_v24 = vmul.f32 -1.702, %v2361_v23 }
 0x8a1   :  { %v2713_v63 = vpop.eup %2712  ;;  %v2369_v26 = vmul.f32 1.442695, %v2540_v24 }
 0x8a2   :  { %v2371_v28 = vadd.f32 1.0, %v2713_v63 }
 0x8a3   :  { %2714 = vpow2.f32 %v2369_v26 }
 0x8a4   :  { %2716 = vrcp.f32 %v2371_v28  ;;  %v2384_v37 = vand.u32 2147483648, %v2371_v28  ;;  %vm2378_vm5 = vweird.f32 %v2371_v28  ;;  %v2382_v38 = vand.u32 2147483647, %v2371_v28 }
 0x8a6   :  { %v2385_v46 = vor.u32 1.1754944e-38, %v2384_v37  ;;  %vm2383_vm8 = vcmp.eq.f32.partialorder %v2382_v38, 8.507059e+37 }
 0x8a9   :  { %v2715_v29 = vpop.eup %2714 }
 0x8aa   :  { %v2717_v31 = vpop.eup %2716  ;;  %v2372_v32 = vadd.f32 1.0, %v2715_v29 }
 0x8ab   :  { %v2374_v1 = vmul.f32 %v2717_v31, %v2371_v28  ;;  %vm2379_vm4 = vweird.f32 %v2717_v31 }
 0x8ac   :  { %2718 = vrcp.f32 %v2372_v32  ;;  %vm2380_vm6 = vmor %vm2378_vm5, %vm2379_vm4  ;;  %v2399_v40 = vand.u32 2147483648, %v2372_v32  ;;  %v2397_v45 = vand.u32 2147483647, %v2372_v32  ;;  %vm2393_vm9 = vweird.f32 %v2372_v32 }
 0x8ad   :  { %v2375_v3 = vsub.f32 1.0, %v2374_v1 }
 0x8ae   :  { %v2400_v62 = vor.u32 1.1754944e-38, %v2399_v40  ;;  %vm2398_vm11 = vcmp.eq.f32.partialorder %v2397_v45, 8.507059e+37 }
 0x8af   :  { %v2376_v18 = vmul.f32 %v2717_v31, %v2375_v3 }
 0x8b1   :  { %v2377_v34 = vadd.f32 %v2717_v31, %v2376_v18 }
 0x8b2   :  { %v2719_v33 = vpop.eup %2718 }
 0x8b3   :  { %v2389_v35 = vmul.f32 %v2719_v33, %v2372_v32  ;;  %v2381_v42 = vsel %vm2380_vm6, %v2717_v31, %v2377_v34  ;;  %vm2394_vm7 = vweird.f32 %v2719_v33 }
 0x8b4   :  { %v2386_v55 = vsel %vm2383_vm8, %v2385_v46, %v2381_v42  ;;  %vm2395_vm10 = vmor %vm2393_vm9, %vm2394_vm7 }
 0x8b5   :  { %v2390_v39 = vsub.f32 1.0, %v2389_v35  ;;  %v2403_v50 = vmul.f32 %v2386_v55, %v2359_v21 }
 0x8b7   :  { %v2391_v43 = vmul.f32 %v2719_v33, %v2390_v39 }
 0x8b9   :  { %v2392_v47 = vadd.f32 %v2719_v33, %v2391_v43 }
 0x8bb   :  { %v2396_v49 = vsel %vm2395_vm10, %v2719_v33, %v2392_v47 }
 0x8bc   :  { %v2401_v12 = vsel %vm2398_vm11, %v2400_v62, %v2396_v49 }
 0x8bd   :  { %v2404_v52 = vmul.f32 %v2401_v12, %v2361_v23 }
 0x8bf   :  { %v2405_v51 = vpack.c.bf16 %v2404_v52, %v2403_v50 }
 0x8c1   :  { %2482 = vmatmul.bf16.vlgmr.msrb.gmra.mxu0 %v2405_v51 }
 0x93e   :  { %v2483_v36 = vpop.f32.mrf.mxu0 }
 0x93f   :  { %v2484_v56 = vadd.f32 %v2669_v54, %v2483_v36 }
 0x941   :  { %v2488_v61 = vadd.f32 %v2484_v56, %v3295_v60 }
 0x943   :  { %2490 = vst.msk [vmem:[%s3380_s13] sm:$0xff] %vm49_vm0, %v2488_v61 }
 0x946   :  { %v2485_v2 = vpop.f32.mrf.mxu0 }
 0x947   :  { %v2486_v4 = vadd.f32 %v2669_v54, %v2485_v2 }
 0x949   :  { %v2489_v0 = vadd.f32 %v2486_v4, %v3302_v30 }
 0x94b   :  { %2491 = vst.msk [vmem:[%s3380_s13 + $0x8] sm:$0xff] %vm49_vm0, %v2489_v0 }

// kernel: mul.9
= control target key start
LH: loop header
LB: loop body
LE: loop exit
PB: predicated region body
PF: predicated region fallthrough
CT: control target
= control target key end

     0   :  { %3 = vsyncpa [#allocation1], 0  ;;  %s50_s11 = smov [#allocation0]   ;;  %s75_s0 = inlined_call_operand.hbm [shape: f32[1,96], index: 0, kind: input, shape index: {}]   ;;  %s76_s1 = inlined_call_operand.vmem [shape: f32[1,96], index: 1, kind: input, shape index: {}]   ;;  %s77_s2 = inlined_call_operand.vmem [shape: f32[1,96], index: 2, kind: output, shape index: {}]  }
   0x1   :  { %s7_s0 = sshll.u32 %s75_s0, 4  ;;  %s9_s12 = sshll.u32 %s50_s11, 4  ;;  %s8_s0 = int_to_ptr.hbm [resolvable:$true] %s7_s0  ;;  %s10_s12 = int_to_ptr.vmem [resolvable:$true] %s9_s12 }
   0x2   :  { %12 = dma.hbm_to_vmem [thread:$0]  %s8_s0, 16, %s10_s12, [#allocation1]  }
   0x3   :  { %48 = dma.done.wait [#allocation1], 16  }
   0x4   :  { %49 = vsyncadd [#allocation1], 4294967280  ;;  %v15_v0 = vld [vmem:[#allocation0] sm:$0x1] }
   0x5   :  { %v16_v1 = vld [vmem:[%s76_s1] sm:$0x1] }
   0x6   :  { %v19_v2 = vmul.f32 %v16_v1, %v15_v0 }
   0x8   :  { %21 = vst [vmem:[%s77_s2] sm:$0x1] %v19_v2 }
   0x9   :  { %22 = vsyncpa [#allocation1], 1 }

// kernel: _residual_attention_block_impl.1
= control target key start
LH: loop header
LB: loop body
LE: loop exit
PB: predicated region body
PF: predicated region fallthrough
CT: control target
= control target key end

     0   :  { %vm49_vm0 = vcmask 261120   ;;  %v2722_v4 = vmov 32.0   ;;  %s2724_s21 = smov 120   ;;  %vm200_vm8 = vcmask 1047556   ;;  %s2729_s22 = smov 64   ;;  %vm1578_vm9 = vcmask 1043456   ;;  %s3367_s0 = inlined_call_operand.vmem [shape: f32[2,8,32], index: 0, kind: input, shape index: {}]   ;;  %s3368_s5 = inlined_call_operand.vmem [shape: f32[1,32], index: 5, kind: input, shape index: {}]   ;;  %s3369_s6 = inlined_call_operand.vmem [shape: f32[1,32], index: 6, kind: input, shape index: {}]   ;;  %s3370_s2 = inlined_call_operand.vmem [shape: f32[1,96], index: 2, kind: input, shape index: {}]   ;;  %s3371_s1 = inlined_call_operand.vmem [shape: bf16[32,96], index: 1, kind: input, shape index: {}]   ;;  %s3372_s4 = inlined_call_operand.vmem [shape: f32[1,32], index: 4, kind: input, shape index: {}]   ;;  %s3373_s3 = inlined_call_operand.vmem [shape: bf16[32,32], index: 3, kind: input, shape index: {}]   ;;  %s3374_s7 = inlined_call_operand.vmem [shape: f32[1,32], index: 7, kind: input, shape index: {}]   ;;  %s3375_s8 = inlined_call_operand.vmem [shape: f32[1,32], index: 8, kind: input, shape index: {}]   ;;  %s3376_s10 = inlined_call_operand.vmem [shape: f32[1,128], index: 10, kind: input, shape index: {}]   ;;  %s3377_s9 = inlined_call_operand.vmem [shape: bf16[32,128], index: 9, kind: input, shape index: {}]   ;;  %s3378_s12 = inlined_call_operand.vmem [shape: f32[1,32], index: 12, kind: input, shape index: {}]   ;;  %s3379_s11 = inlined_call_operand.vmem [shape: bf16[128,32], index: 11, kind: input, shape index: {}]   ;;  %s3380_s13 = inlined_call_operand.vmem [shape: f32[2,8,32], index: 13, kind: output, shape index: {}]  }
   0x1   :  { %v45_v0 = vld [vmem:[%s3367_s0] sm:$0xff]  ;;  %v46_v2 = vld [vmem:[%s3367_s0 + $0x8] sm:$0xff]  ;;  %2670 = vrcp.f32 %v2722_v4  ;;  %vm1574_vm10 = vcmask 64512   ;;  %s2730_s23 = smov 16   ;;  %s2731_s24 = smov 24   ;;  %vm2223_vm11 = vcmask 130048  }
   0x2   :  { %v50_v1 = vsel %vm49_vm0, %v45_v0, 0.0  ;;  %v53_v3 = vsel %vm49_vm0, %v46_v2, 0.0  ;;  %v2574_v21 = vld [vmem:[%s3371_s1 + $0x8] sm:$0xff]  ;;  %v2573_v23 = vld [vmem:[%s3371_s1] sm:$0xff]  ;;  %s2732_s25 = smov 8   ;;  %vm2226_vm12 = vcmask 195584  }
   0x3   :  { %51 = vadd.xlane.f32.xlu0 %v50_v1  ;;  %141 = vmatpush.bf16.msra.mxu0 %v2574_v21  ;;  %v2662_v42 = vld [vmem:[%s3368_s5] ss:$0 sm:$0xff]  ;;  %s2723_s5 = smov 104  }
   0x4   :  { %v2663_v47 = vld [vmem:[%s3369_s6] ss:$0 sm:$0xff]  ;;  %s2725_s6 = smov 96  }
   0x5   :  { %v2664_v52 = vld [vmem:[%s3370_s2] ss:$0 sm:$0xff]  ;;  %s2726_s2 = smov 112  }
   0x7   :  { %v2671_v5 = vpop.eup %2670  ;;  %142 = vmatpush.bf16.msra.mxu0 %v2573_v23 }
   0x8   :  { %v57_v6 = vmul.f32 32.0, %v2671_v5  ;;  %vm61_vm1 = vweird.f32 %v2671_v5 }
   0xa   :  { %v58_v7 = vsub.f32 1.0, %v57_v6  ;;  %v2727_v6 = vmov 1983009808  }
   0xb   :  { %54 = vadd.xlane.f32.xlu0 %v53_v3 }
   0xc   :  { %v59_v8 = vmul.f32 %v2671_v5, %v58_v7  ;;  %v191_v7 = vunpack.c.l.s4 %v2727_v6 }
   0xe   :  { %v60_v9 = vadd.f32 %v2671_v5, %v59_v8 }
  0x10   :  { %v2811_v10 = vsel %vm61_vm1, %v2671_v5, %v60_v9 }
  0x76   :  { %v52_v11 = vpop.xlane.xlu0 %51 }
  0x77   :  { %v63_v12 = vmul.f32 %v2811_v10, %v52_v11 }
  0x79   :  { %v65_v13 = vsub.f32 %v45_v0, %v63_v12  ;;  %v2865_v12 = vunpack.c.0.s8 %v191_v7 }
  0x7b   :  { %v67_v14 = vmul.f32 %v65_v13, %v65_v13 }
  0x7d   :  { %v69_v15 = vsel %vm49_vm0, %v67_v14, 0.0 }
  0x7e   :  { %70 = vadd.xlane.f32.xlu1 %v69_v15  ;;  %v55_v16 = vpop.xlane.xlu0 %54  ;;  %v2728_v15 = vmov 1934713408  }
  0x7f   :  { %v64_v17 = vmul.f32 %v2811_v10, %v55_v16  ;;  %v205_v16 = vunpack.c.l.s4 %v2728_v15 }
  0x81   :  { %v66_v18 = vsub.f32 %v46_v2, %v64_v17 }
  0x83   :  { %v68_v19 = vmul.f32 %v66_v18, %v66_v18 }
  0x85   :  { %v72_v20 = vsel %vm49_vm0, %v68_v19, 0.0 }
  0x86   :  { %73 = vadd.xlane.f32.xlu1 %v72_v20 }
  0xf1   :  { %v71_v22 = vpop.xlane.xlu1 %70 }
  0xf2   :  { %v75_v24 = vmul.f32 %v71_v22, %v2811_v10 }
  0xf4   :  { %v77_v25 = vadd.f32 1e-05, %v75_v24 }
  0xf6   :  { %2672 = vrsqrt.f32 %v77_v25  ;;  %vm85_vm3 = vweird.f32 %v77_v25 }
  0xf9   :  { %v74_v26 = vpop.xlane.xlu1 %73 }
  0xfa   :  { %v76_v27 = vmul.f32 %v74_v26, %v2811_v10 }
  0xfc   :  { %v2673_v28 = vpop.eup %2672  ;;  %v78_v29 = vadd.f32 1e-05, %v76_v27  ;;  %v2870_v27 = vunpack.c.0.s8 %v205_v16 }
  0xfd   :  { %v80_v30 = vmul.f32 %v2673_v28, %v77_v25  ;;  %vm86_vm2 = vweird.f32 %v2673_v28 }
  0xfe   :  { %2674 = vrsqrt.f32 %v78_v29  ;;  %vm87_vm4 = vmor %vm85_vm3, %vm86_vm2  ;;  %vm95_vm6 = vweird.f32 %v78_v29 }
  0xff   :  { %v81_v31 = vmul.f32 %v2673_v28, %v80_v30 }
 0x101   :  { %v82_v32 = vmul.f32 0.5, %v81_v31 }
 0x103   :  { %v83_v33 = vsub.f32 1.5, %v82_v32 }
 0x104   :  { %v2675_v34 = vpop.eup %2674 }
 0x105   :  { %v84_v35 = vmul.f32 %v2673_v28, %v83_v33  ;;  %v90_v36 = vmul.f32 %v2675_v34, %v78_v29  ;;  %vm96_vm5 = vweird.f32 %v2675_v34 }
 0x106   :  { %vm97_vm7 = vmor %vm95_vm6, %vm96_vm5 }
 0x107   :  { %v91_v37 = vmul.f32 %v2675_v34, %v90_v36  ;;  %v88_v38 = vsel %vm87_vm4, %v2673_v28, %v84_v35 }
 0x108   :  { %v99_v41 = vmul.f32 %v88_v38, %v65_v13 }
 0x109   :  { %v92_v39 = vmul.f32 0.5, %v91_v37 }
 0x10a   :  { %v104_v46 = vmul.f32 %v2662_v42, %v99_v41 }
 0x10b   :  { %v93_v40 = vsub.f32 1.5, %v92_v39 }
 0x10c   :  { %v109_v49 = vadd.f32 %v2663_v47, %v104_v46 }
 0x10d   :  { %v94_v43 = vmul.f32 %v2675_v34, %v93_v40 }
 0x10f   :  { %v98_v44 = vsel %vm97_vm7, %v2675_v34, %v94_v43 }
 0x110   :  { %v100_v45 = vmul.f32 %v98_v44, %v66_v18 }
 0x112   :  { %v105_v48 = vmul.f32 %v2662_v42, %v100_v45 }
 0x114   :  { %v110_v50 = vadd.f32 %v2663_v47, %v105_v48 }
 0x116   :  { %v111_v51 = vpack.c.bf16 %v110_v50, %v109_v49 }
 0x118   :  { %2504 = vmatmul.msk.bf16.vlgmr.msra.gmra.mxu0 %vm49_vm0, %v111_v51 }
 0x195   :  { %v144_v53 = vpop.f32.mrf.mxu0 }
 0x196   :  { %v145_v54 = vadd.f32 %v2664_v52, %v144_v53 }
 0x198   :  { %v2835_v55 = vpack.c.bf16 %v145_v54, %v145_v54 }
 0x19a   :  { %161 = vrot.lane.b32.xlu0 %v2835_v55, %s2723_s5  ;;  %153 = vrot.lane.b32.xlu2 %v2835_v55, %s2724_s21 }
 0x19d   :  { %v146_v56 = vpop.f32.mrf.mxu0 }
 0x19e   :  { %v147_v57 = vadd.f32 %v2664_v52, %v146_v56 }
 0x1a0   :  { %v2839_v58 = vpack.c.bf16 %v147_v57, %v147_v57 }
 0x1a2   :  { %155 = vrot.lane.b32.xlu1 %v2839_v58, %s2724_s21  ;;  %396 = vrot.lane.b32.xlu0 %v2839_v58, %s2725_s6 }
 0x1a3   :  { %157 = vrot.lane.b32.xlu2 %v2835_v55, %s2726_s2 }
 0x1ab   :  { %394 = vrot.lane.b32.xlu2 %v2835_v55, %s2725_s6 }
 0x1b3   :  { %159 = vrot.lane.b32.xlu2 %v2839_v58, %s2726_s2 }
 0x1bb   :  { %163 = vrot.lane.b32.xlu2 %v2839_v58, %s2723_s5 }
 0x1f4   :  { %v2847_v59 = vpop.permute.xlu2 %153 }
 0x1f5   :  { %398 = vrot.lane.b32.xlu0 %v2847_v59, %s2725_s6 }
 0x1fd   :  { %v2850_v60 = vpop.permute.xlu2 %157 }
 0x1fe   :  { %402 = vrot.lane.b32.xlu2 %v2850_v60, %s2725_s6 }
 0x205   :  { %v395_v61 = vpop.permute.xlu2 %394 }
 0x206   :  { %v413_v8 = vshrl.u32 %v395_v61, 16 }
 0x20c   :  { %v2853_v62 = vpop.permute.xlu0 %161 }
 0x20d   :  { %v2855_v63 = vpop.permute.xlu2 %159  ;;  %406 = vrot.lane.b32.xlu1 %v2853_v62, %s2725_s6 }
 0x214   :  { %v2858_v0 = vpop.permute.xlu1 %155  ;;  %v397_v2 = vpop.permute.xlu0 %396 }
 0x215   :  { %v2860_v1 = vpop.permute.xlu2 %163  ;;  %400 = vrot.lane.b32.xlu2 %v2858_v0, %s2725_s6  ;;  %404 = vrot.lane.b32.xlu1 %v2855_v63, %s2725_s6  ;;  %v425_v23 = vshrl.u32 %v397_v2, 16 }
 0x216   :  { %408 = vrot.lane.b32.xlu0 %v2860_v1, %s2725_s6 }
 0x258   :  { %v403_v4 = vpop.permute.xlu2 %402 }
 0x259   :  { %v419_v19 = vshrl.u32 %v403_v4, 16 }
 0x267   :  { %v399_v3 = vpop.permute.xlu0 %398 }
 0x268   :  { %v414_v5 = vshrl.u32 %v399_v3, 16  ;;  %v412_v9 = vpack.i.b16 %v399_v3, %v395_v61 }
 0x26a   :  { %v415_v11 = vpack.i.b16 %v414_v5, %v413_v8  ;;  %v438_v14 = vperm.slane %v412_v9, %v2865_v12 }
 0x26c   :  { %v464_v17 = vperm.slane %v415_v11, %v2865_v12  ;;  %v446_v24 = vrot.slane %v438_v14, 4 }
 0x26e   :  { %v472_v28 = vrot.slane %v464_v17, 4 }
 0x26f   :  { %v401_v13 = vpop.permute.xlu2 %400 }
 0x270   :  { %v426_v20 = vshrl.u32 %v401_v13, 16  ;;  %v424_v29 = vpack.i.b16 %v401_v13, %v397_v2 }
 0x272   :  { %v427_v30 = vpack.i.b16 %v426_v20, %v425_v23  ;;  %v490_v38 = vperm.slane %v424_v29, %v2865_v12 }
 0x274   :  { %v516_v41 = vperm.slane %v427_v30, %v2865_v12  ;;  %v498_v56 = vrot.slane %v490_v38, 4 }
 0x276   :  { %v524_v57 = vrot.slane %v516_v41, 4 }
 0x27f   :  { %v407_v18 = vpop.permute.xlu1 %406 }
 0x280   :  { %v418_v21 = vpack.i.b16 %v407_v18, %v403_v4  ;;  %v420_v22 = vshrl.u32 %v407_v18, 16 }
 0x282   :  { %v421_v25 = vpack.i.b16 %v420_v22, %v419_v19  ;;  %v443_v26 = vperm.slane %v418_v21, %v2865_v12 }
 0x284   :  { %v444_v31 = vrot.slane %v443_v26, 4  ;;  %v469_v32 = vperm.slane %v421_v25, %v2865_v12  ;;  %v447_v33 = vsel %vm200_vm8, %v443_v26, %v446_v24 }
 0x285   :  { %v455_v34 = vperm.slane %v447_v33, %v2870_v27 }
 0x286   :  { %v470_v35 = vrot.slane %v469_v32, 4  ;;  %v473_v36 = vsel %vm200_vm8, %v469_v32, %v472_v28  ;;  %v445_v37 = vsel %vm200_vm8, %v444_v31, %v438_v14 }
 0x287   :  { %v405_v39 = vpop.permute.xlu1 %404  ;;  %v481_v40 = vperm.slane %v473_v36, %v2870_v27  ;;  %v458_v45 = vrot.slane %v455_v34, 4  ;;  %v451_v48 = vperm.slane %v445_v37, %v2870_v27 }
 0x288   :  { %v431_v42 = vshrl.u32 %v405_v39, 16  ;;  %v409_v43 = vpop.permute.xlu0 %408  ;;  %v471_v44 = vsel %vm200_vm8, %v470_v35, %v464_v17 }
 0x289   :  { %v430_v46 = vpack.i.b16 %v409_v43, %v405_v39  ;;  %v432_v47 = vshrl.u32 %v409_v43, 16  ;;  %2599 = vxpose.binary.xlu2.c.b16.start.end [1/2] (short) (narrow) %v481_v40, %v455_v34, 16  ;;  %v477_v49 = vperm.slane %v471_v44, %v2870_v27  ;;  %v484_v50 = vrot.slane %v481_v40, 4 }
 0x28a   :  { %v459_v53 = vsel %vm200_vm8, 0, %v458_v45  ;;  %v456_v8 = vrot.slane %v451_v48, 4 }
 0x28b   :  { %v433_v51 = vpack.i.b16 %v432_v47, %v431_v42  ;;  %v495_v52 = vperm.slane %v430_v46, %v2865_v12  ;;  %2602 = vxpose.binary.xlu1.c.b16.start.end [1/2] (short) (narrow) %v477_v49, %v451_v48, 16  ;;  %v485_v54 = vsel %vm200_vm8, 0, %v484_v50  ;;  %v482_v9 = vrot.slane %v477_v49, 4 }
 0x28c   :  { %2605 = vxpose.binary.xlu0.c.b16.start.end [1/2] (short) (narrow) %v485_v54, %v459_v53, 16  ;;  %v457_v16 = vsel %vm200_vm8, 0, %v456_v8 }
 0x28d   :  { %v521_v61 = vperm.slane %v433_v51, %v2865_v12  ;;  %v499_v2 = vsel %vm200_vm8, %v495_v52, %v498_v56  ;;  %v496_v11 = vrot.slane %v495_v52, 4  ;;  %v483_v17 = vsel %vm200_vm8, 0, %v482_v9 }
 0x28e   :  { %v507_v4 = vperm.slane %v499_v2, %v2870_v27 }
 0x28f   :  { %v525_v3 = vsel %vm200_vm8, %v521_v61, %v524_v57  ;;  %v522_v13 = vrot.slane %v521_v61, 4  ;;  %v497_v18 = vsel %vm200_vm8, %v496_v11, %v490_v38 }
 0x290   :  { %v533_v5 = vperm.slane %v525_v3, %v2870_v27  ;;  %v510_v6 = vrot.slane %v507_v4, 4  ;;  %v503_v20 = vperm.slane %v497_v18, %v2870_v27 }
 0x291   :  { %v523_v19 = vsel %vm200_vm8, %v522_v13, %v516_v41 }
 0x292   :  { %v536_v7 = vrot.slane %v533_v5, 4  ;;  %v511_v14 = vsel %vm200_vm8, 0, %v510_v6  ;;  %v529_v21 = vperm.slane %v523_v19, %v2870_v27  ;;  %v508_v22 = vrot.slane %v503_v20, 4 }
 0x294   :  { %v537_v15 = vsel %vm200_vm8, 0, %v536_v7  ;;  %v534_v23 = vrot.slane %v529_v21, 4  ;;  %v509_v24 = vsel %vm200_vm8, 0, %v508_v22 }
 0x296   :  { %v535_v25 = vsel %vm200_vm8, 0, %v534_v23 }
 0x299   :  { %2611 = vxpose.binary.xlu2.c.b16.start.end [1/2] (short) (narrow) %v533_v5, %v507_v4, 16 }
 0x29b   :  { %2617 = vxpose.binary.xlu1.c.b16.start.end [1/2] (short) (narrow) %v537_v15, %v511_v14, 16 }
 0x29c   :  { %2608 = vxpose.binary.xlu0.c.b16.start.end [1/2] (short) (narrow) %v483_v17, %v457_v16, 16 }
 0x2a9   :  { %2620 = vxpose.binary.xlu2.c.b16.start.end [1/2] (short) (narrow) %v535_v25, %v509_v24, 16 }
 0x2ac   :  { %2614 = vxpose.binary.xlu0.c.b16.start.end [1/2] (short) (narrow) %v529_v21, %v503_v20, 16 }
 0x32a   :  { %v2600_v26 = vpop.trf.xlu2 }
 0x32b   :  { %v794_v32 = vrot.slane %v2600_v26, 4 }
 0x332   :  { %v2601_v28 = vpop.trf.xlu2 }
 0x333   :  { %v822_v38 = vrot.slane %v2601_v28, 4 }
 0x337   :  { %v2603_v29 = vpop.trf.xlu1 }
 0x338   :  { %v2606_v30 = vpop.trf.xlu0  ;;  %v795_v35 = vsel %vm200_vm8, %v794_v32, %v2603_v29 }
 0x339   :  { %v799_v37 = vperm.slane %v795_v35, %v2865_v12  ;;  %v800_v39 = vrot.slane %v2606_v30, 4 }
 0x33a   :  { %v2612_v31 = vpop.trf.xlu2 }
 0x33b   :  { %v808_v41 = vrot.slane %v799_v37, 4  ;;  %v850_v11 = vrot.slane %v2612_v31, 4 }
 0x33f   :  { %v2604_v33 = vpop.trf.xlu1 }
 0x340   :  { %v2607_v34 = vpop.trf.xlu0  ;;  %v823_v43 = vsel %vm200_vm8, %v822_v38, %v2604_v33 }
 0x341   :  { %v827_v47 = vperm.slane %v823_v43, %v2865_v12  ;;  %v828_v51 = vrot.slane %v2607_v34, 4 }
 0x342   :  { %v2902_v36 = vpop.trf.xlu2 }
 0x343   :  { %v836_v54 = vrot.slane %v827_v47, 4 }
 0x347   :  { %v2618_v40 = vpop.trf.xlu1 }
 0x348   :  { %v2609_v42 = vpop.trf.xlu0  ;;  %v856_v50 = vrot.slane %v2618_v40, 4 }
 0x349   :  { %v801_v44 = vsel %vm200_vm8, %v800_v39, %v2609_v42  ;;  %v878_v42 = vrot.slane %v2902_v36, 4 }
 0x34a   :  { %v805_v45 = vperm.slane %v801_v44, %v2865_v12  ;;  %v2621_v46 = vpop.trf.xlu2 }
 0x34b   :  { %v857_v61 = vsel %vm200_vm8, %v856_v50, %v2621_v46 }
 0x34c   :  { %v806_v48 = vrot.slane %v805_v45, 4  ;;  %v809_v49 = vsel %vm200_vm8, %v805_v45, %v808_v41  ;;  %v861_v8 = vperm.slane %v857_v61, %v2865_v12 }
 0x34d   :  { %v817_v53 = vperm.slane %v809_v49, %v2870_v27 }
 0x34e   :  { %v807_v52 = vsel %vm200_vm8, %v806_v48, %v799_v37  ;;  %v862_v22 = vrot.slane %v861_v8, 4 }
 0x34f   :  { %v2619_v2 = vpop.trf.xlu1  ;;  %v2915_v3 = vperm.slane %v807_v52, %v2870_v27  ;;  %v820_v5 = vrot.slane %v817_v53, 4  ;;  %v926_v16 = vshrl.u32 %v817_v53, 16 }
 0x350   :  { %v2610_v56 = vpop.trf.xlu0  ;;  %v884_v9 = vrot.slane %v2619_v2, 4 }
 0x351   :  { %v829_v57 = vsel %vm200_vm8, %v828_v51, %v2610_v56  ;;  %v818_v17 = vrot.slane %v2915_v3, 4  ;;  %v821_v20 = vsel %vm200_vm8, 0, %v820_v5 }
 0x352   :  { %v833_v4 = vperm.slane %v829_v57, %v2865_v12  ;;  %v2622_v14 = vpop.trf.xlu2  ;;  %v934_v32 = vshrl.u32 %v821_v20, 16 }
 0x353   :  { %v885_v25 = vsel %vm200_vm8, %v884_v9, %v2622_v14  ;;  %v819_v34 = vsel %vm200_vm8, 0, %v818_v17 }
 0x354   :  { %v834_v6 = vrot.slane %v833_v4, 4  ;;  %v837_v7 = vsel %vm200_vm8, %v833_v4, %v836_v54  ;;  %v889_v35 = vperm.slane %v885_v25, %v2865_v12  ;;  %v918_v43 = vshrl.u32 %v819_v34, 16 }
 0x355   :  { %v845_v13 = vperm.slane %v837_v7, %v2870_v27 }
 0x356   :  { %v835_v15 = vsel %vm200_vm8, %v834_v6, %v827_v47  ;;  %v890_v49 = vrot.slane %v889_v35, 4 }
 0x357   :  { %v841_v18 = vperm.slane %v835_v15, %v2870_v27  ;;  %v927_v19 = vshrl.u32 %v845_v13, 16  ;;  %v848_v21 = vrot.slane %v845_v13, 4  ;;  %v924_v24 = vpack.i.b16 %v845_v13, %v817_v53 }
 0x358   :  { %v2615_v23 = vpop.trf.xlu0  ;;  %v910_v13 = vshrl.u32 %v2915_v3, 16 }
 0x359   :  { %v851_v26 = vsel %vm200_vm8, %v850_v11, %v2615_v23  ;;  %v928_v28 = vpack.i.b16 %v927_v19, %v926_v16  ;;  %v849_v29 = vsel %vm200_vm8, 0, %v848_v21  ;;  %v846_v30 = vrot.slane %v841_v18, 4 }
 0x35a   :  { %v855_v31 = vperm.slane %v851_v26, %v2865_v12  ;;  %v935_v33 = vshrl.u32 %v849_v29, 16  ;;  %v932_v40 = vpack.i.b16 %v849_v29, %v821_v20  ;;  %v911_v7 = vshrl.u32 %v841_v18, 16 }
 0x35b   :  { %2623 = vxpose.binary.xlu2.c.b16.start.end [1/2] (short) (narrow) %v928_v28, %v924_v24, 16  ;;  %v847_v37 = vsel %vm200_vm8, 0, %v846_v30  ;;  %v908_v16 = vpack.i.b16 %v841_v18, %v2915_v3 }
 0x35c   :  { %v863_v38 = vsel %vm200_vm8, %v862_v22, %v855_v31  ;;  %v864_v39 = vrot.slane %v855_v31, 4  ;;  %v936_v41 = vpack.i.b16 %v935_v33, %v934_v32  ;;  %v919_v44 = vshrl.u32 %v847_v37, 16 }
 0x35d   :  { %v869_v46 = vperm.slane %v863_v38, %v2870_v27  ;;  %v916_v47 = vpack.i.b16 %v847_v37, %v819_v34  ;;  %v912_v19 = vpack.i.b16 %v911_v7, %v910_v13  ;;  %v167_v33 = vpack.i.b16 %v2847_v59, %v2835_v55 }
 0x35e   :  { %v865_v45 = vsel %vm200_vm8, %v861_v8, %v864_v39  ;;  %2626 = vxpose.binary.xlu0.c.b16.start.end [1/2] (short) (narrow) %v936_v41, %v932_v40, 16  ;;  %v920_v48 = vpack.i.b16 %v919_v44, %v918_v43  ;;  %v169_v34 = vshrl.u32 %v2847_v59, 16  ;;  %v168_v37 = vshrl.u32 %v2835_v55, 16 }
 0x35f   :  { %v873_v51 = vperm.slane %v865_v45, %v2870_v27  ;;  %v874_v54 = vrot.slane %v869_v46, 4  ;;  %v942_v32 = vshrl.u32 %v869_v46, 16  ;;  %v175_v38 = vshrl.u32 %v2853_v62, 16 }
 0x360   :  { %v2616_v50 = vpop.trf.xlu0  ;;  %2632 = vxpose.binary.xlu1.c.b16.start.end [1/2] (short) (narrow) %v920_v48, %v916_v47, 16  ;;  %v193_v39 = vperm.slane %v167_v33, %v2865_v12  ;;  %v170_v40 = vpack.i.b16 %v169_v34, %v168_v37  ;;  %v174_v41 = vshrl.u32 %v2850_v60, 16  ;;  %v187_v7 = vshrl.u32 %v2860_v1, 16 }
 0x361   :  { %v879_v52 = vsel %vm200_vm8, %v878_v42, %v2616_v50  ;;  %v876_v61 = vrot.slane %v873_v51, 4  ;;  %v875_v5 = vsel %vm200_vm8, 0, %v874_v54  ;;  %v958_v28 = vshrl.u32 %v873_v51, 16 }
 0x362   :  { %v883_v53 = vperm.slane %v879_v52, %v2865_v12  ;;  %v950_v14 = vshrl.u32 %v875_v5, 16  ;;  %v176_v43 = vpack.i.b16 %v175_v38, %v174_v41  ;;  %v202_v44 = vrot.slane %v193_v39, 4 }
 0x363   :  { %v877_v9 = vsel %vm200_vm8, 0, %v876_v61  ;;  %v220_v45 = vperm.slane %v170_v40, %v2865_v12  ;;  %v181_v52 = vshrl.u32 %v2858_v0, 16 }
 0x364   :  { %v891_v36 = vsel %vm200_vm8, %v890_v49, %v883_v53  ;;  %v892_v56 = vrot.slane %v883_v53, 4  ;;  %v966_v21 = vshrl.u32 %v877_v9, 16 }
 0x365   :  { %v897_v57 = vperm.slane %v891_v36, %v2870_v27  ;;  %v228_v48 = vrot.slane %v220_v45, 4 }
 0x366   :  { %v893_v2 = vsel %vm200_vm8, %v889_v35, %v892_v56  ;;  %v173_v35 = vpack.i.b16 %v2853_v62, %v2850_v60  ;;  %v180_v56 = vshrl.u32 %v2839_v58, 16 }
 0x367   :  { %v901_v4 = vperm.slane %v893_v2, %v2870_v27  ;;  %v902_v6 = vrot.slane %v897_v57, 4  ;;  %v943_v29 = vshrl.u32 %v897_v57, 16  ;;  %v940_v3 = vpack.i.b16 %v897_v57, %v869_v46 }
 0x368   :  { %v198_v42 = vperm.slane %v173_v35, %v2865_v12  ;;  %v225_v46 = vperm.slane %v176_v43, %v2865_v12 }
 0x369   :  { %v903_v8 = vsel %vm200_vm8, 0, %v902_v6  ;;  %v904_v11 = vrot.slane %v901_v4, 4  ;;  %v959_v26 = vshrl.u32 %v901_v4, 16  ;;  %v956_v30 = vpack.i.b16 %v901_v4, %v873_v51 }
 0x36a   :  { %v951_v15 = vshrl.u32 %v903_v8, 16  ;;  %v948_v23 = vpack.i.b16 %v903_v8, %v875_v5  ;;  %v944_v18 = vpack.i.b16 %v943_v29, %v942_v32  ;;  %v199_v47 = vrot.slane %v198_v42, 4 }
 0x36b   :  { %v905_v17 = vsel %vm200_vm8, 0, %v904_v11  ;;  %v960_v31 = vpack.i.b16 %v959_v26, %v958_v28  ;;  %v229_v49 = vsel %vm200_vm8, %v225_v46, %v228_v48  ;;  %v182_v4 = vpack.i.b16 %v181_v52, %v180_v56 }
 0x36c   :  { %v952_v20 = vpack.i.b16 %v951_v15, %v950_v14  ;;  %v967_v22 = vshrl.u32 %v905_v17, 16  ;;  %v964_v25 = vpack.i.b16 %v905_v17, %v877_v9  ;;  %v201_v50 = vsel %vm200_vm8, %v199_v47, %v193_v39 }
 0x36d   :  { %v237_v53 = vperm.slane %v229_v49, %v2870_v27  ;;  %v207_v54 = vperm.slane %v201_v50, %v2870_v27  ;;  %v186_v11 = vshrl.u32 %v2855_v63, 16  ;;  %v272_v15 = vperm.slane %v182_v4, %v2865_v12 }
 0x36e   :  { %2629 = vxpose.binary.xlu0.c.b16.start.end [1/2] (short) (narrow) %v912_v19, %v908_v16, 16  ;;  %v968_v24 = vpack.i.b16 %v967_v22, %v966_v21 }
 0x36f   :  { %2638 = vxpose.binary.xlu2.c.b16.start.end [1/2] (short) (narrow) %v952_v20, %v948_v23, 16  ;;  %v240_v6 = vrot.slane %v237_v53, 4  ;;  %v212_v9 = vrot.slane %v207_v54, 4  ;;  %v188_v19 = vpack.i.b16 %v187_v7, %v186_v11 }
 0x370   :  { %2635 = vxpose.binary.xlu1.c.b16.start.end [1/2] (short) (narrow) %v968_v24, %v964_v25, 16  ;;  %v280_v25 = vrot.slane %v272_v15, 4 }
 0x371   :  { %v241_v17 = vsel %vm200_vm8, 0, %v240_v6  ;;  %v213_v23 = vsel %vm200_vm8, 0, %v212_v9 }
 0x372   :  { %v318_v24 = vrot.slane %v241_v17, 4 }
 0x37e   :  { %2641 = vxpose.binary.xlu0.c.b16.start.end [1/2] (short) (narrow) %v960_v31, %v956_v30, 16 }
 0x380   :  { %2644 = vxpose.binary.xlu1.c.b16.start.end [1/2] (short) (narrow) %v944_v18, %v940_v3, 16 }
 0x3d8   :  { %1330 = vrot.lane.b32.xlu2 %v2835_v55, %s2729_s22 }
 0x3da   :  { %1338 = vrot.lane.b32.xlu1 %v2850_v60, %s2729_s22  ;;  %v179_v60 = vpack.i.b16 %v2858_v0, %v2839_v58 }
 0x3dc   :  { %v246_v61 = vperm.slane %v179_v60, %v2865_v12 }
 0x3de   :  { %v254_v13 = vrot.slane %v246_v61, 4 }
 0x3e0   :  { %1342 = vrot.lane.b32.xlu2 %v2853_v62, %s2729_s22  ;;  %v226_v62 = vrot.slane %v225_v46, 4 }
 0x3e2   :  { %1332 = vrot.lane.b32.xlu1 %v2839_v58, %s2729_s22  ;;  %v227_v36 = vsel %vm200_vm8, %v226_v62, %v220_v45 }
 0x3e3   :  { %v233_v5 = vperm.slane %v227_v36, %v2870_v27 }
 0x3e5   :  { %v238_v16 = vrot.slane %v233_v5, 4 }
 0x3e7   :  { %v239_v28 = vsel %vm200_vm8, 0, %v238_v16 }
 0x3e8   :  { %1336 = vrot.lane.b32.xlu2 %v2858_v0, %s2729_s22  ;;  %v185_v0 = vpack.i.b16 %v2860_v1, %v2855_v63  ;;  %v319_v34 = vsel %vm200_vm8, %v318_v24, %v239_v28 }
 0x3ea   :  { %v251_v20 = vperm.slane %v185_v0, %v2865_v12 }
 0x3ec   :  { %1334 = vrot.lane.b32.xlu0 %v2847_v59, %s2729_s22  ;;  %v203_v59 = vsel %vm200_vm8, %v198_v42, %v202_v44  ;;  %v252_v30 = vrot.slane %v251_v20, 4 }
 0x3ed   :  { %v211_v55 = vperm.slane %v203_v59, %v2870_v27  ;;  %v323_v59 = vperm.slane %v319_v34, %v2865_v12 }
 0x3ee   :  { %v253_v40 = vsel %vm200_vm8, %v252_v30, %v246_v61 }
 0x3ef   :  { %v214_v51 = vrot.slane %v211_v55, 4  ;;  %v3010_v48 = vperm.slane %v253_v40, %v2870_v27  ;;  %v324_v56 = vrot.slane %v323_v59, 4 }
 0x3f0   :  { %1340 = vrot.lane.b32.xlu2 %v2855_v63, %s2729_s22  ;;  %v277_v63 = vperm.slane %v188_v19, %v2865_v12 }
 0x3f1   :  { %v215_v2 = vsel %vm200_vm8, 0, %v214_v51  ;;  %v294_v45 = vsel %vm200_vm8, %v214_v51, %v207_v54  ;;  %v313_v51 = vsel %vm200_vm8, %v240_v6, %v233_v5  ;;  %v264_v4 = vrot.slane %v3010_v48, 4 }
 0x3f2   :  { %v299_v14 = vrot.slane %v215_v2, 4  ;;  %v281_v18 = vsel %vm200_vm8, %v277_v63, %v280_v25  ;;  %v278_v35 = vrot.slane %v277_v63, 4  ;;  %v298_v52 = vperm.slane %v294_v45, %v2865_v12 }
 0x3f3   :  { %v289_v43 = vperm.slane %v281_v18, %v2870_v27  ;;  %v317_v7 = vperm.slane %v313_v51, %v2865_v12  ;;  %v265_v19 = vsel %vm200_vm8, 0, %v264_v4 }
 0x3f4   :  { %1344 = vrot.lane.b32.xlu0 %v2860_v1, %s2729_s22  ;;  %v255_v1 = vsel %vm200_vm8, %v251_v20, %v254_v13  ;;  %v300_v29 = vsel %vm200_vm8, %v299_v14, %v213_v23  ;;  %v279_v55 = vsel %vm200_vm8, %v278_v35, %v272_v15 }
 0x3f5   :  { %v263_v31 = vperm.slane %v255_v1, %v2870_v27  ;;  %v304_v33 = vperm.slane %v300_v29, %v2865_v12  ;;  %v3018_v53 = vrot.slane %v289_v43, 4  ;;  %v325_v14 = vsel %vm200_vm8, %v324_v56, %v317_v7 }
 0x3f6   :  { %v329_v1 = vperm.slane %v325_v14, %v2870_v27 }
 0x3f7   :  { %v3002_v41 = vrot.slane %v263_v31, 4  ;;  %v305_v47 = vrot.slane %v304_v33, 4  ;;  %v293_v9 = vsel %vm200_vm8, 0, %v3018_v53 }
 0x3f8   :  { %v374_v43 = vshrl.u32 %v329_v1, 16 }
 0x3f9   :  { %v267_v60 = vsel %vm200_vm8, 0, %v3002_v41  ;;  %v306_v2 = vsel %vm200_vm8, %v305_v47, %v298_v52 }
 0x3fc   :  { %v2624_v58 = vpop.trf.xlu2 }
 0x3fd   :  { %v1226_v3 = vrot.slane %v2624_v58, 4  ;;  %v310_v58 = vperm.slane %v306_v2, %v2870_v27 }
 0x3ff   :  { %v373_v63 = vshrl.u32 %v310_v58, 16  ;;  %v311_v29 = vrot.slane %v310_v58, 4  ;;  %v372_v45 = vpack.i.b16 %v329_v1, %v310_v58 }
 0x401   :  { %v375_v2 = vpack.i.b16 %v374_v43, %v373_v63  ;;  %v312_v4 = vsel %vm200_vm8, 0, %v311_v29 }
 0x402   :  { %v379_v63 = vshrl.u32 %v312_v4, 16 }
 0x404   :  { %v2625_v39 = vpop.trf.xlu2 }
 0x405   :  { %v1246_v54 = vrot.slane %v2625_v39, 4 }
 0x40a   :  { %v2627_v57 = vpop.trf.xlu0 }
 0x40b   :  { %v1232_v21 = vrot.slane %v2627_v57, 4  ;;  %v3022_v57 = vperm.slane %v279_v55, %v2870_v27 }
 0x40c   :  { %v2633_v8 = vpop.trf.xlu1 }
 0x40d   :  { %v1233_v32 = vsel %vm200_vm8, %v1232_v21, %v2633_v8  ;;  %v337_v8 = vrot.slane %v267_v60, 4  ;;  %v290_v15 = vrot.slane %v3022_v57, 4 }
 0x40e   :  { %v1237_v37 = vperm.slane %v1233_v32, %v2865_v12 }
 0x40f   :  { %v291_v30 = vsel %vm200_vm8, 0, %v290_v15 }
 0x410   :  { %v1238_v62 = vrot.slane %v1237_v37, 4  ;;  %v2639_v11 = vpop.trf.xlu2  ;;  %v330_v37 = vrot.slane %v329_v1, 4 }
 0x412   :  { %v2628_v22 = vpop.trf.xlu0  ;;  %v331_v51 = vsel %vm200_vm8, 0, %v330_v37 }
 0x413   :  { %v1252_v38 = vrot.slane %v2628_v22, 4  ;;  %v356_v22 = vrot.slane %v293_v9, 4 }
 0x414   :  { %v2634_v26 = vpop.trf.xlu1 }
 0x415   :  { %v1253_v49 = vsel %vm200_vm8, %v1252_v38, %v2634_v26  ;;  %v338_v26 = vsel %vm200_vm8, %v337_v8, %v265_v19  ;;  %v357_v38 = vsel %vm200_vm8, %v356_v22, %v291_v30 }
 0x416   :  { %v1257_v61 = vperm.slane %v1253_v49, %v2865_v12 }
 0x418   :  { %v1258_v16 = vrot.slane %v1257_v61, 4 }
 0x41a   :  { %v2630_v42 = vpop.trf.xlu0 }
 0x41b   :  { %v1227_v44 = vsel %vm200_vm8, %v1226_v3, %v2630_v42 }
 0x41c   :  { %v1231_v46 = vperm.slane %v1227_v44, %v2865_v12  ;;  %v2636_v50 = vpop.trf.xlu1 }
 0x41d   :  { %v1272_v0 = vrot.slane %v2636_v50, 4 }
 0x41e   :  { %v1239_v36 = vsel %vm200_vm8, %v1238_v62, %v1231_v46  ;;  %v2640_v46 = vpop.trf.xlu2 }
 0x41f   :  { %v1243_v6 = vperm.slane %v1239_v36, %v2870_v27  ;;  %v1273_v20 = vsel %vm200_vm8, %v1272_v0, %v2639_v11  ;;  %v342_v0 = vperm.slane %v338_v26, %v2865_v12  ;;  %v351_v11 = vsel %vm200_vm8, %v3018_v53, %v3022_v57 }
 0x420   :  { %v1277_v28 = vperm.slane %v1273_v20, %v2865_v12  ;;  %v355_v20 = vperm.slane %v351_v11, %v2865_v12 }
 0x421   :  { %v1244_v24 = vrot.slane %v1243_v6, 4  ;;  %v1309_v32 = vshrl.u32 %v1243_v6, 16 }
 0x422   :  { %v2631_v5 = vpop.trf.xlu0  ;;  %v1278_v44 = vrot.slane %v1277_v28, 4 }
 0x423   :  { %v1247_v13 = vsel %vm200_vm8, %v1246_v54, %v2631_v5  ;;  %v1245_v35 = vsel %vm200_vm8, 0, %v1244_v24  ;;  %v361_v54 = vperm.slane %v357_v38, %v2865_v12 }
 0x424   :  { %v1251_v17 = vperm.slane %v1247_v13, %v2865_v12  ;;  %v2637_v21 = vpop.trf.xlu1  ;;  %v1315_v49 = vshrl.u32 %v1245_v35, 16  ;;  %v332_v13 = vsel %vm200_vm8, %v3002_v41, %v3010_v48 }
 0x425   :  { %v1292_v33 = vrot.slane %v2637_v21, 4  ;;  %v362_v14 = vrot.slane %v361_v54, 4  ;;  %v336_v22 = vperm.slane %v332_v13, %v2865_v12 }
 0x426   :  { %v1259_v23 = vsel %vm200_vm8, %v1258_v16, %v1251_v17  ;;  %v343_v16 = vrot.slane %v342_v0, 4 }
 0x427   :  { %v1263_v25 = vperm.slane %v1259_v23, %v2870_v27  ;;  %v1293_v60 = vsel %vm200_vm8, %v1292_v33, %v2640_v46  ;;  %v363_v57 = vsel %vm200_vm8, %v362_v14, %v355_v20  ;;  %v380_v23 = vshrl.u32 %v331_v51, 16 }
 0x428   :  { %v1297_v7 = vperm.slane %v1293_v60, %v2865_v12  ;;  %v344_v41 = vsel %vm200_vm8, %v343_v16, %v336_v22 }
 0x429   :  { %v1308_v31 = vpack.i.b16 %v1263_v25, %v1243_v6  ;;  %v1310_v3 = vshrl.u32 %v1263_v25, 16  ;;  %v1264_v18 = vrot.slane %v1263_v25, 4  ;;  %v378_v6 = vpack.i.b16 %v331_v51, %v312_v4 }
 0x42a   :  { %v2642_v34 = vpop.trf.xlu0  ;;  %v1298_v17 = vrot.slane %v1297_v7, 4  ;;  %v367_v25 = vperm.slane %v363_v57, %v2870_v27  ;;  %v348_v28 = vperm.slane %v344_v41, %v2870_v27 }
 0x42b   :  { %v1266_v39 = vrot.slane %v2642_v34, 4  ;;  %v1580_v40 = vsel %vm1578_vm9, %v1308_v31, 0  ;;  %v1311_v42 = vpack.i.b16 %v1310_v3, %v1309_v32  ;;  %v1265_v59 = vsel %vm200_vm8, 0, %v1264_v18 }
 0x42c   :  { %1589 = vmatpush.bf16.msra.mxu1 %v1580_v40  ;;  %v2645_v47 = vpop.trf.xlu1  ;;  %v1314_v62 = vpack.i.b16 %v1265_v59, %v1245_v35  ;;  %v1316_v50 = vshrl.u32 %v1265_v59, 16  ;;  %v381_v3 = vpack.i.b16 %v380_v23, %v379_v63  ;;  %v386_v35 = vshrl.u32 %v367_v25, 16 }
 0x42d   :  { %v1599_v55 = vsel %vm1578_vm9, %v1311_v42, 0  ;;  %v1267_v52 = vsel %vm200_vm8, %v1266_v39, %v2645_v47  ;;  %v384_v42 = vpack.i.b16 %v367_v25, %v348_v28  ;;  %v385_v43 = vshrl.u32 %v348_v28, 16 }
 0x42e   :  { %1608 = vmatpush.bf16.msra.mxu2 %v1599_v55  ;;  %v1271_v36 = vperm.slane %v1267_v52, %v2865_v12  ;;  %v1618_v56 = vsel %vm1578_vm9, %v1314_v62, 0  ;;  %v1317_v61 = vpack.i.b16 %v1316_v50, %v1315_v49  ;;  %v368_v55 = vrot.slane %v367_v25, 4 }
 0x42f   :  { %2505 = vmatmul.msk.bf16.vlgmr.msra.gmra.mxu1 %vm1574_vm10, %v372_v45  ;;  %1627 = vmatpush.bf16.msra.mxu3 %v1618_v56  ;;  %v387_v59 = vpack.i.b16 %v386_v35, %v385_v43  ;;  %v349_v62 = vrot.slane %v348_v28, 4 }
 0x430   :  { %v1279_v8 = vsel %vm200_vm8, %v1278_v44, %v1271_v36  ;;  %v1637_v5 = vsel %vm1578_vm9, %v1317_v61, 0  ;;  %v369_v49 = vsel %vm200_vm8, 0, %v368_v55 }
 0x431   :  { %2506 = vmatmul.msk.bf16.vlgmr.msra.gmra.mxu2 %vm1574_vm10, %v375_v2  ;;  %1646 = vmatpush.bf16.msrb.mxu1 %v1637_v5  ;;  %v1283_v15 = vperm.slane %v1279_v8, %v2870_v27  ;;  %v350_v50 = vsel %vm200_vm8, 0, %v349_v62  ;;  %v392_v2 = vshrl.u32 %v369_v49, 16 }
 0x432   :  { %v2643_v9 = vpop.trf.xlu0  ;;  %2507 = vmatmul.msk.bf16.vlgmr.msra.gmra.mxu3 %vm1574_vm10, %v378_v6  ;;  %v1331_v47 = vpop.permute.xlu2 %1330  ;;  %v390_v60 = vpack.i.b16 %v369_v49, %v350_v50  ;;  %v391_v7 = vshrl.u32 %v350_v50, 16 }
 0x433   :  { %v1286_v58 = vrot.slane %v2643_v9, 4  ;;  %v1284_v48 = vrot.slane %v1283_v15, 4  ;;  %v1321_v26 = vshrl.u32 %v1283_v15, 16  ;;  %v1349_v11 = vshrl.u32 %v1331_v47, 16 }
 0x434   :  { %v2646_v19 = vpop.trf.xlu1  ;;  %v393_v5 = vpack.i.b16 %v392_v2, %v391_v7 }
 0x435   :  { %v1287_v21 = vsel %vm200_vm8, %v1286_v58, %v2646_v19  ;;  %v1285_v31 = vsel %vm200_vm8, 0, %v1284_v48 }
 0x436   :  { %v1291_v53 = vperm.slane %v1287_v21, %v2865_v12  ;;  %v1327_v38 = vshrl.u32 %v1285_v31, 16 }
 0x438   :  { %v1299_v1 = vsel %vm200_vm8, %v1298_v17, %v1291_v53 }
 0x439   :  { %v1303_v24 = vperm.slane %v1299_v1, %v2870_v27 }
 0x43a   :  { %v1343_v52 = vpop.permute.xlu2 %1342 }
 0x43b   :  { %v1320_v29 = vpack.i.b16 %v1303_v24, %v1283_v15  ;;  %v1322_v30 = vshrl.u32 %v1303_v24, 16  ;;  %v1304_v32 = vrot.slane %v1303_v24, 4  ;;  %v1356_v36 = vshrl.u32 %v1343_v52, 16 }
 0x43d   :  { %v1656_v18 = vsel %vm1578_vm9, %v1320_v29, 0  ;;  %v1323_v33 = vpack.i.b16 %v1322_v30, %v1321_v26  ;;  %v1305_v34 = vsel %vm200_vm8, 0, %v1304_v32 }
 0x43e   :  { %1665 = vmatpush.bf16.msrb.mxu2 %v1656_v18  ;;  %v1326_v37 = vpack.i.b16 %v1305_v34, %v1285_v31  ;;  %v1328_v39 = vshrl.u32 %v1305_v34, 16 }
 0x43f   :  { %2508 = vmatmul.msk.bf16.vlgmr.msrb.gmra.mxu1 %vm1574_vm10, %v381_v3  ;;  %v1675_v40 = vsel %vm1578_vm9, %v1323_v33, 0 }
 0x440   :  { %1684 = vmatpush.bf16.msrb.mxu3 %v1675_v40  ;;  %v1694_v44 = vsel %vm1578_vm9, %v1326_v37, 0  ;;  %v1329_v45 = vpack.i.b16 %v1328_v39, %v1327_v38 }
 0x441   :  { %2509 = vmatmul.msk.bf16.vlgmr.msrb.gmra.mxu2 %vm1574_vm10, %v384_v42  ;;  %1703 = vmatpush.bf16.msra.mxu1 %v1694_v44 }
 0x442   :  { %v1713_v46 = vsel %vm1578_vm9, %v1329_v45, 0  ;;  %v1337_v56 = vpop.permute.xlu2 %1336 }
 0x443   :  { %2510 = vmatmul.msk.bf16.vlgmr.msrb.gmra.mxu3 %vm1574_vm10, %v387_v59  ;;  %v1362_v15 = vshrl.u32 %v1337_v56, 16 }
 0x445   :  { %1722 = vmatpush.bf16.msrb.mxu1 %v1713_v46 }
 0x44a   :  { %v1341_v22 = vpop.permute.xlu2 %1340 }
 0x44b   :  { %v1367_v26 = vshrl.u32 %v1341_v22, 16 }
 0x44c   :  { %v1339_v51 = vpop.permute.xlu1 %1338 }
 0x44d   :  { %v1355_v54 = vshrl.u32 %v1339_v51, 16  ;;  %v1354_v61 = vpack.i.b16 %v1343_v52, %v1339_v51 }
 0x44f   :  { %2511 = vmatmul.msk.bf16.vlgmr.msra.gmra.mxu1 %vm1574_vm10, %v390_v60  ;;  %v1357_v4 = vpack.i.b16 %v1356_v36, %v1355_v54  ;;  %v1379_v8 = vperm.slane %v1354_v61, %v2865_v12 }
 0x451   :  { %v1405_v13 = vperm.slane %v1357_v4, %v2865_v12  ;;  %v1380_v16 = vrot.slane %v1379_v8, 4 }
 0x453   :  { %v1406_v53 = vrot.slane %v1405_v13, 4 }
 0x454   :  { %v1333_v0 = vpop.permute.xlu1 %1332 }
 0x455   :  { %v1361_v6 = vshrl.u32 %v1333_v0, 16  ;;  %v1360_v17 = vpack.i.b16 %v1337_v56, %v1333_v0 }
 0x457   :  { %v1363_v21 = vpack.i.b16 %v1362_v15, %v1361_v6  ;;  %v1426_v1 = vperm.slane %v1360_v17, %v2865_v12 }
 0x459   :  { %v1452_v28 = vperm.slane %v1363_v21, %v2865_v12  ;;  %v1434_v38 = vrot.slane %v1426_v1, 4 }
 0x45b   :  { %v1460_v42 = vrot.slane %v1452_v28, 4 }
 0x45e   :  { %v1335_v9 = vpop.permute.xlu0 %1334 }
 0x45f   :  { %v1348_v58 = vpack.i.b16 %v1335_v9, %v1331_v47  ;;  %v1350_v14 = vshrl.u32 %v1335_v9, 16  ;;  %2512 = vmatmul.msk.bf16.vlgmr.msrb.gmra.mxu1 %vm1574_vm10, %v393_v5 }
 0x461   :  { %v1351_v19 = vpack.i.b16 %v1350_v14, %v1349_v11  ;;  %v1374_v20 = vperm.slane %v1348_v58, %v2865_v12 }
 0x463   :  { %v1381_v57 = vsel %vm200_vm8, %v1380_v16, %v1374_v20  ;;  %v1382_v41 = vrot.slane %v1374_v20, 4  ;;  %v1400_v48 = vperm.slane %v1351_v19, %v2865_v12 }
 0x464   :  { %v1387_v23 = vperm.slane %v1381_v57, %v2870_v27 }
 0x465   :  { %v1383_v24 = vsel %vm200_vm8, %v1379_v8, %v1382_v41  ;;  %v1407_v25 = vsel %vm200_vm8, %v1406_v53, %v1400_v48  ;;  %v1408_v63 = vrot.slane %v1400_v48, 4 }
 0x466   :  { %v1391_v29 = vperm.slane %v1383_v24, %v2870_v27  ;;  %v1413_v30 = vperm.slane %v1407_v25, %v2870_v27  ;;  %v1345_v31 = vpop.permute.xlu0 %1344  ;;  %v1392_v32 = vrot.slane %v1387_v23, 4 }
 0x467   :  { %v1409_v3 = vsel %vm200_vm8, %v1405_v13, %v1408_v63  ;;  %v1366_v18 = vpack.i.b16 %v1345_v31, %v1341_v22  ;;  %v1368_v33 = vshrl.u32 %v1345_v31, 16 }
 0x468   :  { %v1394_v34 = vrot.slane %v1391_v29, 4  ;;  %v1417_v35 = vperm.slane %v1409_v3, %v2870_v27  ;;  %v1418_v37 = vrot.slane %v1413_v30, 4  ;;  %v1393_v45 = vsel %vm200_vm8, 0, %v1392_v32 }
 0x469   :  { %v1369_v39 = vpack.i.b16 %v1368_v33, %v1367_v26  ;;  %v1431_v40 = vperm.slane %v1366_v18, %v2865_v12 }
 0x46a   :  { %v1395_v43 = vsel %vm200_vm8, 0, %v1394_v34  ;;  %v1420_v44 = vrot.slane %v1417_v35, 4  ;;  %v1419_v55 = vsel %vm200_vm8, 0, %v1418_v37  ;;  %v1474_v60 = vsel %vm200_vm8, %v1394_v34, %v1387_v23 }
 0x46b   :  { %v1479_v59 = vrot.slane %v1395_v43, 4  ;;  %v1432_v46 = vrot.slane %v1431_v40, 4  ;;  %v1435_v47 = vsel %vm200_vm8, %v1431_v40, %v1434_v38  ;;  %v1457_v50 = vperm.slane %v1369_v39, %v2865_v12 }
 0x46c   :  { %v1421_v62 = vsel %vm200_vm8, 0, %v1420_v44  ;;  %v1443_v49 = vperm.slane %v1435_v47, %v2870_v27  ;;  %v1493_v4 = vsel %vm200_vm8, %v1420_v44, %v1413_v30  ;;  %v1478_v11 = vperm.slane %v1474_v60, %v2865_v12 }
 0x46d   :  { %v1480_v52 = vsel %vm200_vm8, %v1479_v59, %v1393_v45  ;;  %v1498_v51 = vrot.slane %v1421_v62, 4  ;;  %v1433_v54 = vsel %vm200_vm8, %v1432_v46, %v1426_v1  ;;  %v1458_v61 = vrot.slane %v1457_v50, 4 }
 0x46e   :  { %v1439_v36 = vperm.slane %v1433_v54, %v2870_v27  ;;  %v1446_v56 = vrot.slane %v1443_v49, 4  ;;  %v1461_v2 = vsel %vm200_vm8, %v1457_v50, %v1460_v42  ;;  %v1484_v7 = vperm.slane %v1480_v52, %v2865_v12 }
 0x46f   :  { %v1469_v0 = vperm.slane %v1461_v2, %v2870_v27  ;;  %v1499_v8 = vsel %vm200_vm8, %v1498_v51, %v1419_v55  ;;  %v1459_v9 = vsel %vm200_vm8, %v1458_v61, %v1452_v28  ;;  %v1497_v17 = vperm.slane %v1493_v4, %v2865_v12 }
 0x470   :  { %v1444_v5 = vrot.slane %v1439_v36, 4  ;;  %v1447_v6 = vsel %vm200_vm8, 0, %v1446_v56  ;;  %v1465_v13 = vperm.slane %v1459_v9, %v2870_v27  ;;  %v1485_v16 = vrot.slane %v1484_v7, 4 }
 0x471   :  { %v1472_v58 = vrot.slane %v1469_v0, 4  ;;  %v1517_v14 = vrot.slane %v1447_v6, 4  ;;  %v1503_v19 = vperm.slane %v1499_v8, %v2865_v12  ;;  %v1512_v22 = vsel %vm200_vm8, %v1446_v56, %v1439_v36 }
 0x472   :  { %v1445_v15 = vsel %vm200_vm8, 0, %v1444_v5  ;;  %v1470_v20 = vrot.slane %v1465_v13, 4  ;;  %v1486_v41 = vsel %vm200_vm8, %v1485_v16, %v1478_v11  ;;  %v1516_v25 = vperm.slane %v1512_v22, %v2865_v12 }
 0x473   :  { %v1473_v21 = vsel %vm200_vm8, 0, %v1472_v58  ;;  %v1518_v53 = vsel %vm200_vm8, %v1517_v14, %v1445_v15  ;;  %v1504_v48 = vrot.slane %v1503_v19, 4  ;;  %v1490_v24 = vperm.slane %v1486_v41, %v2870_v27 }
 0x474   :  { %v1536_v57 = vrot.slane %v1473_v21, 4  ;;  %v1522_v23 = vperm.slane %v1518_v53, %v2865_v12  ;;  %v1471_v1 = vsel %vm200_vm8, 0, %v1470_v20  ;;  %v1531_v29 = vsel %vm200_vm8, %v1472_v58, %v1465_v13 }
 0x475   :  { %v1505_v63 = vsel %vm200_vm8, %v1504_v48, %v1497_v17  ;;  %v1491_v31 = vrot.slane %v1490_v24, 4  ;;  %v1553_v3 = vshrl.u32 %v1490_v24, 16  ;;  %v1535_v39 = vperm.slane %v1531_v29, %v2865_v12 }
 0x476   :  { %v1523_v26 = vrot.slane %v1522_v23, 4  ;;  %v1537_v28 = vsel %vm200_vm8, %v1536_v57, %v1471_v1  ;;  %v1509_v30 = vperm.slane %v1505_v63, %v2870_v27 }
 0x477   :  { %v1541_v32 = vperm.slane %v1537_v28, %v2865_v12  ;;  %v1492_v35 = vsel %vm200_vm8, 0, %v1491_v31 }
 0x478   :  { %v1524_v18 = vsel %vm200_vm8, %v1523_v26, %v1516_v25  ;;  %v1552_v33 = vpack.i.b16 %v1509_v30, %v1490_v24  ;;  %v1554_v34 = vshrl.u32 %v1509_v30, 16  ;;  %v1510_v37 = vrot.slane %v1509_v30, 4 }
 0x479   :  { %v1528_v38 = vperm.slane %v1524_v18, %v2870_v27  ;;  %v1542_v40 = vrot.slane %v1541_v32, 4  ;;  %v1559_v59 = vshrl.u32 %v1492_v35, 16 }
 0x47a   :  { %v1812_v42 = vsel %vm1578_vm9, %v1552_v33, 0  ;;  %v1555_v43 = vpack.i.b16 %v1554_v34, %v1553_v3  ;;  %v1511_v44 = vsel %vm200_vm8, 0, %v1510_v37 }
 0x47b   :  { %1821 = vmatpush.bf16.msra.mxu2 %v1812_v42  ;;  %v1558_v45 = vpack.i.b16 %v1511_v44, %v1492_v35  ;;  %v1560_v46 = vshrl.u32 %v1511_v44, 16  ;;  %v1543_v47 = vsel %vm200_vm8, %v1542_v40, %v1535_v39  ;;  %v1529_v49 = vrot.slane %v1528_v38, 4 }
 0x47c   :  { %v1831_v55 = vsel %vm1578_vm9, %v1555_v43, 0  ;;  %v1547_v62 = vperm.slane %v1543_v47, %v2870_v27  ;;  %v1565_v52 = vshrl.u32 %v1528_v38, 16 }
 0x47d   :  { %1840 = vmatpush.bf16.msra.mxu3 %v1831_v55  ;;  %v1850_v50 = vsel %vm1578_vm9, %v1558_v45, 0  ;;  %v1561_v60 = vpack.i.b16 %v1560_v46, %v1559_v59  ;;  %v1530_v36 = vsel %vm200_vm8, 0, %v1529_v49 }
 0x47e   :  { %1859 = vmatpush.bf16.msrb.mxu0 %v1850_v50  ;;  %v1564_v51 = vpack.i.b16 %v1547_v62, %v1528_v38  ;;  %v1566_v54 = vshrl.u32 %v1547_v62, 16  ;;  %v1548_v56 = vrot.slane %v1547_v62, 4  ;;  %v1571_v8 = vshrl.u32 %v1530_v36, 16 }
 0x47f   :  { %v1869_v61 = vsel %vm1578_vm9, %v1561_v60, 0 }
 0x480   :  { %1878 = vmatpush.bf16.msra.mxu1 %v1869_v61  ;;  %v1888_v2 = vsel %vm1578_vm9, %v1564_v51, 0  ;;  %v1567_v4 = vpack.i.b16 %v1566_v54, %v1565_v52  ;;  %v1549_v0 = vsel %vm200_vm8, 0, %v1548_v56 }
 0x481   :  { %1897 = vmatpush.bf16.msrb.mxu2 %v1888_v2  ;;  %v1570_v7 = vpack.i.b16 %v1549_v0, %v1530_v36  ;;  %v1572_v5 = vshrl.u32 %v1549_v0, 16 }
 0x482   :  { %v1907_v6 = vsel %vm1578_vm9, %v1567_v4, 0 }
 0x483   :  { %1916 = vmatpush.bf16.msrb.mxu3 %v1907_v6  ;;  %v1926_v9 = vsel %vm1578_vm9, %v1570_v7, 0  ;;  %v1573_v11 = vpack.i.b16 %v1572_v5, %v1571_v8 }
 0x484   :  { %1935 = vmatpush.bf16.msra.mxu0 %v1926_v9 }
 0x485   :  { %v1945_v13 = vsel %vm1578_vm9, %v1573_v11, 0 }
 0x486   :  { %1954 = vmatpush.bf16.msrb.mxu1 %v1945_v13 }
 0x4ac   :  { %v1591_v58 = vpop.f32.mrf.mxu1 }
 0x4ad   :  { %v1728_v14 = vsel %vm1574_vm10, %v1591_v58, -inf }
 0x4ae   :  { %1729 = vmax.xlane.f32.xlu1 %v1728_v14 }
 0x4b4   :  { %v1593_v15 = vpop.f32.mrf.mxu1  ;;  %v1610_v16 = vpop.f32.mrf.mxu2 }
 0x4b5   :  { %v1731_v17 = vsel %vm1574_vm10, %v1610_v16, -inf  ;;  %v1629_v19 = vpop.f32.mrf.mxu3 }
 0x4b6   :  { %1732 = vmax.xlane.f32.xlu2 %v1731_v17  ;;  %v1734_v20 = vsel %vm1574_vm10, %v1629_v19, -inf }
 0x4b7   :  { %1735 = vmax.xlane.f32.xlu0 %v1734_v20 }
 0x4bc   :  { %v1612_v21 = vpop.f32.mrf.mxu2  ;;  %v1648_v22 = vpop.f32.mrf.mxu1 }
 0x4bd   :  { %v1737_v53 = vsel %vm1574_vm10, %v1648_v22, -inf  ;;  %v1631_v57 = vpop.f32.mrf.mxu3 }
 0x4be   :  { %1738 = vmax.xlane.f32.xlu1 %v1737_v53 }
 0x4c4   :  { %v1650_v41 = vpop.f32.mrf.mxu1  ;;  %v1667_v48 = vpop.f32.mrf.mxu2 }
 0x4c5   :  { %v1740_v23 = vsel %vm1574_vm10, %v1667_v48, -inf }
 0x4c6   :  { %1741 = vmax.xlane.f32.xlu1 %v1740_v23  ;;  %v1686_v1 = vpop.f32.mrf.mxu3 }
 0x4c7   :  { %v1743_v24 = vsel %vm1574_vm10, %v1686_v1, -inf }
 0x4c8   :  { %1744 = vmax.xlane.f32.xlu2 %v1743_v24 }
 0x4cc   :  { %v1705_v25 = vpop.f32.mrf.mxu1  ;;  %v1669_v63 = vpop.f32.mrf.mxu2 }
 0x4cd   :  { %v1746_v26 = vsel %vm1574_vm10, %v1705_v25, -inf }
 0x4ce   :  { %1747 = vmax.xlane.f32.xlu1 %v1746_v26  ;;  %v1688_v28 = vpop.f32.mrf.mxu3 }
 0x4d4   :  { %v1707_v29 = vpop.f32.mrf.mxu1 }
 0x4dc   :  { %v3168_v30 = vpop.f32.mrf.mxu1 }
 0x4dd   :  { %v1749_v31 = vsel %vm1574_vm10, %v3168_v30, -inf }
 0x4de   :  { %1750 = vmax.xlane.f32.xlu0 %v1749_v31 }
 0x4e4   :  { %v1726_v32 = vpop.f32.mrf.mxu1 }
 0x521   :  { %v1730_v3 = vpop.xlane.xlu1 %1729 }
 0x522   :  { %v1752_v18 = vsub.f32 %v1591_v58, %v1730_v3 }
 0x524   :  { %v1760_v33 = vmul.f32 1.442695, %v1752_v18 }
 0x526   :  { %2676 = vpow2.f32 %v1760_v33 }
 0x529   :  { %v1733_v34 = vpop.xlane.xlu2 %1732 }
 0x52a   :  { %v1753_v35 = vsub.f32 %v1610_v16, %v1733_v34  ;;  %v1736_v37 = vpop.xlane.xlu0 %1735 }
 0x52b   :  { %v1754_v40 = vsub.f32 %v1629_v19, %v1736_v37 }
 0x52c   :  { %v2677_v38 = vpop.eup %2676  ;;  %v1762_v39 = vmul.f32 1.442695, %v1753_v35 }
 0x52d   :  { %v1800_v42 = vpack.c.bf16 %v2677_v38, %v2677_v38  ;;  %v1776_v43 = vsel %vm1574_vm10, %v2677_v38, 0.0  ;;  %v1764_v44 = vmul.f32 1.442695, %v1754_v40 }
 0x52e   :  { %2678 = vpow2.f32 %v1762_v39  ;;  %1777 = vadd.xlane.f32.xlu0 %v1776_v43 }
 0x52f   :  { %2513 = vmatmul.msk.bf16.vlgmr.msra.gmra.mxu2 %vm1574_vm10, %v1800_v42  ;;  %2680 = vpow2.f32 %v1764_v44 }
 0x531   :  { %v1739_v45 = vpop.xlane.xlu1 %1738 }
 0x532   :  { %v1755_v59 = vsub.f32 %v1648_v22, %v1739_v45 }
 0x534   :  { %v2679_v46 = vpop.eup %2678  ;;  %v1766_v47 = vmul.f32 1.442695, %v1755_v59 }
 0x535   :  { %v1801_v55 = vpack.c.bf16 %v2679_v46, %v2679_v46  ;;  %v2681_v62 = vpop.eup %2680  ;;  %v1779_v13 = vsel %vm1574_vm10, %v2679_v46, 0.0 }
 0x536   :  { %2682 = vpow2.f32 %v1766_v47  ;;  %v1782_v49 = vsel %vm1574_vm10, %v2681_v62, 0.0  ;;  %v1802_v50 = vpack.c.bf16 %v2681_v62, %v2681_v62 }
 0x537   :  { %2514 = vmatmul.msk.bf16.vlgmr.msra.gmra.mxu3 %vm1574_vm10, %v1801_v55  ;;  %1783 = vadd.xlane.f32.xlu2 %v1782_v49 }
 0x538   :  { %2515 = vmatmul.msk.bf16.vlgmr.msrb.gmra.mxu0 %vm1574_vm10, %v1802_v50 }
 0x539   :  { %v1742_v60 = vpop.xlane.xlu1 %1741 }
 0x53a   :  { %v1756_v52 = vsub.f32 %v1667_v48, %v1742_v60 }
 0x53b   :  { %v1745_v54 = vpop.xlane.xlu2 %1744 }
 0x53c   :  { %v2683_v51 = vpop.eup %2682  ;;  %v1768_v56 = vmul.f32 1.442695, %v1756_v52  ;;  %v1757_v61 = vsub.f32 %v1686_v1, %v1745_v54 }
 0x53d   :  { %v1803_v36 = vpack.c.bf16 %v2683_v51, %v2683_v51  ;;  %v1785_v2 = vsel %vm1574_vm10, %v2683_v51, 0.0 }
 0x53e   :  { %2684 = vpow2.f32 %v1768_v56  ;;  %v1770_v4 = vmul.f32 1.442695, %v1757_v61 }
 0x53f   :  { %2516 = vmatmul.msk.bf16.vlgmr.msra.gmra.mxu1 %vm1574_vm10, %v1803_v36  ;;  %1786 = vadd.xlane.f32.xlu2 %v1785_v2 }
 0x540   :  { %2686 = vpow2.f32 %v1770_v4 }
 0x541   :  { %v1748_v0 = vpop.xlane.xlu1 %1747 }
 0x542   :  { %v1758_v7 = vsub.f32 %v1705_v25, %v1748_v0 }
 0x544   :  { %v2685_v8 = vpop.eup %2684  ;;  %v1772_v5 = vmul.f32 1.442695, %v1758_v7 }
 0x545   :  { %v1804_v6 = vpack.c.bf16 %v2685_v8, %v2685_v8  ;;  %v1788_v9 = vsel %vm1574_vm10, %v2685_v8, 0.0 }
 0x546   :  { %v2687_v11 = vpop.eup %2686  ;;  %2688 = vpow2.f32 %v1772_v5  ;;  %1789 = vadd.xlane.f32.xlu1 %v1788_v9 }
 0x547   :  { %v1805_v58 = vpack.c.bf16 %v2687_v11, %v2687_v11  ;;  %2517 = vmatmul.msk.bf16.vlgmr.msrb.gmra.mxu2 %vm1574_vm10, %v1804_v6  ;;  %1780 = vadd.xlane.f32.xlu2 %v1779_v13  ;;  %v1791_v21 = vsel %vm1574_vm10, %v2687_v11, 0.0 }
 0x549   :  { %2518 = vmatmul.msk.bf16.vlgmr.msrb.gmra.mxu3 %vm1574_vm10, %v1805_v58 }
 0x54c   :  { %v2689_v14 = vpop.eup %2688 }
 0x54d   :  { %v1806_v15 = vpack.c.bf16 %v2689_v14, %v2689_v14  ;;  %v1794_v16 = vsel %vm1574_vm10, %v2689_v14, 0.0 }
 0x54e   :  { %1795 = vadd.xlane.f32.xlu1 %v1794_v16 }
 0x54f   :  { %2519 = vmatmul.msk.bf16.vlgmr.msra.gmra.mxu0 %vm1574_vm10, %v1806_v15 }
 0x551   :  { %v1751_v17 = vpop.xlane.xlu0 %1750 }
 0x552   :  { %v1759_v19 = vsub.f32 %v3168_v30, %v1751_v17 }
 0x554   :  { %v1774_v20 = vmul.f32 1.442695, %v1759_v19 }
 0x556   :  { %2690 = vpow2.f32 %v1774_v20  ;;  %1792 = vadd.xlane.f32.xlu1 %v1791_v21 }
 0x55c   :  { %v2691_v22 = vpop.eup %2690 }
 0x55d   :  { %v1807_v53 = vpack.c.bf16 %v2691_v22, %v2691_v22  ;;  %v1797_v57 = vsel %vm1574_vm10, %v2691_v22, 0.0 }
 0x55e   :  { %1798 = vadd.xlane.f32.xlu0 %v1797_v57 }
 0x55f   :  { %2520 = vmatmul.msk.bf16.vlgmr.msrb.gmra.mxu1 %vm1574_vm10, %v1807_v53 }
 0x5a1   :  { %v1778_v48 = vpop.xlane.xlu0 %1777 }
 0x5aa   :  { %v1784_v41 = vpop.xlane.xlu2 %1783 }
 0x5ab   :  { %2692 = vrcp.f32 %v1784_v41 }
 0x5ac   :  { %2694 = vrcp.f32 %v1778_v48 }
 0x5b1   :  { %v2693_v24 = vpop.eup %2692 }
 0x5b2   :  { %v1823_v23 = vpop.f32.mrf.mxu2  ;;  %v1787_v1 = vpop.xlane.xlu2 %1786 }
 0x5b3   :  { %v2695_v26 = vpop.eup %2694  ;;  %2696 = vrcp.f32 %v1787_v1 }
 0x5b4   :  { %v1968_v28 = vmul.f32 %v2695_v26, %v1823_v23 }
 0x5b5   :  { %v1861_v25 = vpop.f32.mrf.mxu0 }
 0x5b6   :  { %v1970_v63 = vmul.f32 %v2693_v24, %v1861_v25  ;;  %v1979_v33 = vrot.slane %v1968_v28, 4 }
 0x5b8   :  { %v1976_v31 = vrot.slane %v1970_v63, 4  ;;  %v1980_v39 = vsel %vm200_vm8, %v1970_v63, %v1979_v33 }
 0x5b9   :  { %v1790_v29 = vpop.xlane.xlu1 %1789  ;;  %v2697_v34 = vpop.eup %2696  ;;  %v1988_v46 = vperm.slane %v1980_v39, %v2865_v12 }
 0x5ba   :  { %v1825_v30 = vpop.f32.mrf.mxu2  ;;  %v1781_v32 = vpop.xlane.xlu2 %1780  ;;  %v1978_v37 = vsel %vm200_vm8, %v1976_v31, %v1968_v28 }
 0x5bb   :  { %v1842_v3 = vpop.f32.mrf.mxu3  ;;  %2698 = vrcp.f32 %v1781_v32  ;;  %v1984_v42 = vperm.slane %v1978_v37, %v2865_v12  ;;  %v2015_v52 = vrot.slane %v1988_v46, 4 }
 0x5bc   :  { %v1880_v18 = vpop.f32.mrf.mxu1  ;;  %2700 = vrcp.f32 %v1790_v29 }
 0x5bd   :  { %v1863_v35 = vpop.f32.mrf.mxu0  ;;  %v1971_v38 = vmul.f32 %v2697_v34, %v1880_v18  ;;  %v2003_v49 = vrot.slane %v1984_v42, 4 }
 0x5bf   :  { %v1989_v45 = vrot.slane %v1971_v38, 4 }
 0x5c1   :  { %v2699_v40 = vpop.eup %2698  ;;  %v1796_v43 = vpop.xlane.xlu1 %1795 }
 0x5c2   :  { %v1969_v44 = vmul.f32 %v2699_v40, %v1842_v3  ;;  %2702 = vrcp.f32 %v1796_v43  ;;  %v2701_v22 = vpop.eup %2700 }
 0x5c3   :  { %v1844_v59 = vpop.f32.mrf.mxu3 }
 0x5c4   :  { %v1882_v47 = vpop.f32.mrf.mxu1  ;;  %v1991_v55 = vrot.slane %v1969_v44, 4  ;;  %v1990_v62 = vsel %vm200_vm8, %v1989_v45, %v1969_v44 }
 0x5c5   :  { %v1996_v50 = vperm.slane %v1990_v62, %v2865_v12 }
 0x5c6   :  { %v1992_v60 = vsel %vm200_vm8, %v1971_v38, %v1991_v55 }
 0x5c7   :  { %v2000_v51 = vperm.slane %v1992_v60, %v2865_v12  ;;  %v2001_v54 = vrot.slane %v1996_v50, 4  ;;  %v2004_v36 = vsel %vm200_vm8, %v1996_v50, %v2003_v49 }
 0x5c8   :  { %v2012_v56 = vperm.slane %v2004_v36, %v2870_v27  ;;  %v2703_v23 = vpop.eup %2702 }
 0x5c9   :  { %v2002_v61 = vsel %vm200_vm8, %v2001_v54, %v1984_v42  ;;  %v2013_v2 = vrot.slane %v2000_v51, 4  ;;  %v2016_v4 = vsel %vm200_vm8, %v2000_v51, %v2015_v52  ;;  %v1793_v9 = vpop.xlane.xlu1 %1792 }
 0x5ca   :  { %v2008_v0 = vperm.slane %v2002_v61, %v2870_v27  ;;  %v2024_v7 = vperm.slane %v2016_v4, %v2870_v27  ;;  %v2027_v8 = vrot.slane %v2012_v56, 4  ;;  %v1899_v5 = vpop.f32.mrf.mxu2  ;;  %2704 = vrcp.f32 %v1793_v9 }
 0x5cb   :  { %v2014_v6 = vsel %vm200_vm8, %v2013_v2, %v1988_v46  ;;  %v1972_v41 = vmul.f32 %v2701_v22, %v1899_v5 }
 0x5cc   :  { %v2020_v11 = vperm.slane %v2014_v6, %v2870_v27  ;;  %v2025_v13 = vrot.slane %v2008_v0, 4  ;;  %v2028_v58 = vsel %vm200_vm8, 0.0, %v2027_v8  ;;  %v2031_v14 = vrot.slane %v2024_v7, 4  ;;  %v1918_v15 = vpop.f32.mrf.mxu3  ;;  %v1937_v16 = vpop.f32.mrf.mxu0 }
 0x5cd   :  { %v2094_v17 = vrot.slane %v2028_v58, 4  ;;  %v1974_v25 = vmul.f32 %v2703_v23, %v1937_v16  ;;  %v2089_v28 = vsel %vm200_vm8, %v2027_v8, %v2008_v0  ;;  %v2035_v32 = vrot.slane %v1972_v41, 4 }
 0x5ce   :  { %v2029_v19 = vrot.slane %v2020_v11, 4  ;;  %v2032_v20 = vsel %vm200_vm8, 0.0, %v2031_v14  ;;  %v2026_v21 = vsel %vm200_vm8, 0.0, %v2025_v13  ;;  %v2100_v24 = vsel %vm200_vm8, %v2031_v14, %v2020_v11 }
 0x5cf   :  { %v2105_v53 = vrot.slane %v2032_v20, 4  ;;  %v2095_v48 = vsel %vm200_vm8, %v2094_v17, %v2026_v21  ;;  %v2104_v34 = vperm.slane %v2100_v24, %v2865_v12  ;;  %v2093_v35 = vperm.slane %v2089_v28, %v2865_v12 }
 0x5d0   :  { %v2030_v57 = vsel %vm200_vm8, 0.0, %v2029_v19  ;;  %v2099_v1 = vperm.slane %v2095_v48, %v2865_v12  ;;  %v2705_v33 = vpop.eup %2704  ;;  %v2033_v38 = vrot.slane %v1974_v25, 4  ;;  %v2036_v43 = vsel %vm200_vm8, %v1974_v25, %v2035_v32 }
 0x5d1   :  { %v1799_v63 = vpop.xlane.xlu0 %1798  ;;  %v2106_v29 = vsel %vm200_vm8, %v2105_v53, %v2030_v57  ;;  %v1973_v42 = vmul.f32 %v2705_v33, %v1918_v15  ;;  %v2044_v55 = vperm.slane %v2036_v43, %v2865_v12  ;;  %v2125_v2 = vrot.slane %v2104_v34, 4 }
 0x5d2   :  { %v1901_v26 = vpop.f32.mrf.mxu2  ;;  %v2110_v30 = vperm.slane %v2106_v29, %v2865_v12  ;;  %v2111_v31 = vrot.slane %v2099_v1, 4  ;;  %2706 = vrcp.f32 %v1799_v63  ;;  %v2034_v45 = vsel %vm200_vm8, %v2033_v38, %v1972_v41 }
 0x5d3   :  { %v2047_v49 = vrot.slane %v1973_v42, 4  ;;  %v2040_v52 = vperm.slane %v2034_v45, %v2865_v12  ;;  %v2071_v36 = vrot.slane %v2044_v55, 4  ;;  %v2113_v58 = vrot.slane %v2093_v35, 4 }
 0x5d4   :  { %v1920_v3 = vpop.f32.mrf.mxu3  ;;  %v1939_v18 = vpop.f32.mrf.mxu0  ;;  %v2123_v37 = vrot.slane %v2110_v30, 4  ;;  %v2112_v39 = vsel %vm200_vm8, %v2111_v31, %v2093_v35  ;;  %v2126_v17 = vsel %vm200_vm8, %v2110_v30, %v2125_v2 }
 0x5d5   :  { %v3225_v59 = vperm.slane %v2112_v39, %v2870_v27  ;;  %v2059_v4 = vrot.slane %v2040_v52, 4  ;;  %v2114_v48 = vsel %vm200_vm8, %v2099_v1, %v2113_v58  ;;  %v2134_v23 = vperm.slane %v2126_v17, %v2870_v27 }
 0x5d6   :  { %v2124_v40 = vsel %vm200_vm8, %v2123_v37, %v2104_v34  ;;  %v2122_v18 = vperm.slane %v2114_v48, %v2870_v27  ;;  %v2665_v48 = vld [vmem:[%s3372_s4] ss:$0 sm:$0xff] }
 0x5d7   :  { %v3221_v44 = vperm.slane %v2124_v40, %v2870_v27  ;;  %v2139_v33 = vrot.slane %v2134_v23, 4 }
 0x5d8   :  { %v2707_v47 = vpop.eup %2706 }
 0x5d9   :  { %v2135_v46 = vrot.slane %v3221_v44, 4 }
 0x5db   :  { %v3231_v60 = vsel %vm200_vm8, %v2135_v46, %v3225_v59 }
 0x5dc   :  { %v1956_v62 = vpop.f32.mrf.mxu1 }
 0x5dd   :  { %v1975_v50 = vmul.f32 %v2707_v47, %v1956_v62 }
 0x5df   :  { %v2045_v51 = vrot.slane %v1975_v50, 4  ;;  %v2048_v54 = vsel %vm200_vm8, %v1975_v50, %v2047_v49  ;;  %v2140_v49 = vsel %vm200_vm8, %v2139_v33, %v2122_v18 }
 0x5e0   :  { %v2056_v56 = vperm.slane %v2048_v54, %v2865_v12 }
 0x5e1   :  { %v2046_v61 = vsel %vm200_vm8, %v2045_v51, %v1973_v42 }
 0x5e2   :  { %v2052_v0 = vperm.slane %v2046_v61, %v2865_v12  ;;  %v2069_v7 = vrot.slane %v2056_v56, 4  ;;  %v2072_v8 = vsel %vm200_vm8, %v2056_v56, %v2071_v36 }
 0x5e3   :  { %v2080_v5 = vperm.slane %v2072_v8, %v2870_v27 }
 0x5e4   :  { %v2057_v6 = vrot.slane %v2052_v0, 4  ;;  %v2060_v9 = vsel %vm200_vm8, %v2052_v0, %v2059_v4  ;;  %v2070_v11 = vsel %vm200_vm8, %v2069_v7, %v2044_v55  ;;  %v1958_v13 = vpop.f32.mrf.mxu1  ;;  %v2141_v55 = vrot.slane %v2122_v18, 4 }
 0x5e5   :  { %v2068_v14 = vperm.slane %v2060_v9, %v2870_v27  ;;  %v2076_v15 = vperm.slane %v2070_v11, %v2870_v27  ;;  %v2087_v16 = vrot.slane %v2080_v5, 4  ;;  %v2576_v5 = vld [vmem:[%s3373_s3 + $0x8] sm:$0xff] }
 0x5e6   :  { %v2058_v19 = vsel %vm200_vm8, %v2057_v6, %v2040_v52  ;;  %v2142_v61 = vsel %vm200_vm8, %v2134_v23, %v2141_v55  ;;  %2259 = vmatpush.bf16.msra.mxu2 %v2576_v5  ;;  %v2575_v6 = vld [vmem:[%s3373_s3] sm:$0xff] }
 0x5e7   :  { %v2064_v20 = vperm.slane %v2058_v19, %v2870_v27  ;;  %v2083_v21 = vrot.slane %v2068_v14, 4  ;;  %v2085_v22 = vrot.slane %v2076_v15, 4  ;;  %v2088_v53 = vsel %vm200_vm8, 0.0, %v2087_v16 }
 0x5e8   :  { %v2154_v57 = vsel %vm200_vm8, %v2087_v16, %v2076_v15  ;;  %v2159_v41 = vrot.slane %v2088_v53, 4 }
 0x5e9   :  { %v2081_v24 = vrot.slane %v2064_v20, 4  ;;  %v2084_v25 = vsel %vm200_vm8, 0.0, %v2083_v21  ;;  %v2086_v63 = vsel %vm200_vm8, 0.0, %v2085_v22  ;;  %v2158_v26 = vperm.slane %v2154_v57, %v2865_v12 }
 0x5ea   :  { %v2148_v28 = vrot.slane %v2084_v25, 4  ;;  %v2143_v29 = vsel %vm200_vm8, %v2083_v21, %v2064_v20  ;;  %v2160_v30 = vsel %vm200_vm8, %v2159_v41, %v2086_v63  ;;  %2260 = vmatpush.bf16.msra.mxu2 %v2575_v6  ;;  %v2720_v25 = vld [vmem:[%s3367_s0] sm:$0xff] }
 0x5eb   :  { %v2082_v31 = vsel %vm200_vm8, 0.0, %v2081_v24  ;;  %v2147_v32 = vperm.slane %v2143_v29, %v2865_v12  ;;  %v2164_v1 = vperm.slane %v2160_v30, %v2865_v12  ;;  %v2179_v3 = vrot.slane %v2158_v26, 4  ;;  %v2721_v29 = vld [vmem:[%s3367_s0 + $0x8] sm:$0xff] }
 0x5ec   :  { %v2149_v34 = vsel %vm200_vm8, %v2148_v28, %v2082_v31 }
 0x5ed   :  { %v2153_v35 = vperm.slane %v2149_v34, %v2865_v12  ;;  %v2167_v37 = vrot.slane %v2147_v32, 4  ;;  %v2180_v38 = vsel %vm200_vm8, %v2164_v1, %v2179_v3  ;;  %v2177_v39 = vrot.slane %v2164_v1, 4 }
 0x5ee   :  { %v2188_v40 = vperm.slane %v2180_v38, %v2870_v27  ;;  %v2137_v12 = vrot.slane %v3225_v59, 4 }
 0x5ef   :  { %v2168_v42 = vsel %vm200_vm8, %v2153_v35, %v2167_v37  ;;  %v2165_v43 = vrot.slane %v2153_v35, 4  ;;  %v2178_v45 = vsel %vm200_vm8, %v2177_v39, %v2158_v26 }
 0x5f0   :  { %v2176_v46 = vperm.slane %v2168_v42, %v2870_v27  ;;  %v2193_v47 = vrot.slane %v2188_v40, 4  ;;  %v2184_v62 = vperm.slane %v2178_v45, %v2870_v27  ;;  %v2138_v59 = vsel %vm200_vm8, %v3221_v44, %v2137_v12 }
 0x5f1   :  { %v2166_v50 = vsel %vm200_vm8, %v2165_v43, %v2147_v32  ;;  %v2578_v43 = vld [vmem:[%s3377_s9 + $0x8] sm:$0xff] }
 0x5f2   :  { %v2194_v52 = vsel %vm200_vm8, %v2193_v47, %v2176_v46  ;;  %v2195_v51 = vrot.slane %v2176_v46, 4  ;;  %v2172_v54 = vperm.slane %v2166_v50, %v2870_v27  ;;  %v2189_v36 = vrot.slane %v2184_v62, 4  ;;  %2355 = vmatpush.bf16.msra.mxu3 %v2578_v43  ;;  %v2577_v46 = vld [vmem:[%s3377_s9] sm:$0xff] }
 0x5f3   :  { %v2652_v56 = vpack.i.bf16 %v2194_v52, %v2140_v49 }
 0x5f4   :  { %v2196_v2 = vsel %vm200_vm8, %v2188_v40, %v2195_v51  ;;  %v2191_v4 = vrot.slane %v2172_v54, 4  ;;  %v2190_v0 = vsel %vm200_vm8, %v2189_v36, %v2172_v54 }
 0x5f5   :  { %2653 = vrot.lane.b32.xlu2 %v2652_v56, %s2730_s23  ;;  %v2657_v7 = vpack.i.bf16 %v2196_v2, %v2142_v61 }
 0x5f6   :  { %v2192_v8 = vsel %vm200_vm8, %v2184_v62, %v2191_v4  ;;  %2356 = vmatpush.bf16.msra.mxu3 %v2577_v46 }
 0x5f7   :  { %2658 = vrot.lane.b32.xlu1 %v2657_v7, %s2731_s24  ;;  %v2647_v27 = vpack.i.bf16 %v2192_v8, %v2138_v59 }
 0x5f9   :  { %2648 = vrot.lane.b32.xlu0 %v2647_v27, %s2732_s25  ;;  %v2667_v27 = vld [vmem:[%s3375_s8] ss:$0 sm:$0xff] }
 0x64f   :  { %v2654_v9 = vpop.permute.xlu2 %2653 }
 0x650   :  { %v2656_v14 = vunpack.i.h.bf16 %v2654_v9  ;;  %v2655_v15 = vunpack.i.l.bf16 %v2654_v9 }
 0x669   :  { %v2659_v11 = vpop.permute.xlu1 %2658 }
 0x66a   :  { %v2661_v16 = vunpack.i.h.bf16 %v2659_v11  ;;  %v2660_v17 = vunpack.i.l.bf16 %v2659_v11 }
 0x66b   :  { %v2649_v44 = vpop.permute.xlu0 %2648 }
 0x66c   :  { %v2651_v13 = vunpack.i.h.bf16 %v2649_v44  ;;  %v2650_v58 = vunpack.i.l.bf16 %v2649_v44 }
 0x66e   :  { %v2221_v19 = vsel %vm1574_vm10, %v3231_v60, %v2650_v58  ;;  %v2222_v20 = vsel %vm1574_vm10, %v2190_v0, %v2651_v13  ;;  %v2586_v58 = vld [vmem:[%s3379_s11 + $0x38] sm:$0xff] }
 0x66f   :  { %v2224_v21 = vsel %vm2223_vm11, %v2221_v19, %v2655_v15  ;;  %v2225_v22 = vsel %vm2223_vm11, %v2222_v20, %v2656_v14  ;;  %2474 = vmatpush.bf16.msrb.mxu0 %v2586_v58  ;;  %v2585_v14 = vld [vmem:[%s3379_s11 + $0x30] sm:$0xff]  ;;  %v2584_v15 = vld [vmem:[%s3379_s11 + $0x28] sm:$0xff]  ;;  %v2582_v20 = vld [vmem:[%s3379_s11 + $0x18] sm:$0xff] }
 0x670   :  { %v2227_v53 = vsel %vm2226_vm12, %v2224_v21, %v2660_v17  ;;  %v2228_v57 = vsel %vm2226_vm12, %v2225_v22, %v2661_v16  ;;  %v2583_v16 = vld [vmem:[%s3379_s11 + $0x20] sm:$0xff] }
 0x671   :  { %v2229_v41 = vpack.c.bf16 %v2228_v57, %v2227_v53  ;;  %v2668_v17 = vld [vmem:[%s3376_s10] ss:$0 sm:$0xff]  ;;  %v2581_v53 = vld [vmem:[%s3379_s11 + $0x10] sm:$0xff] }
 0x673   :  { %2529 = vmatmul.msk.bf16.vlgmr.msra.gmra.mxu2 %vm49_vm0, %v2229_v41  ;;  %2475 = vmatpush.bf16.msrb.mxu0 %v2585_v14 }
 0x677   :  { %2476 = vmatpush.bf16.msrb.mxu0 %v2584_v15 }
 0x67b   :  { %2477 = vmatpush.bf16.msrb.mxu0 %v2583_v16 }
 0x67f   :  { %2478 = vmatpush.bf16.msrb.mxu0 %v2582_v20 }
 0x683   :  { %2479 = vmatpush.bf16.msrb.mxu0 %v2581_v53 }
 0x6f6   :  { %v2262_v23 = vpop.f32.mrf.mxu2 }
 0x6f7   :  { %v2263_v24 = vadd.f32 %v2665_v48, %v2262_v23 }
 0x6f9   :  { %v3295_v60 = vadd.f32 %v2720_v25, %v2263_v24  ;;  %v2579_v25 = vld [vmem:[%s3379_s11] sm:$0xff] }
 0x6fb   :  { %v2271_v63 = vsel %vm49_vm0, %v3295_v60, 0.0 }
 0x6fc   :  { %2272 = vadd.xlane.f32.xlu0 %v2271_v63 }
 0x6fe   :  { %v2264_v26 = vpop.f32.mrf.mxu2 }
 0x6ff   :  { %v2265_v28 = vadd.f32 %v2665_v48, %v2264_v26  ;;  %v2580_v48 = vld [vmem:[%s3379_s11 + $0x8] sm:$0xff] }
 0x700   :  { %2480 = vmatpush.bf16.msrb.mxu0 %v2580_v48 }
 0x701   :  { %v3302_v30 = vadd.f32 %v2721_v29, %v2265_v28 }
 0x703   :  { %v2274_v31 = vsel %vm49_vm0, %v3302_v30, 0.0 }
 0x704   :  { %2275 = vadd.xlane.f32.xlu2 %v2274_v31  ;;  %2481 = vmatpush.bf16.msrb.mxu0 %v2579_v25 }
 0x76f   :  { %v2273_v32 = vpop.xlane.xlu0 %2272 }
 0x770   :  { %v2277_v1 = vmul.f32 %v2273_v32, %v2811_v10 }
 0x772   :  { %v2279_v3 = vsub.f32 %v3295_v60, %v2277_v1 }
 0x774   :  { %v2281_v18 = vmul.f32 %v2279_v3, %v2279_v3 }
 0x776   :  { %v2283_v33 = vsel %vm49_vm0, %v2281_v18, 0.0 }
 0x777   :  { %v2276_v34 = vpop.xlane.xlu2 %2275  ;;  %2284 = vadd.xlane.f32.xlu1 %v2283_v33 }
 0x778   :  { %v2278_v35 = vmul.f32 %v2276_v34, %v2811_v10 }
 0x77a   :  { %v2280_v37 = vsub.f32 %v3302_v30, %v2278_v35 }
 0x77c   :  { %v2282_v38 = vmul.f32 %v2280_v37, %v2280_v37 }
 0x77e   :  { %v2286_v39 = vsel %vm49_vm0, %v2282_v38, 0.0 }
 0x77f   :  { %2287 = vadd.xlane.f32.xlu0 %v2286_v39 }
 0x7ea   :  { %v2285_v40 = vpop.xlane.xlu1 %2284 }
 0x7eb   :  { %v2289_v42 = vmul.f32 %v2285_v40, %v2811_v10 }
 0x7ed   :  { %v2291_v45 = vadd.f32 1e-05, %v2289_v42 }
 0x7ef   :  { %2708 = vrsqrt.f32 %v2291_v45  ;;  %vm2299_vm14 = vweird.f32 %v2291_v45 }
 0x7f2   :  { %v2288_v47 = vpop.xlane.xlu0 %2287 }
 0x7f3   :  { %v2290_v55 = vmul.f32 %v2288_v47, %v2811_v10  ;;  %v2666_v10 = vld [vmem:[%s3374_s7] ss:$0 sm:$0xff] }
 0x7f5   :  { %v2709_v62 = vpop.eup %2708  ;;  %v2292_v49 = vadd.f32 1e-05, %v2290_v55 }
 0x7f6   :  { %v2294_v12 = vmul.f32 %v2709_v62, %v2291_v45  ;;  %vm2300_vm13 = vweird.f32 %v2709_v62 }
 0x7f7   :  { %2710 = vrsqrt.f32 %v2292_v49  ;;  %vm2301_vm15 = vmor %vm2299_vm14, %vm2300_vm13  ;;  %vm2309_vm2 = vweird.f32 %v2292_v49 }
 0x7f8   :  { %v2295_v50 = vmul.f32 %v2709_v62, %v2294_v12 }
 0x7fa   :  { %v2296_v52 = vmul.f32 0.5, %v2295_v50 }
 0x7fc   :  { %v2297_v51 = vsub.f32 1.5, %v2296_v52 }
 0x7fd   :  { %v2711_v54 = vpop.eup %2710 }
 0x7fe   :  { %v2298_v36 = vmul.f32 %v2709_v62, %v2297_v51  ;;  %v2304_v56 = vmul.f32 %v2711_v54, %v2292_v49  ;;  %vm2310_vm1 = vweird.f32 %v2711_v54 }
 0x7ff   :  { %vm2311_vm3 = vmor %vm2309_vm2, %vm2310_vm1 }
 0x800   :  { %v2305_v61 = vmul.f32 %v2711_v54, %v2304_v56  ;;  %v2302_v2 = vsel %vm2301_vm15, %v2709_v62, %v2298_v36 }
 0x801   :  { %v2313_v7 = vmul.f32 %v2302_v2, %v2279_v3 }
 0x802   :  { %v2306_v4 = vmul.f32 0.5, %v2305_v61 }
 0x803   :  { %v2318_v5 = vmul.f32 %v2666_v10, %v2313_v7 }
 0x804   :  { %v2307_v0 = vsub.f32 1.5, %v2306_v4 }
 0x805   :  { %v2323_v11 = vadd.f32 %v2667_v27, %v2318_v5 }
 0x806   :  { %v2308_v59 = vmul.f32 %v2711_v54, %v2307_v0 }
 0x808   :  { %v2312_v8 = vsel %vm2311_vm3, %v2711_v54, %v2308_v59  ;;  %v2669_v54 = vld [vmem:[%s3378_s12] ss:$0 sm:$0xff] }
 0x809   :  { %v2314_v6 = vmul.f32 %v2312_v8, %v2280_v37 }
 0x80b   :  { %v2319_v9 = vmul.f32 %v2666_v10, %v2314_v6 }
 0x80d   :  { %v2324_v44 = vadd.f32 %v2667_v27, %v2319_v9 }
 0x80f   :  { %v2325_v13 = vpack.c.bf16 %v2324_v44, %v2323_v11 }
 0x811   :  { %2538 = vmatmul.msk.bf16.vlgmr.msra.gmra.mxu3 %vm49_vm0, %v2325_v13 }
 0x894   :  { %v2358_v19 = vpop.f32.mrf.mxu3 }
 0x895   :  { %v2359_v21 = vadd.f32 %v2668_v17, %v2358_v19 }
 0x897   :  { %v2539_v22 = vmul.f32 -1.702, %v2359_v21 }
 0x899   :  { %v2367_v57 = vmul.f32 1.442695, %v2539_v22 }
 0x89b   :  { %2712 = vpow2.f32 %v2367_v57 }
 0x89c   :  { %v2360_v41 = vpop.f32.mrf.mxu3 }
 0x89d   :  { %v2361_v23 = vadd.f32 %v2668_v17, %v2360_v41 }
 0x89f   :  { %v2540_v24 = vmul.f32 -1.702, %v2361_v23 }
 0x8a1   :  { %v2713_v63 = vpop.eup %2712  ;;  %v2369_v26 = vmul.f32 1.442695, %v2540_v24 }
 0x8a2   :  { %v2371_v28 = vadd.f32 1.0, %v2713_v63 }
 0x8a3   :  { %2714 = vpow2.f32 %v2369_v26 }
 0x8a4   :  { %2716 = vrcp.f32 %v2371_v28  ;;  %v2384_v37 = vand.u32 2147483648, %v2371_v28  ;;  %vm2378_vm5 = vweird.f32 %v2371_v28  ;;  %v2382_v38 = vand.u32 2147483647, %v2371_v28 }
 0x8a6   :  { %v2385_v46 = vor.u32 1.1754944e-38, %v2384_v37  ;;  %vm2383_vm8 = vcmp.eq.f32.partialorder %v2382_v38, 8.507059e+37 }
 0x8a9   :  { %v2715_v29 = vpop.eup %2714 }
 0x8aa   :  { %v2717_v31 = vpop.eup %2716  ;;  %v2372_v32 = vadd.f32 1.0, %v2715_v29 }
 0x8ab   :  { %v2374_v1 = vmul.f32 %v2717_v31, %v2371_v28  ;;  %vm2379_vm4 = vweird.f32 %v2717_v31 }
 0x8ac   :  { %2718 = vrcp.f32 %v2372_v32  ;;  %vm2380_vm6 = vmor %vm2378_vm5, %vm2379_vm4  ;;  %v2399_v40 = vand.u32 2147483648, %v2372_v32  ;;  %v2397_v45 = vand.u32 2147483647, %v2372_v32  ;;  %vm2393_vm9 = vweird.f32 %v2372_v32 }
 0x8ad   :  { %v2375_v3 = vsub.f32 1.0, %v2374_v1 }
 0x8ae   :  { %v2400_v62 = vor.u32 1.1754944e-38, %v2399_v40  ;;  %vm2398_vm11 = vcmp.eq.f32.partialorder %v2397_v45, 8.507059e+37 }
 0x8af   :  { %v2376_v18 = vmul.f32 %v2717_v31, %v2375_v3 }
 0x8b1   :  { %v2377_v34 = vadd.f32 %v2717_v31, %v2376_v18 }
 0x8b2   :  { %v2719_v33 = vpop.eup %2718 }
 0x8b3   :  { %v2389_v35 = vmul.f32 %v2719_v33, %v2372_v32  ;;  %v2381_v42 = vsel %vm2380_vm6, %v2717_v31, %v2377_v34  ;;  %vm2394_vm7 = vweird.f32 %v2719_v33 }
 0x8b4   :  { %v2386_v55 = vsel %vm2383_vm8, %v2385_v46, %v2381_v42  ;;  %vm2395_vm10 = vmor %vm2393_vm9, %vm2394_vm7 }
 0x8b5   :  { %v2390_v39 = vsub.f32 1.0, %v2389_v35  ;;  %v2403_v50 = vmul.f32 %v2386_v55, %v2359_v21 }
 0x8b7   :  { %v2391_v43 = vmul.f32 %v2719_v33, %v2390_v39 }
 0x8b9   :  { %v2392_v47 = vadd.f32 %v2719_v33, %v2391_v43 }
 0x8bb   :  { %v2396_v49 = vsel %vm2395_vm10, %v2719_v33, %v2392_v47 }
 0x8bc   :  { %v2401_v12 = vsel %vm2398_vm11, %v2400_v62, %v2396_v49 }
 0x8bd   :  { %v2404_v52 = vmul.f32 %v2401_v12, %v2361_v23 }
 0x8bf   :  { %v2405_v51 = vpack.c.bf16 %v2404_v52, %v2403_v50 }
 0x8c1   :  { %2482 = vmatmul.bf16.vlgmr.msrb.gmra.mxu0 %v2405_v51 }
 0x93e   :  { %v2483_v36 = vpop.f32.mrf.mxu0 }
 0x93f   :  { %v2484_v56 = vadd.f32 %v2669_v54, %v2483_v36 }
 0x941   :  { %v2488_v61 = vadd.f32 %v2484_v56, %v3295_v60 }
 0x943   :  { %2490 = vst.msk [vmem:[%s3380_s13] sm:$0xff] %vm49_vm0, %v2488_v61 }
 0x946   :  { %v2485_v2 = vpop.f32.mrf.mxu0 }
 0x947   :  { %v2486_v4 = vadd.f32 %v2669_v54, %v2485_v2 }
 0x949   :  { %v2489_v0 = vadd.f32 %v2486_v4, %v3302_v30 }
 0x94b   :  { %2491 = vst.msk [vmem:[%s3380_s13 + $0x8] sm:$0xff] %vm49_vm0, %v2489_v0 }

</bundles_post_ra>
